<compile_context>
chip_gen: v5e
topology: v5e:2x2
jax: 0.10.0
libtpu: 0.0.40
codegen_flags: <defaults>
</compile_context>

<pallas_src>
import functools
import math

import jax
import jax.numpy as jnp
from jax.experimental import pallas as pl
from jax.experimental.pallas import tpu as pltpu

# ---- SS2D(d_model=16, d_state=8, ssm_ratio=2.0, dt_rank='auto', d_conv=3,
#           conv_bias=True, bias=False, dropout=0.0, channel_first=True) ----
D_MODEL = 16
D_STATE = 8
SSM_RATIO = 2.0
D_INNER = int(SSM_RATIO * D_MODEL)            # 32
DT_RANK = int(math.ceil(D_MODEL / 16))        # 1
K_GROUP = 4
D_CONV = 3


def _softplus(x):
    # matches torch.nn.functional.softplus (threshold=20)
    return jnp.where(x > 20.0, x, jnp.log1p(jnp.exp(x)))


# -------------------------------------------------------------------------
# Host-side weight packing (exact copies / block-diagonal placement only).
# -------------------------------------------------------------------------
def _blockdiag_weight(blocks):
    # blocks: (K, D_in, C_out) -> (K*D_in, K*C_out) block-diagonal
    K, d_in, c_out = blocks.shape
    full = jnp.broadcast_to(blocks[:, :, None, :], (K, d_in, K, c_out))
    mask = jnp.eye(K, dtype=bool)[:, None, :, None]
    return jnp.where(mask, full, 0.0).reshape(K * d_in, K * c_out)


def _expanded_state_weight(xw_part):
    # xw_part: (K, N, D)  (B- or C-slice of x_proj_weight)
    # returns W of shape (K*D, N*K*D) with
    #   W[k*D + d_in, n*K*D + j*D + d_out] = xw_part[k, n, d_in] if j == k else 0
    # so (x @ W)[l, n*K*D + k*D + d] = B_or_C[l, direction k, state n]  (all d)
    K, N, D = xw_part.shape
    vals = jnp.transpose(xw_part, (0, 2, 1))[:, :, :, None, None]      # (K,D,N,1,1)
    full = jnp.broadcast_to(vals, (K, D, N, K, D))
    mask = jnp.eye(K, dtype=bool)[:, None, None, :, None]              # (K,1,1,K,1)
    return jnp.where(mask, full, 0.0).reshape(K * D, N * K * D)


# -------------------------------------------------------------------------
# Pallas kernel: grid = (batch, L-chunk).  Per step it processes a
# (chunk, K*D) = (chunk, 128) slab of the 4 folded scan directions:
#   delta = softplus(x @ W_dt + dt_bias)                     (f32, small GEMM)
#   B, C  = x_bf16 @ W_B, x_bf16 @ W_C                       (bf16 MXU GEMMs)
#   dA    = exp(delta * A), dBu = delta * u * B              (state-major slabs)
#   h_l   = dA_l * h_{l-1} + dBu_l                           (8-step Hillis-Steele
#                                                              scan per sublane tile)
#   y_l   = sum_n C_l,n * h_l,n + D * u_l
# The recurrent state h (one (8,128) vreg) is carried across L-chunks in VMEM.
# -------------------------------------------------------------------------
def _ss2d_scan_kernel(xs_ref, wdt_ref, wb_ref, wc_ref, dtb_ref, a_ref, ds_ref,
                      ys_ref, dA_s, dBu_s, ce_s, h_s):
    chunk_idx = pl.program_id(1)
    chunk, KD = xs_ref.shape
    N = a_ref.shape[0]
    SUB = 8

    x = xs_ref[...]                                           # (chunk, 128) f32
    x_bf = x.astype(jnp.bfloat16)

    # delta path kept f32 (feeds the exp() recurrence; only a 128x128 GEMM)
    dts = jnp.dot(x, wdt_ref[...], preferred_element_type=jnp.float32)
    delta = _softplus(dts + dtb_ref[...])                     # (chunk, 128)
    du = delta * x

    # Big GEMMs with bf16 operands (MXU-native), f32 accumulation.
    b_full = jnp.dot(x_bf, wb_ref[...], preferred_element_type=jnp.float32)  # (chunk, N*KD)
    c_full = jnp.dot(x_bf, wc_ref[...], preferred_element_type=jnp.float32)

    # State-major scratch (N, chunk, KD): every store below is a contiguous,
    # lane/sublane-dense (chunk, 128) slab (no reshapes / relayouts).
    for n in range(N):                                        # static, N = 8
        a_row = a_ref[n, :]                                   # (128,)
        dA_s[n] = jnp.exp(delta * a_row)                      # exp(delta*A_n)
        dBu_s[n] = du * b_full[:, n * KD:(n + 1) * KD]        # delta*u*B_n
        ce_s[n] = c_full[:, n * KD:(n + 1) * KD]              # C_n

    # Recurrent state carried across L-chunks.  NOTE: relies on the grid
    # iterating batch-outer (parallel) / chunk-inner (arbitrary); each core
    # then sees chunk_idx == 0 exactly once per batch element it owns.
    @pl.when(chunk_idx == 0)
    def _():
        h_s[...] = jnp.zeros_like(h_s)

    ds_row = ds_ref[0, :]                                     # (128,)
    n_sub = chunk // SUB
    # hoisted identity pads for the Hillis-Steele shifts (no per-iter broadcasts)
    ones_pad = [jnp.ones((N, d, KD), jnp.float32) for d in (1, 2, 4)]
    zeros_pad = [jnp.zeros((N, d, KD), jnp.float32) for d in (1, 2, 4)]

    def sub_chunk(s, h):
        base = pl.multiple_of(s * SUB, SUB)
        P = dA_s[:, pl.ds(base, SUB), :]                      # (N, 8, 128)
        Q = dBu_s[:, pl.ds(base, SUB), :]
        ce = ce_s[:, pl.ds(base, SUB), :]
        x_blk = xs_ref[pl.ds(base, SUB), :]                   # (8, 128)

        # Hillis-Steele inclusive scan over the 8 steps (sublane axis):
        # combine (P2,Q2)o(P1,Q1) = (P2*P1, P2*Q1 + Q2)
        for lvl, d in enumerate((1, 2, 4)):
            pP = jnp.concatenate([ones_pad[lvl], P[:, :SUB - d, :]], axis=1)
            pQ = jnp.concatenate([zeros_pad[lvl], Q[:, :SUB - d, :]], axis=1)
            Q = P * pQ + Q
            P = P * pP

        h_all = P * h[:, None, :] + Q                         # (N, 8, 128)
        y_blk = jnp.sum(h_all * ce, axis=0)                   # (8, 128)
        ys_ref[pl.ds(base, SUB), :] = y_blk + x_blk * ds_row  # unmasked 128-lane store
        return h_all[:, SUB - 1, :]                           # (N, 128) carry

    if n_sub <= 8:
        unroll = n_sub
    else:
        unroll = next(d for d in (8, 4, 2, 1) if n_sub % d == 0)
    h_fin = jax.lax.fori_loop(0, n_sub, sub_chunk, h_s[...], unroll=unroll)
    h_s[...] = h_fin


def ss2d_scan_pallas(xs_flat, w_dt, w_bexp, w_cexp, dtb_flat, a_mat, ds_flat,
                     *, chunk_l):
    B, L, KD = xs_flat.shape
    N = a_mat.shape[0]
    NKD = N * KD
    assert chunk_l >= 8 and chunk_l % 8 == 0 and L % chunk_l == 0
    n_chunks = L // chunk_l

    grid_spec = pltpu.PrefetchScalarGridSpec(
        num_scalar_prefetch=0,
        grid=(B, n_chunks),
        in_specs=[
            pl.BlockSpec((None, chunk_l, KD), lambda b, c: (b, c, 0)),  # xs
            pl.BlockSpec((KD, KD), lambda b, c: (0, 0)),                # fused dt weight (f32)
            pl.BlockSpec((KD, NKD), lambda b, c: (0, 0)),               # W_B expanded (bf16)
            pl.BlockSpec((KD, NKD), lambda b, c: (0, 0)),               # W_C expanded (bf16)
            pl.BlockSpec((1, KD), lambda b, c: (0, 0)),                 # dt_bias
            pl.BlockSpec((N, KD), lambda b, c: (0, 0)),                 # A (N, KD)
            pl.BlockSpec((1, KD), lambda b, c: (0, 0)),                 # Ds
        ],
        out_specs=pl.BlockSpec((None, chunk_l, KD), lambda b, c: (b, c, 0)),
        scratch_shapes=[
            pltpu.VMEM((N, chunk_l, KD), jnp.float32),   # exp(delta*A)
            pltpu.VMEM((N, chunk_l, KD), jnp.float32),   # delta*B*u
            pltpu.VMEM((N, chunk_l, KD), jnp.float32),   # expanded C
            pltpu.VMEM((N, KD), jnp.float32),            # carried recurrent state h
        ],
    )
    return pl.pallas_call(
        _ss2d_scan_kernel,
        out_shape=jax.ShapeDtypeStruct((B, L, KD), jnp.float32),
        grid_spec=grid_spec,
        compiler_params=pltpu.CompilerParams(
            dimension_semantics=("parallel", "arbitrary"),
            vmem_limit_bytes=32 * 1024 * 1024),
    )(xs_flat, w_dt, w_bexp, w_cexp, dtb_flat, a_mat, ds_flat)


# -------------------------------------------------------------------------
# Plain-JAX glue: cross_scan / cross_merge, depthwise conv, layernorm, projs
# -------------------------------------------------------------------------
def cross_scan(x):  # x: (B, D, H, W) -> (B, 4, D, L)   (cross2d)
    B, D, H, W = x.shape
    L = H * W
    x0 = x.reshape(B, D, L)
    x1 = jnp.transpose(x, (0, 1, 3, 2)).reshape(B, D, L)
    return jnp.stack([x0, x1, jnp.flip(x0, -1), jnp.flip(x1, -1)], axis=1)


def cross_merge(ys, H, W):  # ys: (B, 4, D, L) -> (B, D, L)
    B, K, D, L = ys.shape
    y02 = ys[:, 0] + jnp.flip(ys[:, 2], -1)
    y13 = ys[:, 1] + jnp.flip(ys[:, 3], -1)
    y13 = jnp.transpose(y13.reshape(B, D, W, H), (0, 1, 3, 2)).reshape(B, D, L)
    return y02 + y13


def _selective_scan_ref(u, delta, A, Bs, Cs, Dvec, delta_bias):
    # pure-JAX reference of selective_scan_fn (delta_softplus=True)
    Bb, KD, L = u.shape
    K = Bs.shape[1]
    D = KD // K
    delta = _softplus(delta + delta_bias[None, :, None])
    Bf = jnp.repeat(Bs, D, axis=1)                     # (B, KD, N, L)
    Cf = jnp.repeat(Cs, D, axis=1)
    dA = jnp.exp(delta[:, :, None, :] * A[None, :, :, None])
    dBu = delta[:, :, None, :] * Bf * u[:, :, None, :]

    def step(h, inp):
        dA_l, dBu_l, C_l = inp
        h = dA_l * h + dBu_l
        return h, jnp.sum(h * C_l, axis=-1)

    h0 = jnp.zeros((Bb, KD, A.shape[1]), jnp.float32)
    _, ys = jax.lax.scan(step, h0, (jnp.moveaxis(dA, -1, 0),
                                    jnp.moveaxis(dBu, -1, 0),
                                    jnp.moveaxis(Cf, -1, 0)))
    ys = jnp.moveaxis(ys, 0, -1)
    return ys + Dvec[None, :, None] * u


def forward_core(params, x, use_pallas, chunk_l=None):
    B, D, H, W = x.shape
    L = H * W
    K, N, R = K_GROUP, D_STATE, DT_RANK
    xs = cross_scan(x)                                       # (B, K, D, L)
    A = -jnp.exp(params['A_logs'].astype(jnp.float32))       # (K*D, N)
    Ds = params['Ds'].astype(jnp.float32)                    # (K*D,)
    dtb = params['dt_projs_bias'].astype(jnp.float32)        # (K, D)

    if use_pallas:
        KD = K * D
        xs_flat = jnp.transpose(xs, (0, 3, 1, 2)).reshape(B, L, KD)
        xs_flat = xs_flat.astype(jnp.float32)                # lane index = k*D + d
        xw = params['x_proj_weight']                         # (K, R+2N, D)
        dtw = params['dt_projs_weight']                      # (K, D, R)
        # fused x_proj(dt-rows) @ dt_proj, block-diagonal over the 4 directions
        dt_blocks = jnp.einsum('krd,ker->kde', xw[:, :R, :], dtw)   # (K, D, D)
        w_dt = _blockdiag_weight(dt_blocks)                          # (KD, KD) f32
        w_bexp = _expanded_state_weight(xw[:, R:R + N, :]).astype(jnp.bfloat16)
        w_cexp = _expanded_state_weight(xw[:, R + N:, :]).astype(jnp.bfloat16)
        a_mat = jnp.transpose(A)                                     # (N, KD)

        if chunk_l is None:
            chunk_l = L
            if L > 512:
                for cand in range(512, 7, -8):
                    if L % cand == 0:
                        chunk_l = cand
                        break
        chunk_l = min(chunk_l, L)

        ys_flat = ss2d_scan_pallas(xs_flat, w_dt, w_bexp, w_cexp,
                                   dtb.reshape(1, KD), a_mat,
                                   Ds.reshape(1, KD), chunk_l=chunk_l)  # (B,L,KD)
        ys = jnp.transpose(ys_flat.reshape(B, L, K, D), (0, 2, 3, 1))   # (B,K,D,L)
    else:
        x_dbl = jnp.einsum('bkdl,kcd->bkcl', xs, params['x_proj_weight'])
        dts_r = x_dbl[:, :, :R]
        Bs = x_dbl[:, :, R:R + N]
        Cs = x_dbl[:, :, R + N:]
        dts = jnp.einsum('bkrl,kdr->bkdl', dts_r, params['dt_projs_weight'])
        ys_flat = _selective_scan_ref(xs.reshape(B, K * D, L),
                                      dts.reshape(B, K * D, L),
                                      A, Bs, Cs, Ds, dtb.reshape(-1))
        ys = ys_flat.reshape(B, K, D, L)

    y = cross_merge(ys, H, W).reshape(B, D, H, W)
    # out_norm = LayerNorm2d(d_inner): NCHW -> NHWC -> LN over channels -> NCHW
    yn = jnp.transpose(y, (0, 2, 3, 1))
    mean = jnp.mean(yn, axis=-1, keepdims=True)
    var = jnp.mean((yn - mean) ** 2, axis=-1, keepdims=True)
    yn = (yn - mean) / jnp.sqrt(var + 1e-5)
    yn = yn * params['ln_w'] + params['ln_b']
    return jnp.transpose(yn, (0, 3, 1, 2)).astype(x.dtype)


def ss2d_forward(params, x, use_pallas=True, chunk_l=None):
    # x: (B, d_model, H, W)   NCHW (channel_first=True)
    xz = jnp.einsum('oc,bchw->bohw', params['in_proj_w'], x)   # Linear2d, no bias
    xi, z = jnp.split(xz, 2, axis=1)
    z = jax.nn.silu(z)
    xi = jax.lax.conv_general_dilated(
        xi, params['conv_w'], window_strides=(1, 1), padding=((1, 1), (1, 1)),
        dimension_numbers=('NCHW', 'OIHW', 'NCHW'),
        feature_group_count=D_INNER)                           # depthwise 3x3
    xi = xi + params['conv_b'][None, :, None, None]
    xi = jax.nn.silu(xi)
    y = forward_core(params, xi, use_pallas, chunk_l)
    y = y * z
    out = jnp.einsum('oc,bchw->bohw', params['out_proj_w'], y)  # Linear2d, no bias
    return out                                                  # dropout = identity


# -------------------------------------------------------------------------
# Deterministic parameter init (same shapes / formulas as SS2D.__init__)
# -------------------------------------------------------------------------
def init_params(key):
    D, N, R, K = D_INNER, D_STATE, DT_RANK, K_GROUP
    C = R + 2 * N
    keys = jax.random.split(key, 8)

    def u(k, shape, bound):
        return jax.random.uniform(k, shape, jnp.float32, -bound, bound)

    params = {}
    params['in_proj_w'] = u(keys[0], (2 * D, D_MODEL), 1.0 / math.sqrt(D_MODEL))
    params['conv_w'] = u(keys[1], (D, 1, D_CONV, D_CONV), 1.0 / math.sqrt(D_CONV * D_CONV))
    params['conv_b'] = u(keys[2], (D,), 1.0 / math.sqrt(D_CONV * D_CONV))
    params['x_proj_weight'] = u(keys[3], (K, C, D), 1.0 / math.sqrt(D))
    params['dt_projs_weight'] = u(keys[4], (K, D, R), R ** -0.5)
    dt = jnp.exp(jax.random.uniform(keys[5], (K, D)) *
                 (math.log(0.1) - math.log(0.001)) + math.log(0.001))
    dt = jnp.maximum(dt, 1e-4)
    params['dt_projs_bias'] = dt + jnp.log(-jnp.expm1(-dt))     # inverse softplus
    A_log = jnp.log(jnp.tile(jnp.arange(1, N + 1, dtype=jnp.float32)[None, :], (D, 1)))
    params['A_logs'] = jnp.tile(A_log, (K, 1))                  # (K*D, N)
    params['Ds'] = jnp.ones((K * D,), jnp.float32)
    params['ln_w'] = jnp.ones((D,), jnp.float32)
    params['ln_b'] = jnp.zeros((D,), jnp.float32)
    params['out_proj_w'] = u(keys[6], (D_MODEL, D), 1.0 / math.sqrt(D))
    return params


if __name__ == "__main__":
    key = jax.random.PRNGKey(0)
    pkey, xkey = jax.random.split(key)
    params = init_params(pkey)

    B, H, W = 2, 8, 8
    x = jax.random.normal(xkey, (B, D_MODEL, H, W), jnp.float32)

    # chunk_l=32 < L=64 so the carried-state path across L-chunks is exercised.
    fwd = jax.jit(functools.partial(ss2d_forward, use_pallas=True, chunk_l=32))
    out = jax.block_until_ready(fwd(params, x))

    ref_fn = jax.jit(functools.partial(ss2d_forward, use_pallas=False))
    ref = jax.block_until_ready(ref_fn(params, x))

    assert out.shape == (B, D_MODEL, H, W)
    assert bool(jnp.isfinite(out).all())
    # Tolerance widened vs. the all-f32 version: the B/C GEMMs now run with
    # bf16 MXU operands (f32 accumulation); the delta/exp path stays f32.
    err = float(jnp.max(jnp.abs(out - ref)))
    assert err < 5e-2, f"pallas vs reference mismatch: {err}"
    print("KERNEL_OK")
</pallas_src>

<mosaic_0001>
module attributes {stable_mosaic.version = 11 : i64} {
  func.func @_ss2d_scan_kernel(%arg0: i32, %arg1: i32, %arg2: memref<1x32x128xf32, #tpu.memory_space<vmem>>, %arg3: memref<128x128xf32, #tpu.memory_space<vmem>>, %arg4: memref<128x1024xbf16, #tpu.memory_space<vmem>>, %arg5: memref<128x1024xbf16, #tpu.memory_space<vmem>>, %arg6: memref<1x128xf32, #tpu.memory_space<vmem>>, %arg7: memref<8x128xf32, #tpu.memory_space<vmem>>, %arg8: memref<1x128xf32, #tpu.memory_space<vmem>>, %arg9: memref<1x32x128xf32, #tpu.memory_space<vmem>>, %arg10: memref<8x32x128xf32, #tpu.memory_space<vmem>>, %arg11: memref<8x32x128xf32, #tpu.memory_space<vmem>>, %arg12: memref<8x32x128xf32, #tpu.memory_space<vmem>>, %arg13: memref<8x128xf32, #tpu.memory_space<vmem>>) attributes {dimension_semantics = [#tpu.dimension_semantics<parallel>, #tpu.dimension_semantics<arbitrary>], iteration_bounds = array<i64: 2, 2>, scalar_prefetch = 0 : i64, scratch_operands = 4 : i64, tpu.core_type = #tpu.core_type<tc>, window_params = [{transform_indices = @transform_0, window_bounds = array<i64: 1, 32, 128>}, {pipeline_mode = #tpu.pipeline_mode<synchronous>, transform_indices = @transform_1, window_bounds = array<i64: 128, 128>}, {pipeline_mode = #tpu.pipeline_mode<synchronous>, transform_indices = @transform_2, window_bounds = array<i64: 128, 1024>}, {pipeline_mode = #tpu.pipeline_mode<synchronous>, transform_indices = @transform_3, window_bounds = array<i64: 128, 1024>}, {pipeline_mode = #tpu.pipeline_mode<synchronous>, transform_indices = @transform_4, window_bounds = array<i64: 1, 128>}, {pipeline_mode = #tpu.pipeline_mode<synchronous>, transform_indices = @transform_5, window_bounds = array<i64: 8, 128>}, {pipeline_mode = #tpu.pipeline_mode<synchronous>, transform_indices = @transform_6, window_bounds = array<i64: 1, 128>}, {transform_indices = @transform_7, window_bounds = array<i64: 1, 32, 128>}]} {
    %c0 = arith.constant 0 : index
    %c0_0 = arith.constant 0 : index
    %c0_1 = arith.constant 0 : index
    %0 = vector.load %arg2[%c0, %c0_0, %c0_1] : memref<1x32x128xf32, #tpu.memory_space<vmem>>, vector<1x32x128xf32>
    %1 = vector.shape_cast %0 : vector<1x32x128xf32> to vector<32x128xf32>
    %2 = arith.truncf %1 : vector<32x128xf32> to vector<32x128xbf16>
    %c0_2 = arith.constant 0 : index
    %c0_3 = arith.constant 0 : index
    %3 = vector.load %arg3[%c0_2, %c0_3] : memref<128x128xf32, #tpu.memory_space<vmem>>, vector<128x128xf32>
    %cst = arith.constant dense<0.000000e+00> : vector<32x128xf32>
    %4 = tpu.matmul %1, %3, %cst {dimension_numbers = #tpu.dot_dimension_numbers<[1], [0], [0], [1], [0, 0, 1, 1], [], []>} : vector<32x128xf32>, vector<128x128xf32>, vector<32x128xf32> -> vector<32x128xf32>
    %c0_4 = arith.constant 0 : index
    %c0_5 = arith.constant 0 : index
    %5 = vector.load %arg6[%c0_4, %c0_5] : memref<1x128xf32, #tpu.memory_space<vmem>>, vector<1x128xf32>
    %6 = vector.broadcast %5 : vector<1x128xf32> to vector<32x128xf32>
    %7 = arith.addf %4, %6 : vector<32x128xf32>
    %cst_6 = arith.constant 2.000000e+01 : f32
    %8 = vector.broadcast %cst_6 : f32 to vector<32x128xf32>
    %9 = arith.cmpf ogt, %7, %8 : vector<32x128xf32>
    %10 = math.exp %7 : vector<32x128xf32>
    %11 = math.log1p %10 : vector<32x128xf32>
    %12 = arith.select %9, %7, %11 : vector<32x128xi1>, vector<32x128xf32>
    %13 = arith.mulf %12, %1 : vector<32x128xf32>
    %c0_7 = arith.constant 0 : index
    %c0_8 = arith.constant 0 : index
    %14 = vector.load %arg4[%c0_7, %c0_8] : memref<128x1024xbf16, #tpu.memory_space<vmem>>, vector<128x1024xbf16>
    %cst_9 = arith.constant dense<0.000000e+00> : vector<32x1024xf32>
    %15 = tpu.matmul %2, %14, %cst_9 {dimension_numbers = #tpu.dot_dimension_numbers<[1], [0], [0], [1], [0, 0, 1, 1], [], []>} : vector<32x128xbf16>, vector<128x1024xbf16>, vector<32x1024xf32> -> vector<32x1024xf32>
    %c0_10 = arith.constant 0 : index
    %c0_11 = arith.constant 0 : index
    %16 = vector.load %arg5[%c0_10, %c0_11] : memref<128x1024xbf16, #tpu.memory_space<vmem>>, vector<128x1024xbf16>
    %cst_12 = arith.constant dense<0.000000e+00> : vector<32x1024xf32>
    %17 = tpu.matmul %2, %16, %cst_12 {dimension_numbers = #tpu.dot_dimension_numbers<[1], [0], [0], [1], [0, 0, 1, 1], [], []>} : vector<32x128xbf16>, vector<128x1024xbf16>, vector<32x1024xf32> -> vector<32x1024xf32>
    %c0_13 = arith.constant 0 : index
    %c0_14 = arith.constant 0 : index
    %18 = vector.load %arg7[%c0_13, %c0_14] : memref<8x128xf32, #tpu.memory_space<vmem>>, vector<1x128xf32>
    %19 = vector.shape_cast %18 : vector<1x128xf32> to vector<128xf32>
    %20 = vector.shape_cast %19 : vector<128xf32> to vector<1x128xf32>
    %21 = vector.broadcast %20 : vector<1x128xf32> to vector<32x128xf32>
    %22 = arith.mulf %12, %21 : vector<32x128xf32>
    %23 = math.exp %22 : vector<32x128xf32>
    %c0_15 = arith.constant 0 : index
    %c0_16 = arith.constant 0 : index
    %c0_17 = arith.constant 0 : index
    %24 = vector.load %arg10[%c0_15, %c0_16, %c0_17] : memref<8x32x128xf32, #tpu.memory_space<vmem>>, vector<1x32x128xf32>
    %25 = vector.shape_cast %24 : vector<1x32x128xf32> to vector<32x128xf32>
    %26 = vector.shape_cast %23 : vector<32x128xf32> to vector<1x32x128xf32>
    tpu.vector_store %arg10[%c0_15, %c0_16, %c0_17], %26 {strides = array<i32>} : memref<8x32x128xf32, #tpu.memory_space<vmem>>, vector<1x32x128xf32>,
    %27 = vector.extract_strided_slice %15 {offsets = [0, 0], sizes = [32, 128], strides = [1, 1]} : vector<32x1024xf32> to vector<32x128xf32>
    %28 = arith.mulf %13, %27 : vector<32x128xf32>
    %c0_18 = arith.constant 0 : index
    %c0_19 = arith.constant 0 : index
    %c0_20 = arith.constant 0 : index
    %29 = vector.load %arg11[%c0_18, %c0_19, %c0_20] : memref<8x32x128xf32, #tpu.memory_space<vmem>>, vector<1x32x128xf32>
    %30 = vector.shape_cast %29 : vector<1x32x128xf32> to vector<32x128xf32>
    %31 = vector.shape_cast %28 : vector<32x128xf32> to vector<1x32x128xf32>
    tpu.vector_store %arg11[%c0_18, %c0_19, %c0_20], %31 {strides = array<i32>} : memref<8x32x128xf32, #tpu.memory_space<vmem>>, vector<1x32x128xf32>,
    %32 = vector.extract_strided_slice %17 {offsets = [0, 0], sizes = [32, 128], strides = [1, 1]} : vector<32x1024xf32> to vector<32x128xf32>
    %c0_21 = arith.constant 0 : index
    %c0_22 = arith.constant 0 : index
    %c0_23 = arith.constant 0 : index
    %33 = vector.load %arg12[%c0_21, %c0_22, %c0_23] : memref<8x32x128xf32, #tpu.memory_space<vmem>>, vector<1x32x128xf32>
    %34 = vector.shape_cast %33 : vector<1x32x128xf32> to vector<32x128xf32>
    %35 = vector.shape_cast %32 : vector<32x128xf32> to vector<1x32x128xf32>
    tpu.vector_store %arg12[%c0_21, %c0_22, %c0_23], %35 {strides = array<i32>} : memref<8x32x128xf32, #tpu.memory_space<vmem>>, vector<1x32x128xf32>,
    %c1 = arith.constant 1 : index
    %c0_24 = arith.constant 0 : index
    %36 = vector.load %arg7[%c1, %c0_24] : memref<8x128xf32, #tpu.memory_space<vmem>>, vector<1x128xf32>
    %37 = vector.shape_cast %36 : vector<1x128xf32> to vector<128xf32>
    %38 = vector.shape_cast %37 : vector<128xf32> to vector<1x128xf32>
    %39 = vector.broadcast %38 : vector<1x128xf32> to vector<32x128xf32>
    %40 = arith.mulf %12, %39 : vector<32x128xf32>
    %41 = math.exp %40 : vector<32x128xf32>
    %c1_25 = arith.constant 1 : index
    %c0_26 = arith.constant 0 : index
    %c0_27 = arith.constant 0 : index
    %42 = vector.load %arg10[%c1_25, %c0_26, %c0_27] : memref<8x32x128xf32, #tpu.memory_space<vmem>>, vector<1x32x128xf32>
    %43 = vector.shape_cast %42 : vector<1x32x128xf32> to vector<32x128xf32>
    %44 = vector.shape_cast %41 : vector<32x128xf32> to vector<1x32x128xf32>
    tpu.vector_store %arg10[%c1_25, %c0_26, %c0_27], %44 {strides = array<i32>} : memref<8x32x128xf32, #tpu.memory_space<vmem>>, vector<1x32x128xf32>,
    %45 = vector.extract_strided_slice %15 {offsets = [0, 128], sizes = [32, 128], strides = [1, 1]} : vector<32x1024xf32> to vector<32x128xf32>
    %46 = arith.mulf %13, %45 : vector<32x128xf32>
    %c1_28 = arith.constant 1 : index
    %c0_29 = arith.constant 0 : index
    %c0_30 = arith.constant 0 : index
    %47 = vector.load %arg11[%c1_28, %c0_29, %c0_30] : memref<8x32x128xf32, #tpu.memory_space<vmem>>, vector<1x32x128xf32>
    %48 = vector.shape_cast %47 : vector<1x32x128xf32> to vector<32x128xf32>
    %49 = vector.shape_cast %46 : vector<32x128xf32> to vector<1x32x128xf32>
    tpu.vector_store %arg11[%c1_28, %c0_29, %c0_30], %49 {strides = array<i32>} : memref<8x32x128xf32, #tpu.memory_space<vmem>>, vector<1x32x128xf32>,
    %50 = vector.extract_strided_slice %17 {offsets = [0, 128], sizes = [32, 128], strides = [1, 1]} : vector<32x1024xf32> to vector<32x128xf32>
    %c1_31 = arith.constant 1 : index
    %c0_32 = arith.constant 0 : index
    %c0_33 = arith.constant 0 : index
    %51 = vector.load %arg12[%c1_31, %c0_32, %c0_33] : memref<8x32x128xf32, #tpu.memory_space<vmem>>, vector<1x32x128xf32>
    %52 = vector.shape_cast %51 : vector<1x32x128xf32> to vector<32x128xf32>
    %53 = vector.shape_cast %50 : vector<32x128xf32> to vector<1x32x128xf32>
    tpu.vector_store %arg12[%c1_31, %c0_32, %c0_33], %53 {strides = array<i32>} : memref<8x32x128xf32, #tpu.memory_space<vmem>>, vector<1x32x128xf32>,
    %c2 = arith.constant 2 : index
    %c0_34 = arith.constant 0 : index
    %54 = vector.load %arg7[%c2, %c0_34] : memref<8x128xf32, #tpu.memory_space<vmem>>, vector<1x128xf32>
    %55 = vector.shape_cast %54 : vector<1x128xf32> to vector<128xf32>
    %56 = vector.shape_cast %55 : vector<128xf32> to vector<1x128xf32>
    %57 = vector.broadcast %56 : vector<1x128xf32> to vector<32x128xf32>
    %58 = arith.mulf %12, %57 : vector<32x128xf32>
    %59 = math.exp %58 : vector<32x128xf32>
    %c2_35 = arith.constant 2 : index
    %c0_36 = arith.constant 0 : index
    %c0_37 = arith.constant 0 : index
    %60 = vector.load %arg10[%c2_35, %c0_36, %c0_37] : memref<8x32x128xf32, #tpu.memory_space<vmem>>, vector<1x32x128xf32>
    %61 = vector.shape_cast %60 : vector<1x32x128xf32> to vector<32x128xf32>
    %62 = vector.shape_cast %59 : vector<32x128xf32> to vector<1x32x128xf32>
    tpu.vector_store %arg10[%c2_35, %c0_36, %c0_37], %62 {strides = array<i32>} : memref<8x32x128xf32, #tpu.memory_space<vmem>>, vector<1x32x128xf32>,
    %63 = vector.extract_strided_slice %15 {offsets = [0, 256], sizes = [32, 128], strides = [1, 1]} : vector<32x1024xf32> to vector<32x128xf32>
    %64 = arith.mulf %13, %63 : vector<32x128xf32>
    %c2_38 = arith.constant 2 : index
    %c0_39 = arith.constant 0 : index
    %c0_40 = arith.constant 0 : index
    %65 = vector.load %arg11[%c2_38, %c0_39, %c0_40] : memref<8x32x128xf32, #tpu.memory_space<vmem>>, vector<1x32x128xf32>
    %66 = vector.shape_cast %65 : vector<1x32x128xf32> to vector<32x128xf32>
    %67 = vector.shape_cast %64 : vector<32x128xf32> to vector<1x32x128xf32>
    tpu.vector_store %arg11[%c2_38, %c0_39, %c0_40], %67 {strides = array<i32>} : memref<8x32x128xf32, #tpu.memory_space<vmem>>, vector<1x32x128xf32>,
    %68 = vector.extract_strided_slice %17 {offsets = [0, 256], sizes = [32, 128], strides = [1, 1]} : vector<32x1024xf32> to vector<32x128xf32>
    %c2_41 = arith.constant 2 : index
    %c0_42 = arith.constant 0 : index
    %c0_43 = arith.constant 0 : index
    %69 = vector.load %arg12[%c2_41, %c0_42, %c0_43] : memref<8x32x128xf32, #tpu.memory_space<vmem>>, vector<1x32x128xf32>
    %70 = vector.shape_cast %69 : vector<1x32x128xf32> to vector<32x128xf32>
    %71 = vector.shape_cast %68 : vector<32x128xf32> to vector<1x32x128xf32>
    tpu.vector_store %arg12[%c2_41, %c0_42, %c0_43], %71 {strides = array<i32>} : memref<8x32x128xf32, #tpu.memory_space<vmem>>, vector<1x32x128xf32>,
    %c3 = arith.constant 3 : index
    %c0_44 = arith.constant 0 : index
    %72 = vector.load %arg7[%c3, %c0_44] : memref<8x128xf32, #tpu.memory_space<vmem>>, vector<1x128xf32>
    %73 = vector.shape_cast %72 : vector<1x128xf32> to vector<128xf32>
    %74 = vector.shape_cast %73 : vector<128xf32> to vector<1x128xf32>
    %75 = vector.broadcast %74 : vector<1x128xf32> to vector<32x128xf32>
    %76 = arith.mulf %12, %75 : vector<32x128xf32>
    %77 = math.exp %76 : vector<32x128xf32>
    %c3_45 = arith.constant 3 : index
    %c0_46 = arith.constant 0 : index
    %c0_47 = arith.constant 0 : index
    %78 = vector.load %arg10[%c3_45, %c0_46, %c0_47] : memref<8x32x128xf32, #tpu.memory_space<vmem>>, vector<1x32x128xf32>
    %79 = vector.shape_cast %78 : vector<1x32x128xf32> to vector<32x128xf32>
    %80 = vector.shape_cast %77 : vector<32x128xf32> to vector<1x32x128xf32>
    tpu.vector_store %arg10[%c3_45, %c0_46, %c0_47], %80 {strides = array<i32>} : memref<8x32x128xf32, #tpu.memory_space<vmem>>, vector<1x32x128xf32>,
    %81 = vector.extract_strided_slice %15 {offsets = [0, 384], sizes = [32, 128], strides = [1, 1]} : vector<32x1024xf32> to vector<32x128xf32>
    %82 = arith.mulf %13, %81 : vector<32x128xf32>
    %c3_48 = arith.constant 3 : index
    %c0_49 = arith.constant 0 : index
    %c0_50 = arith.constant 0 : index
    %83 = vector.load %arg11[%c3_48, %c0_49, %c0_50] : memref<8x32x128xf32, #tpu.memory_space<vmem>>, vector<1x32x128xf32>
    %84 = vector.shape_cast %83 : vector<1x32x128xf32> to vector<32x128xf32>
    %85 = vector.shape_cast %82 : vector<32x128xf32> to vector<1x32x128xf32>
    tpu.vector_store %arg11[%c3_48, %c0_49, %c0_50], %85 {strides = array<i32>} : memref<8x32x128xf32, #tpu.memory_space<vmem>>, vector<1x32x128xf32>,
    %86 = vector.extract_strided_slice %17 {offsets = [0, 384], sizes = [32, 128], strides = [1, 1]} : vector<32x1024xf32> to vector<32x128xf32>
    %c3_51 = arith.constant 3 : index
    %c0_52 = arith.constant 0 : index
    %c0_53 = arith.constant 0 : index
    %87 = vector.load %arg12[%c3_51, %c0_52, %c0_53] : memref<8x32x128xf32, #tpu.memory_space<vmem>>, vector<1x32x128xf32>
    %88 = vector.shape_cast %87 : vector<1x32x128xf32> to vector<32x128xf32>
    %89 = vector.shape_cast %86 : vector<32x128xf32> to vector<1x32x128xf32>
    tpu.vector_store %arg12[%c3_51, %c0_52, %c0_53], %89 {strides = array<i32>} : memref<8x32x128xf32, #tpu.memory_space<vmem>>, vector<1x32x128xf32>,
    %c4 = arith.constant 4 : index
    %c0_54 = arith.constant 0 : index
    %90 = vector.load %arg7[%c4, %c0_54] : memref<8x128xf32, #tpu.memory_space<vmem>>, vector<1x128xf32>
    %91 = vector.shape_cast %90 : vector<1x128xf32> to vector<128xf32>
    %92 = vector.shape_cast %91 : vector<128xf32> to vector<1x128xf32>
    %93 = vector.broadcast %92 : vector<1x128xf32> to vector<32x128xf32>
    %94 = arith.mulf %12, %93 : vector<32x128xf32>
    %95 = math.exp %94 : vector<32x128xf32>
    %c4_55 = arith.constant 4 : index
    %c0_56 = arith.constant 0 : index
    %c0_57 = arith.constant 0 : index
    %96 = vector.load %arg10[%c4_55, %c0_56, %c0_57] : memref<8x32x128xf32, #tpu.memory_space<vmem>>, vector<1x32x128xf32>
    %97 = vector.shape_cast %96 : vector<1x32x128xf32> to vector<32x128xf32>
    %98 = vector.shape_cast %95 : vector<32x128xf32> to vector<1x32x128xf32>
    tpu.vector_store %arg10[%c4_55, %c0_56, %c0_57], %98 {strides = array<i32>} : memref<8x32x128xf32, #tpu.memory_space<vmem>>, vector<1x32x128xf32>,
    %99 = vector.extract_strided_slice %15 {offsets = [0, 512], sizes = [32, 128], strides = [1, 1]} : vector<32x1024xf32> to vector<32x128xf32>
    %100 = arith.mulf %13, %99 : vector<32x128xf32>
    %c4_58 = arith.constant 4 : index
    %c0_59 = arith.constant 0 : index
    %c0_60 = arith.constant 0 : index
    %101 = vector.load %arg11[%c4_58, %c0_59, %c0_60] : memref<8x32x128xf32, #tpu.memory_space<vmem>>, vector<1x32x128xf32>
    %102 = vector.shape_cast %101 : vector<1x32x128xf32> to vector<32x128xf32>
    %103 = vector.shape_cast %100 : vector<32x128xf32> to vector<1x32x128xf32>
    tpu.vector_store %arg11[%c4_58, %c0_59, %c0_60], %103 {strides = array<i32>} : memref<8x32x128xf32, #tpu.memory_space<vmem>>, vector<1x32x128xf32>,
    %104 = vector.extract_strided_slice %17 {offsets = [0, 512], sizes = [32, 128], strides = [1, 1]} : vector<32x1024xf32> to vector<32x128xf32>
    %c4_61 = arith.constant 4 : index
    %c0_62 = arith.constant 0 : index
    %c0_63 = arith.constant 0 : index
    %105 = vector.load %arg12[%c4_61, %c0_62, %c0_63] : memref<8x32x128xf32, #tpu.memory_space<vmem>>, vector<1x32x128xf32>
    %106 = vector.shape_cast %105 : vector<1x32x128xf32> to vector<32x128xf32>
    %107 = vector.shape_cast %104 : vector<32x128xf32> to vector<1x32x128xf32>
    tpu.vector_store %arg12[%c4_61, %c0_62, %c0_63], %107 {strides = array<i32>} : memref<8x32x128xf32, #tpu.memory_space<vmem>>, vector<1x32x128xf32>,
    %c5 = arith.constant 5 : index
    %c0_64 = arith.constant 0 : index
    %108 = vector.load %arg7[%c5, %c0_64] : memref<8x128xf32, #tpu.memory_space<vmem>>, vector<1x128xf32>
    %109 = vector.shape_cast %108 : vector<1x128xf32> to vector<128xf32>
    %110 = vector.shape_cast %109 : vector<128xf32> to vector<1x128xf32>
    %111 = vector.broadcast %110 : vector<1x128xf32> to vector<32x128xf32>
    %112 = arith.mulf %12, %111 : vector<32x128xf32>
    %113 = math.exp %112 : vector<32x128xf32>
    %c5_65 = arith.constant 5 : index
    %c0_66 = arith.constant 0 : index
    %c0_67 = arith.constant 0 : index
    %114 = vector.load %arg10[%c5_65, %c0_66, %c0_67] : memref<8x32x128xf32, #tpu.memory_space<vmem>>, vector<1x32x128xf32>
    %115 = vector.shape_cast %114 : vector<1x32x128xf32> to vector<32x128xf32>
    %116 = vector.shape_cast %113 : vector<32x128xf32> to vector<1x32x128xf32>
    tpu.vector_store %arg10[%c5_65, %c0_66, %c0_67], %116 {strides = array<i32>} : memref<8x32x128xf32, #tpu.memory_space<vmem>>, vector<1x32x128xf32>,
    %117 = vector.extract_strided_slice %15 {offsets = [0, 640], sizes = [32, 128], strides = [1, 1]} : vector<32x1024xf32> to vector<32x128xf32>
    %118 = arith.mulf %13, %117 : vector<32x128xf32>
    %c5_68 = arith.constant 5 : index
    %c0_69 = arith.constant 0 : index
    %c0_70 = arith.constant 0 : index
    %119 = vector.load %arg11[%c5_68, %c0_69, %c0_70] : memref<8x32x128xf32, #tpu.memory_space<vmem>>, vector<1x32x128xf32>
    %120 = vector.shape_cast %119 : vector<1x32x128xf32> to vector<32x128xf32>
    %121 = vector.shape_cast %118 : vector<32x128xf32> to vector<1x32x128xf32>
    tpu.vector_store %arg11[%c5_68, %c0_69, %c0_70], %121 {strides = array<i32>} : memref<8x32x128xf32, #tpu.memory_space<vmem>>, vector<1x32x128xf32>,
    %122 = vector.extract_strided_slice %17 {offsets = [0, 640], sizes = [32, 128], strides = [1, 1]} : vector<32x1024xf32> to vector<32x128xf32>
    %c5_71 = arith.constant 5 : index
    %c0_72 = arith.constant 0 : index
    %c0_73 = arith.constant 0 : index
    %123 = vector.load %arg12[%c5_71, %c0_72, %c0_73] : memref<8x32x128xf32, #tpu.memory_space<vmem>>, vector<1x32x128xf32>
    %124 = vector.shape_cast %123 : vector<1x32x128xf32> to vector<32x128xf32>
    %125 = vector.shape_cast %122 : vector<32x128xf32> to vector<1x32x128xf32>
    tpu.vector_store %arg12[%c5_71, %c0_72, %c0_73], %125 {strides = array<i32>} : memref<8x32x128xf32, #tpu.memory_space<vmem>>, vector<1x32x128xf32>,
    %c6 = arith.constant 6 : index
    %c0_74 = arith.constant 0 : index
    %126 = vector.load %arg7[%c6, %c0_74] : memref<8x128xf32, #tpu.memory_space<vmem>>, vector<1x128xf32>
    %127 = vector.shape_cast %126 : vector<1x128xf32> to vector<128xf32>
    %128 = vector.shape_cast %127 : vector<128xf32> to vector<1x128xf32>
    %129 = vector.broadcast %128 : vector<1x128xf32> to vector<32x128xf32>
    %130 = arith.mulf %12, %129 : vector<32x128xf32>
    %131 = math.exp %130 : vector<32x128xf32>
    %c6_75 = arith.constant 6 : index
    %c0_76 = arith.constant 0 : index
    %c0_77 = arith.constant 0 : index
    %132 = vector.load %arg10[%c6_75, %c0_76, %c0_77] : memref<8x32x128xf32, #tpu.memory_space<vmem>>, vector<1x32x128xf32>
    %133 = vector.shape_cast %132 : vector<1x32x128xf32> to vector<32x128xf32>
    %134 = vector.shape_cast %131 : vector<32x128xf32> to vector<1x32x128xf32>
    tpu.vector_store %arg10[%c6_75, %c0_76, %c0_77], %134 {strides = array<i32>} : memref<8x32x128xf32, #tpu.memory_space<vmem>>, vector<1x32x128xf32>,
    %135 = vector.extract_strided_slice %15 {offsets = [0, 768], sizes = [32, 128], strides = [1, 1]} : vector<32x1024xf32> to vector<32x128xf32>
    %136 = arith.mulf %13, %135 : vector<32x128xf32>
    %c6_78 = arith.constant 6 : index
    %c0_79 = arith.constant 0 : index
    %c0_80 = arith.constant 0 : index
    %137 = vector.load %arg11[%c6_78, %c0_79, %c0_80] : memref<8x32x128xf32, #tpu.memory_space<vmem>>, vector<1x32x128xf32>
    %138 = vector.shape_cast %137 : vector<1x32x128xf32> to vector<32x128xf32>
    %139 = vector.shape_cast %136 : vector<32x128xf32> to vector<1x32x128xf32>
    tpu.vector_store %arg11[%c6_78, %c0_79, %c0_80], %139 {strides = array<i32>} : memref<8x32x128xf32, #tpu.memory_space<vmem>>, vector<1x32x128xf32>,
    %140 = vector.extract_strided_slice %17 {offsets = [0, 768], sizes = [32, 128], strides = [1, 1]} : vector<32x1024xf32> to vector<32x128xf32>
    %c6_81 = arith.constant 6 : index
    %c0_82 = arith.constant 0 : index
    %c0_83 = arith.constant 0 : index
    %141 = vector.load %arg12[%c6_81, %c0_82, %c0_83] : memref<8x32x128xf32, #tpu.memory_space<vmem>>, vector<1x32x128xf32>
    %142 = vector.shape_cast %141 : vector<1x32x128xf32> to vector<32x128xf32>
    %143 = vector.shape_cast %140 : vector<32x128xf32> to vector<1x32x128xf32>
    tpu.vector_store %arg12[%c6_81, %c0_82, %c0_83], %143 {strides = array<i32>} : memref<8x32x128xf32, #tpu.memory_space<vmem>>, vector<1x32x128xf32>,
    %c7 = arith.constant 7 : index
    %c0_84 = arith.constant 0 : index
    %144 = vector.load %arg7[%c7, %c0_84] : memref<8x128xf32, #tpu.memory_space<vmem>>, vector<1x128xf32>
    %145 = vector.shape_cast %144 : vector<1x128xf32> to vector<128xf32>
    %146 = vector.shape_cast %145 : vector<128xf32> to vector<1x128xf32>
    %147 = vector.broadcast %146 : vector<1x128xf32> to vector<32x128xf32>
    %148 = arith.mulf %12, %147 : vector<32x128xf32>
    %149 = math.exp %148 : vector<32x128xf32>
    %c7_85 = arith.constant 7 : index
    %c0_86 = arith.constant 0 : index
    %c0_87 = arith.constant 0 : index
    %150 = vector.load %arg10[%c7_85, %c0_86, %c0_87] : memref<8x32x128xf32, #tpu.memory_space<vmem>>, vector<1x32x128xf32>
    %151 = vector.shape_cast %150 : vector<1x32x128xf32> to vector<32x128xf32>
    %152 = vector.shape_cast %149 : vector<32x128xf32> to vector<1x32x128xf32>
    tpu.vector_store %arg10[%c7_85, %c0_86, %c0_87], %152 {strides = array<i32>} : memref<8x32x128xf32, #tpu.memory_space<vmem>>, vector<1x32x128xf32>,
    %153 = vector.extract_strided_slice %15 {offsets = [0, 896], sizes = [32, 128], strides = [1, 1]} : vector<32x1024xf32> to vector<32x128xf32>
    %154 = arith.mulf %13, %153 : vector<32x128xf32>
    %c7_88 = arith.constant 7 : index
    %c0_89 = arith.constant 0 : index
    %c0_90 = arith.constant 0 : index
    %155 = vector.load %arg11[%c7_88, %c0_89, %c0_90] : memref<8x32x128xf32, #tpu.memory_space<vmem>>, vector<1x32x128xf32>
    %156 = vector.shape_cast %155 : vector<1x32x128xf32> to vector<32x128xf32>
    %157 = vector.shape_cast %154 : vector<32x128xf32> to vector<1x32x128xf32>
    tpu.vector_store %arg11[%c7_88, %c0_89, %c0_90], %157 {strides = array<i32>} : memref<8x32x128xf32, #tpu.memory_space<vmem>>, vector<1x32x128xf32>,
    %158 = vector.extract_strided_slice %17 {offsets = [0, 896], sizes = [32, 128], strides = [1, 1]} : vector<32x1024xf32> to vector<32x128xf32>
    %c7_91 = arith.constant 7 : index
    %c0_92 = arith.constant 0 : index
    %c0_93 = arith.constant 0 : index
    %159 = vector.load %arg12[%c7_91, %c0_92, %c0_93] : memref<8x32x128xf32, #tpu.memory_space<vmem>>, vector<1x32x128xf32>
    %160 = vector.shape_cast %159 : vector<1x32x128xf32> to vector<32x128xf32>
    %161 = vector.shape_cast %158 : vector<32x128xf32> to vector<1x32x128xf32>
    tpu.vector_store %arg12[%c7_91, %c0_92, %c0_93], %161 {strides = array<i32>} : memref<8x32x128xf32, #tpu.memory_space<vmem>>, vector<1x32x128xf32>,
    %c0_i32 = arith.constant 0 : i32
    %162 = arith.cmpi eq, %arg1, %c0_i32 : i32
    %163 = arith.extui %162 : i1 to i32
    %c0_i32_94 = arith.constant 0 : i32
    %164 = arith.cmpi ne, %163, %c0_i32_94 : i32
    scf.if %164 {
      %cst_155 = arith.constant 0.000000e+00 : f32
      %367 = vector.broadcast %cst_155 : f32 to vector<8x128xf32>
      %c0_156 = arith.constant 0 : index
      %c0_157 = arith.constant 0 : index
      %368 = vector.load %arg13[%c0_156, %c0_157] : memref<8x128xf32, #tpu.memory_space<vmem>>, vector<8x128xf32>
      tpu.vector_store %arg13[%c0_156, %c0_157], %367 {strides = array<i32>} : memref<8x128xf32, #tpu.memory_space<vmem>>, vector<8x128xf32>,
    } else {
    }
    %c0_95 = arith.constant 0 : index
    %c0_96 = arith.constant 0 : index
    %165 = vector.load %arg8[%c0_95, %c0_96] : memref<1x128xf32, #tpu.memory_space<vmem>>, vector<1x128xf32>
    %166 = vector.shape_cast %165 : vector<1x128xf32> to vector<128xf32>
    %cst_97 = arith.constant 1.000000e+00 : f32
    %167 = vector.broadcast %cst_97 : f32 to vector<8x1x128xf32>
    %cst_98 = arith.constant 1.000000e+00 : f32
    %168 = vector.broadcast %cst_98 : f32 to vector<8x2x128xf32>
    %cst_99 = arith.constant 1.000000e+00 : f32
    %169 = vector.broadcast %cst_99 : f32 to vector<8x4x128xf32>
    %cst_100 = arith.constant 0.000000e+00 : f32
    %170 = vector.broadcast %cst_100 : f32 to vector<8x1x128xf32>
    %cst_101 = arith.constant 0.000000e+00 : f32
    %171 = vector.broadcast %cst_101 : f32 to vector<8x2x128xf32>
    %cst_102 = arith.constant 0.000000e+00 : f32
    %172 = vector.broadcast %cst_102 : f32 to vector<8x4x128xf32>
    %c0_103 = arith.constant 0 : index
    %c0_104 = arith.constant 0 : index
    %173 = vector.load %arg13[%c0_103, %c0_104] : memref<8x128xf32, #tpu.memory_space<vmem>>, vector<8x128xf32>
    %c0_i32_105 = arith.constant 0 : i32
    %c8_i32 = arith.constant 8 : i32
    %174 = arith.muli %c0_i32_105, %c8_i32 : i32
    %175 = tpu.assume_multiple %174, 8 : i32
    %c0_106 = arith.constant 0 : index
    %176 = arith.index_cast %175 : i32 to index
    %c0_107 = arith.constant 0 : index
    %177 = vector.load %arg10[%c0_106, %176, %c0_107] : memref<8x32x128xf32, #tpu.memory_space<vmem>>, vector<8x8x128xf32>
    %c0_108 = arith.constant 0 : index
    %178 = arith.index_cast %175 : i32 to index
    %c0_109 = arith.constant 0 : index
    %179 = vector.load %arg11[%c0_108, %178, %c0_109] : memref<8x32x128xf32, #tpu.memory_space<vmem>>, vector<8x8x128xf32>
    %c0_110 = arith.constant 0 : index
    %180 = arith.index_cast %175 : i32 to index
    %c0_111 = arith.constant 0 : index
    %181 = vector.load %arg12[%c0_110, %180, %c0_111] : memref<8x32x128xf32, #tpu.memory_space<vmem>>, vector<8x8x128xf32>
    %c0_112 = arith.constant 0 : index
    %182 = arith.index_cast %175 : i32 to index
    %c0_113 = arith.constant 0 : index
    %183 = vector.load %arg2[%c0_112, %182, %c0_113] : memref<1x32x128xf32, #tpu.memory_space<vmem>>, vector<1x8x128xf32>
    %184 = vector.shape_cast %183 : vector<1x8x128xf32> to vector<8x128xf32>
    %185 = vector.extract_strided_slice %177 {offsets = [0, 0, 0], sizes = [8, 7, 128], strides = [1, 1, 1]} : vector<8x8x128xf32> to vector<8x7x128xf32>
    %186 = tpu.concatenate %167, %185 in 1 : vector<8x1x128xf32>, vector<8x7x128xf32> -> vector<8x8x128xf32>
    %187 = vector.extract_strided_slice %179 {offsets = [0, 0, 0], sizes = [8, 7, 128], strides = [1, 1, 1]} : vector<8x8x128xf32> to vector<8x7x128xf32>
    %188 = tpu.concatenate %170, %187 in 1 : vector<8x1x128xf32>, vector<8x7x128xf32> -> vector<8x8x128xf32>
    %189 = arith.mulf %177, %188 : vector<8x8x128xf32>
    %190 = arith.addf %189, %179 : vector<8x8x128xf32>
    %191 = arith.mulf %177, %186 : vector<8x8x128xf32>
    %192 = vector.extract_strided_slice %191 {offsets = [0, 0, 0], sizes = [8, 6, 128], strides = [1, 1, 1]} : vector<8x8x128xf32> to vector<8x6x128xf32>
    %193 = tpu.concatenate %168, %192 in 1 : vector<8x2x128xf32>, vector<8x6x128xf32> -> vector<8x8x128xf32>
    %194 = vector.extract_strided_slice %190 {offsets = [0, 0, 0], sizes = [8, 6, 128], strides = [1, 1, 1]} : vector<8x8x128xf32> to vector<8x6x128xf32>
    %195 = tpu.concatenate %171, %194 in 1 : vector<8x2x128xf32>, vector<8x6x128xf32> -> vector<8x8x128xf32>
    %196 = arith.mulf %191, %195 : vector<8x8x128xf32>
    %197 = arith.addf %196, %190 : vector<8x8x128xf32>
    %198 = arith.mulf %191, %193 : vector<8x8x128xf32>
    %199 = vector.extract_strided_slice %198 {offsets = [0, 0, 0], sizes = [8, 4, 128], strides = [1, 1, 1]} : vector<8x8x128xf32> to vector<8x4x128xf32>
    %200 = tpu.concatenate %169, %199 in 1 : vector<8x4x128xf32>, vector<8x4x128xf32> -> vector<8x8x128xf32>
    %201 = vector.extract_strided_slice %197 {offsets = [0, 0, 0], sizes = [8, 4, 128], strides = [1, 1, 1]} : vector<8x8x128xf32> to vector<8x4x128xf32>
    %202 = tpu.concatenate %172, %201 in 1 : vector<8x4x128xf32>, vector<8x4x128xf32> -> vector<8x8x128xf32>
    %203 = arith.mulf %198, %202 : vector<8x8x128xf32>
    %204 = arith.addf %203, %197 : vector<8x8x128xf32>
    %205 = arith.mulf %198, %200 : vector<8x8x128xf32>
    %206 = vector.shape_cast %173 : vector<8x128xf32> to vector<8x1x128xf32>
    %207 = vector.broadcast %206 : vector<8x1x128xf32> to vector<8x8x128xf32>
    %208 = arith.mulf %205, %207 : vector<8x8x128xf32>
    %209 = arith.addf %208, %204 : vector<8x8x128xf32>
    %210 = arith.mulf %209, %181 : vector<8x8x128xf32>
    %cst_114 = arith.constant dense<0.000000e+00> : vector<8x128xf32>
    %211 = vector.multi_reduction <add>, %210, %cst_114 [0] : vector<8x8x128xf32> to vector<8x128xf32>
    %212 = vector.shape_cast %166 : vector<128xf32> to vector<1x128xf32>
    %213 = vector.broadcast %212 : vector<1x128xf32> to vector<8x128xf32>
    %214 = arith.mulf %184, %213 : vector<8x128xf32>
    %215 = arith.addf %211, %214 : vector<8x128xf32>
    %c0_115 = arith.constant 0 : index
    %216 = arith.index_cast %175 : i32 to index
    %c0_116 = arith.constant 0 : index
    %217 = vector.load %arg9[%c0_115, %216, %c0_116] : memref<1x32x128xf32, #tpu.memory_space<vmem>>, vector<1x8x128xf32>
    %218 = vector.shape_cast %217 : vector<1x8x128xf32> to vector<8x128xf32>
    %219 = vector.shape_cast %215 : vector<8x128xf32> to vector<1x8x128xf32>
    tpu.vector_store %arg9[%c0_115, %216, %c0_116], %219 {strides = array<i32>} : memref<1x32x128xf32, #tpu.memory_space<vmem>>, vector<1x8x128xf32>,
    %220 = vector.extract_strided_slice %209 {offsets = [0, 7, 0], sizes = [8, 1, 128], strides = [1, 1, 1]} : vector<8x8x128xf32> to vector<8x1x128xf32>
    %221 = vector.shape_cast %220 : vector<8x1x128xf32> to vector<8x128xf32>
    %c1_i32 = arith.constant 1 : i32
    %c8_i32_117 = arith.constant 8 : i32
    %222 = arith.muli %c1_i32, %c8_i32_117 : i32
    %223 = tpu.assume_multiple %222, 8 : i32
    %c0_118 = arith.constant 0 : index
    %224 = arith.index_cast %223 : i32 to index
    %c0_119 = arith.constant 0 : index
    %225 = vector.load %arg10[%c0_118, %224, %c0_119] : memref<8x32x128xf32, #tpu.memory_space<vmem>>, vector<8x8x128xf32>
    %c0_120 = arith.constant 0 : index
    %226 = arith.index_cast %223 : i32 to index
    %c0_121 = arith.constant 0 : index
    %227 = vector.load %arg11[%c0_120, %226, %c0_121] : memref<8x32x128xf32, #tpu.memory_space<vmem>>, vector<8x8x128xf32>
    %c0_122 = arith.constant 0 : index
    %228 = arith.index_cast %223 : i32 to index
    %c0_123 = arith.constant 0 : index
    %229 = vector.load %arg12[%c0_122, %228, %c0_123] : memref<8x32x128xf32, #tpu.memory_space<vmem>>, vector<8x8x128xf32>
    %c0_124 = arith.constant 0 : index
    %230 = arith.index_cast %223 : i32 to index
    %c0_125 = arith.constant 0 : index
    %231 = vector.load %arg2[%c0_124, %230, %c0_125] : memref<1x32x128xf32, #tpu.memory_space<vmem>>, vector<1x8x128xf32>
    %232 = vector.shape_cast %231 : vector<1x8x128xf32> to vector<8x128xf32>
    %233 = vector.extract_strided_slice %225 {offsets = [0, 0, 0], sizes = [8, 7, 128], strides = [1, 1, 1]} : vector<8x8x128xf32> to vector<8x7x128xf32>
    %234 = tpu.concatenate %167, %233 in 1 : vector<8x1x128xf32>, vector<8x7x128xf32> -> vector<8x8x128xf32>
    %235 = vector.extract_strided_slice %227 {offsets = [0, 0, 0], sizes = [8, 7, 128], strides = [1, 1, 1]} : vector<8x8x128xf32> to vector<8x7x128xf32>
    %236 = tpu.concatenate %170, %235 in 1 : vector<8x1x128xf32>, vector<8x7x128xf32> -> vector<8x8x128xf32>
    %237 = arith.mulf %225, %236 : vector<8x8x128xf32>
    %238 = arith.addf %237, %227 : vector<8x8x128xf32>
    %239 = arith.mulf %225, %234 : vector<8x8x128xf32>
    %240 = vector.extract_strided_slice %239 {offsets = [0, 0, 0], sizes = [8, 6, 128], strides = [1, 1, 1]} : vector<8x8x128xf32> to vector<8x6x128xf32>
    %241 = tpu.concatenate %168, %240 in 1 : vector<8x2x128xf32>, vector<8x6x128xf32> -> vector<8x8x128xf32>
    %242 = vector.extract_strided_slice %238 {offsets = [0, 0, 0], sizes = [8, 6, 128], strides = [1, 1, 1]} : vector<8x8x128xf32> to vector<8x6x128xf32>
    %243 = tpu.concatenate %171, %242 in 1 : vector<8x2x128xf32>, vector<8x6x128xf32> -> vector<8x8x128xf32>
    %244 = arith.mulf %239, %243 : vector<8x8x128xf32>
    %245 = arith.addf %244, %238 : vector<8x8x128xf32>
    %246 = arith.mulf %239, %241 : vector<8x8x128xf32>
    %247 = vector.extract_strided_slice %246 {offsets = [0, 0, 0], sizes = [8, 4, 128], strides = [1, 1, 1]} : vector<8x8x128xf32> to vector<8x4x128xf32>
    %248 = tpu.concatenate %169, %247 in 1 : vector<8x4x128xf32>, vector<8x4x128xf32> -> vector<8x8x128xf32>
    %249 = vector.extract_strided_slice %245 {offsets = [0, 0, 0], sizes = [8, 4, 128], strides = [1, 1, 1]} : vector<8x8x128xf32> to vector<8x4x128xf32>
    %250 = tpu.concatenate %172, %249 in 1 : vector<8x4x128xf32>, vector<8x4x128xf32> -> vector<8x8x128xf32>
    %251 = arith.mulf %246, %250 : vector<8x8x128xf32>
    %252 = arith.addf %251, %245 : vector<8x8x128xf32>
    %253 = arith.mulf %246, %248 : vector<8x8x128xf32>
    %254 = vector.shape_cast %221 : vector<8x128xf32> to vector<8x1x128xf32>
    %255 = vector.broadcast %254 : vector<8x1x128xf32> to vector<8x8x128xf32>
    %256 = arith.mulf %253, %255 : vector<8x8x128xf32>
    %257 = arith.addf %256, %252 : vector<8x8x128xf32>
    %258 = arith.mulf %257, %229 : vector<8x8x128xf32>
    %cst_126 = arith.constant dense<0.000000e+00> : vector<8x128xf32>
    %259 = vector.multi_reduction <add>, %258, %cst_126 [0] : vector<8x8x128xf32> to vector<8x128xf32>
    %260 = vector.shape_cast %166 : vector<128xf32> to vector<1x128xf32>
    %261 = vector.broadcast %260 : vector<1x128xf32> to vector<8x128xf32>
    %262 = arith.mulf %232, %261 : vector<8x128xf32>
    %263 = arith.addf %259, %262 : vector<8x128xf32>
    %c0_127 = arith.constant 0 : index
    %264 = arith.index_cast %223 : i32 to index
    %c0_128 = arith.constant 0 : index
    %265 = vector.load %arg9[%c0_127, %264, %c0_128] : memref<1x32x128xf32, #tpu.memory_space<vmem>>, vector<1x8x128xf32>
    %266 = vector.shape_cast %265 : vector<1x8x128xf32> to vector<8x128xf32>
    %267 = vector.shape_cast %263 : vector<8x128xf32> to vector<1x8x128xf32>
    tpu.vector_store %arg9[%c0_127, %264, %c0_128], %267 {strides = array<i32>} : memref<1x32x128xf32, #tpu.memory_space<vmem>>, vector<1x8x128xf32>,
    %268 = vector.extract_strided_slice %257 {offsets = [0, 7, 0], sizes = [8, 1, 128], strides = [1, 1, 1]} : vector<8x8x128xf32> to vector<8x1x128xf32>
    %269 = vector.shape_cast %268 : vector<8x1x128xf32> to vector<8x128xf32>
    %c2_i32 = arith.constant 2 : i32
    %c8_i32_129 = arith.constant 8 : i32
    %270 = arith.muli %c2_i32, %c8_i32_129 : i32
    %271 = tpu.assume_multiple %270, 8 : i32
    %c0_130 = arith.constant 0 : index
    %272 = arith.index_cast %271 : i32 to index
    %c0_131 = arith.constant 0 : index
    %273 = vector.load %arg10[%c0_130, %272, %c0_131] : memref<8x32x128xf32, #tpu.memory_space<vmem>>, vector<8x8x128xf32>
    %c0_132 = arith.constant 0 : index
    %274 = arith.index_cast %271 : i32 to index
    %c0_133 = arith.constant 0 : index
    %275 = vector.load %arg11[%c0_132, %274, %c0_133] : memref<8x32x128xf32, #tpu.memory_space<vmem>>, vector<8x8x128xf32>
    %c0_134 = arith.constant 0 : index
    %276 = arith.index_cast %271 : i32 to index
    %c0_135 = arith.constant 0 : index
    %277 = vector.load %arg12[%c0_134, %276, %c0_135] : memref<8x32x128xf32, #tpu.memory_space<vmem>>, vector<8x8x128xf32>
    %c0_136 = arith.constant 0 : index
    %278 = arith.index_cast %271 : i32 to index
    %c0_137 = arith.constant 0 : index
    %279 = vector.load %arg2[%c0_136, %278, %c0_137] : memref<1x32x128xf32, #tpu.memory_space<vmem>>, vector<1x8x128xf32>
    %280 = vector.shape_cast %279 : vector<1x8x128xf32> to vector<8x128xf32>
    %281 = vector.extract_strided_slice %273 {offsets = [0, 0, 0], sizes = [8, 7, 128], strides = [1, 1, 1]} : vector<8x8x128xf32> to vector<8x7x128xf32>
    %282 = tpu.concatenate %167, %281 in 1 : vector<8x1x128xf32>, vector<8x7x128xf32> -> vector<8x8x128xf32>
    %283 = vector.extract_strided_slice %275 {offsets = [0, 0, 0], sizes = [8, 7, 128], strides = [1, 1, 1]} : vector<8x8x128xf32> to vector<8x7x128xf32>
    %284 = tpu.concatenate %170, %283 in 1 : vector<8x1x128xf32>, vector<8x7x128xf32> -> vector<8x8x128xf32>
    %285 = arith.mulf %273, %284 : vector<8x8x128xf32>
    %286 = arith.addf %285, %275 : vector<8x8x128xf32>
    %287 = arith.mulf %273, %282 : vector<8x8x128xf32>
    %288 = vector.extract_strided_slice %287 {offsets = [0, 0, 0], sizes = [8, 6, 128], strides = [1, 1, 1]} : vector<8x8x128xf32> to vector<8x6x128xf32>
    %289 = tpu.concatenate %168, %288 in 1 : vector<8x2x128xf32>, vector<8x6x128xf32> -> vector<8x8x128xf32>
    %290 = vector.extract_strided_slice %286 {offsets = [0, 0, 0], sizes = [8, 6, 128], strides = [1, 1, 1]} : vector<8x8x128xf32> to vector<8x6x128xf32>
    %291 = tpu.concatenate %171, %290 in 1 : vector<8x2x128xf32>, vector<8x6x128xf32> -> vector<8x8x128xf32>
    %292 = arith.mulf %287, %291 : vector<8x8x128xf32>
    %293 = arith.addf %292, %286 : vector<8x8x128xf32>
    %294 = arith.mulf %287, %289 : vector<8x8x128xf32>
    %295 = vector.extract_strided_slice %294 {offsets = [0, 0, 0], sizes = [8, 4, 128], strides = [1, 1, 1]} : vector<8x8x128xf32> to vector<8x4x128xf32>
    %296 = tpu.concatenate %169, %295 in 1 : vector<8x4x128xf32>, vector<8x4x128xf32> -> vector<8x8x128xf32>
    %297 = vector.extract_strided_slice %293 {offsets = [0, 0, 0], sizes = [8, 4, 128], strides = [1, 1, 1]} : vector<8x8x128xf32> to vector<8x4x128xf32>
    %298 = tpu.concatenate %172, %297 in 1 : vector<8x4x128xf32>, vector<8x4x128xf32> -> vector<8x8x128xf32>
    %299 = arith.mulf %294, %298 : vector<8x8x128xf32>
    %300 = arith.addf %299, %293 : vector<8x8x128xf32>
    %301 = arith.mulf %294, %296 : vector<8x8x128xf32>
    %302 = vector.shape_cast %269 : vector<8x128xf32> to vector<8x1x128xf32>
    %303 = vector.broadcast %302 : vector<8x1x128xf32> to vector<8x8x128xf32>
    %304 = arith.mulf %301, %303 : vector<8x8x128xf32>
    %305 = arith.addf %304, %300 : vector<8x8x128xf32>
    %306 = arith.mulf %305, %277 : vector<8x8x128xf32>
    %cst_138 = arith.constant dense<0.000000e+00> : vector<8x128xf32>
    %307 = vector.multi_reduction <add>, %306, %cst_138 [0] : vector<8x8x128xf32> to vector<8x128xf32>
    %308 = vector.shape_cast %166 : vector<128xf32> to vector<1x128xf32>
    %309 = vector.broadcast %308 : vector<1x128xf32> to vector<8x128xf32>
    %310 = arith.mulf %280, %309 : vector<8x128xf32>
    %311 = arith.addf %307, %310 : vector<8x128xf32>
    %c0_139 = arith.constant 0 : index
    %312 = arith.index_cast %271 : i32 to index
    %c0_140 = arith.constant 0 : index
    %313 = vector.load %arg9[%c0_139, %312, %c0_140] : memref<1x32x128xf32, #tpu.memory_space<vmem>>, vector<1x8x128xf32>
    %314 = vector.shape_cast %313 : vector<1x8x128xf32> to vector<8x128xf32>
    %315 = vector.shape_cast %311 : vector<8x128xf32> to vector<1x8x128xf32>
    tpu.vector_store %arg9[%c0_139, %312, %c0_140], %315 {strides = array<i32>} : memref<1x32x128xf32, #tpu.memory_space<vmem>>, vector<1x8x128xf32>,
    %316 = vector.extract_strided_slice %305 {offsets = [0, 7, 0], sizes = [8, 1, 128], strides = [1, 1, 1]} : vector<8x8x128xf32> to vector<8x1x128xf32>
    %317 = vector.shape_cast %316 : vector<8x1x128xf32> to vector<8x128xf32>
    %c3_i32 = arith.constant 3 : i32
    %c8_i32_141 = arith.constant 8 : i32
    %318 = arith.muli %c3_i32, %c8_i32_141 : i32
    %319 = tpu.assume_multiple %318, 8 : i32
    %c0_142 = arith.constant 0 : index
    %320 = arith.index_cast %319 : i32 to index
    %c0_143 = arith.constant 0 : index
    %321 = vector.load %arg10[%c0_142, %320, %c0_143] : memref<8x32x128xf32, #tpu.memory_space<vmem>>, vector<8x8x128xf32>
    %c0_144 = arith.constant 0 : index
    %322 = arith.index_cast %319 : i32 to index
    %c0_145 = arith.constant 0 : index
    %323 = vector.load %arg11[%c0_144, %322, %c0_145] : memref<8x32x128xf32, #tpu.memory_space<vmem>>, vector<8x8x128xf32>
    %c0_146 = arith.constant 0 : index
    %324 = arith.index_cast %319 : i32 to index
    %c0_147 = arith.constant 0 : index
    %325 = vector.load %arg12[%c0_146, %324, %c0_147] : memref<8x32x128xf32, #tpu.memory_space<vmem>>, vector<8x8x128xf32>
    %c0_148 = arith.constant 0 : index
    %326 = arith.index_cast %319 : i32 to index
    %c0_149 = arith.constant 0 : index
    %327 = vector.load %arg2[%c0_148, %326, %c0_149] : memref<1x32x128xf32, #tpu.memory_space<vmem>>, vector<1x8x128xf32>
    %328 = vector.shape_cast %327 : vector<1x8x128xf32> to vector<8x128xf32>
    %329 = vector.extract_strided_slice %321 {offsets = [0, 0, 0], sizes = [8, 7, 128], strides = [1, 1, 1]} : vector<8x8x128xf32> to vector<8x7x128xf32>
    %330 = tpu.concatenate %167, %329 in 1 : vector<8x1x128xf32>, vector<8x7x128xf32> -> vector<8x8x128xf32>
    %331 = vector.extract_strided_slice %323 {offsets = [0, 0, 0], sizes = [8, 7, 128], strides = [1, 1, 1]} : vector<8x8x128xf32> to vector<8x7x128xf32>
    %332 = tpu.concatenate %170, %331 in 1 : vector<8x1x128xf32>, vector<8x7x128xf32> -> vector<8x8x128xf32>
    %333 = arith.mulf %321, %332 : vector<8x8x128xf32>
    %334 = arith.addf %333, %323 : vector<8x8x128xf32>
    %335 = arith.mulf %321, %330 : vector<8x8x128xf32>
    %336 = vector.extract_strided_slice %335 {offsets = [0, 0, 0], sizes = [8, 6, 128], strides = [1, 1, 1]} : vector<8x8x128xf32> to vector<8x6x128xf32>
    %337 = tpu.concatenate %168, %336 in 1 : vector<8x2x128xf32>, vector<8x6x128xf32> -> vector<8x8x128xf32>
    %338 = vector.extract_strided_slice %334 {offsets = [0, 0, 0], sizes = [8, 6, 128], strides = [1, 1, 1]} : vector<8x8x128xf32> to vector<8x6x128xf32>
    %339 = tpu.concatenate %171, %338 in 1 : vector<8x2x128xf32>, vector<8x6x128xf32> -> vector<8x8x128xf32>
    %340 = arith.mulf %335, %339 : vector<8x8x128xf32>
    %341 = arith.addf %340, %334 : vector<8x8x128xf32>
    %342 = arith.mulf %335, %337 : vector<8x8x128xf32>
    %343 = vector.extract_strided_slice %342 {offsets = [0, 0, 0], sizes = [8, 4, 128], strides = [1, 1, 1]} : vector<8x8x128xf32> to vector<8x4x128xf32>
    %344 = tpu.concatenate %169, %343 in 1 : vector<8x4x128xf32>, vector<8x4x128xf32> -> vector<8x8x128xf32>
    %345 = vector.extract_strided_slice %341 {offsets = [0, 0, 0], sizes = [8, 4, 128], strides = [1, 1, 1]} : vector<8x8x128xf32> to vector<8x4x128xf32>
    %346 = tpu.concatenate %172, %345 in 1 : vector<8x4x128xf32>, vector<8x4x128xf32> -> vector<8x8x128xf32>
    %347 = arith.mulf %342, %346 : vector<8x8x128xf32>
    %348 = arith.addf %347, %341 : vector<8x8x128xf32>
    %349 = arith.mulf %342, %344 : vector<8x8x128xf32>
    %350 = vector.shape_cast %317 : vector<8x128xf32> to vector<8x1x128xf32>
    %351 = vector.broadcast %350 : vector<8x1x128xf32> to vector<8x8x128xf32>
    %352 = arith.mulf %349, %351 : vector<8x8x128xf32>
    %353 = arith.addf %352, %348 : vector<8x8x128xf32>
    %354 = arith.mulf %353, %325 : vector<8x8x128xf32>
    %cst_150 = arith.constant dense<0.000000e+00> : vector<8x128xf32>
    %355 = vector.multi_reduction <add>, %354, %cst_150 [0] : vector<8x8x128xf32> to vector<8x128xf32>
    %356 = vector.shape_cast %166 : vector<128xf32> to vector<1x128xf32>
    %357 = vector.broadcast %356 : vector<1x128xf32> to vector<8x128xf32>
    %358 = arith.mulf %328, %357 : vector<8x128xf32>
    %359 = arith.addf %355, %358 : vector<8x128xf32>
    %c0_151 = arith.constant 0 : index
    %360 = arith.index_cast %319 : i32 to index
    %c0_152 = arith.constant 0 : index
    %361 = vector.load %arg9[%c0_151, %360, %c0_152] : memref<1x32x128xf32, #tpu.memory_space<vmem>>, vector<1x8x128xf32>
    %362 = vector.shape_cast %361 : vector<1x8x128xf32> to vector<8x128xf32>
    %363 = vector.shape_cast %359 : vector<8x128xf32> to vector<1x8x128xf32>
    tpu.vector_store %arg9[%c0_151, %360, %c0_152], %363 {strides = array<i32>} : memref<1x32x128xf32, #tpu.memory_space<vmem>>, vector<1x8x128xf32>,
    %364 = vector.extract_strided_slice %353 {offsets = [0, 7, 0], sizes = [8, 1, 128], strides = [1, 1, 1]} : vector<8x8x128xf32> to vector<8x1x128xf32>
    %365 = vector.shape_cast %364 : vector<8x1x128xf32> to vector<8x128xf32>
    %c4_i32 = arith.constant 4 : i32
    %c0_153 = arith.constant 0 : index
    %c0_154 = arith.constant 0 : index
    %366 = vector.load %arg13[%c0_153, %c0_154] : memref<8x128xf32, #tpu.memory_space<vmem>>, vector<8x128xf32>
    tpu.vector_store %arg13[%c0_153, %c0_154], %365 {strides = array<i32>} : memref<8x128xf32, #tpu.memory_space<vmem>>, vector<8x128xf32>,
    return
  }
  func.func @transform_0(%arg0: i32, %arg1: i32) -> (i32, i32, i32) {
    %c0_i32 = arith.constant 0 : i32
    %c0_i32_0 = arith.constant 0 : i32
    return %arg0, %arg1, %c0_i32 : i32, i32, i32
  }
  func.func @transform_1(%arg0: i32, %arg1: i32) -> (i32, i32) {
    %c0_i32 = arith.constant 0 : i32
    %c0_i32_0 = arith.constant 0 : i32
    %c0_i32_1 = arith.constant 0 : i32
    return %c0_i32, %c0_i32_0 : i32, i32
  }
  func.func @transform_2(%arg0: i32, %arg1: i32) -> (i32, i32) {
    %c0_i32 = arith.constant 0 : i32
    %c0_i32_0 = arith.constant 0 : i32
    %c0_i32_1 = arith.constant 0 : i32
    return %c0_i32, %c0_i32_0 : i32, i32
  }
  func.func @transform_3(%arg0: i32, %arg1: i32) -> (i32, i32) {
    %c0_i32 = arith.constant 0 : i32
    %c0_i32_0 = arith.constant 0 : i32
    %c0_i32_1 = arith.constant 0 : i32
    return %c0_i32, %c0_i32_0 : i32, i32
  }
  func.func @transform_4(%arg0: i32, %arg1: i32) -> (i32, i32) {
    %c0_i32 = arith.constant 0 : i32
    %c0_i32_0 = arith.constant 0 : i32
    %c0_i32_1 = arith.constant 0 : i32
    return %c0_i32, %c0_i32_0 : i32, i32
  }
  func.func @transform_5(%arg0: i32, %arg1: i32) -> (i32, i32) {
    %c0_i32 = arith.constant 0 : i32
    %c0_i32_0 = arith.constant 0 : i32
    %c0_i32_1 = arith.constant 0 : i32
    return %c0_i32, %c0_i32_0 : i32, i32
  }
  func.func @transform_6(%arg0: i32, %arg1: i32) -> (i32, i32) {
    %c0_i32 = arith.constant 0 : i32
    %c0_i32_0 = arith.constant 0 : i32
    %c0_i32_1 = arith.constant 0 : i32
    return %c0_i32, %c0_i32_0 : i32, i32
  }
  func.func @transform_7(%arg0: i32, %arg1: i32) -> (i32, i32, i32) {
    %c0_i32 = arith.constant 0 : i32
    %c0_i32_0 = arith.constant 0 : i32
    return %arg0, %arg1, %c0_i32 : i32, i32, i32
  }
}

</mosaic_0001>

<bundles_post_ra>
// kernel: split.0
= control target key start
LH: loop header
LB: loop body
LE: loop exit
PB: predicated region body
PF: predicated region fallthrough
CT: control target
= control target key end

     0   :  { %s216_s0 = inlined_call_operand.vmem [shape: f32[2,64,8,8], index: 0, kind: input, shape index: {}]   ;;  %s217_s1 = inlined_call_operand.vmem [shape: bf16[2,32,8,8], index: 1, kind: output, shape index: {}]  }
   0x1   :  { %v2_v0 = vld [vmem:[%s216_s0] sm:$0xff]  ;;  %v82_v2 = vld [vmem:[%s216_s0 + $0x8] sm:$0xff]  ;;  %v86_v7 = vld [vmem:[%s216_s0 + $0x10] sm:$0xff] }
   0x2   :  { %v80_v1 = vld [vmem:[%s216_s0 + $0x40] sm:$0xff]  ;;  %v3_v3 = vpack.c.bf16 0.0, %v2_v0  ;;  %v13_v5 = vpack.c.bf16 0.0, %v82_v2  ;;  %v84_v6 = vld [vmem:[%s216_s0 + $0x48] sm:$0xff]  ;;  %v88_v8 = vld [vmem:[%s216_s0 + $0x50] sm:$0xff]  ;;  %v23_v11 = vpack.c.bf16 0.0, %v86_v7 }
   0x3   :  { %v8_v4 = vpack.c.bf16 0.0, %v80_v1  ;;  %v18_v9 = vpack.c.bf16 0.0, %v84_v6  ;;  %v90_v10 = vld [vmem:[%s216_s0 + $0x18] sm:$0xff]  ;;  %v28_v13 = vpack.c.bf16 0.0, %v88_v8  ;;  %v94_v14 = vld [vmem:[%s216_s0 + $0x20] sm:$0xff]  ;;  %v98_v18 = vld [vmem:[%s216_s0 + $0x28] sm:$0xff] }
   0x4   :  { %4 = vst [vmem:[%s217_s1] sm:$0xf] %v3_v3  ;;  %v92_v12 = vld [vmem:[%s216_s0 + $0x58] sm:$0xff]  ;;  %v33_v15 = vpack.c.bf16 0.0, %v90_v10  ;;  %v96_v16 = vld [vmem:[%s216_s0 + $0x60] sm:$0xff]  ;;  %v43_v19 = vpack.c.bf16 0.0, %v94_v14  ;;  %v100_v20 = vld [vmem:[%s216_s0 + $0x68] sm:$0xff] }
   0x5   :  { %81 = vst [vmem:[%s217_s1 + $0x20] sm:$0xf] %v8_v4  ;;  %v38_v17 = vpack.c.bf16 0.0, %v92_v12  ;;  %v48_v21 = vpack.c.bf16 0.0, %v96_v16  ;;  %v102_v22 = vld [vmem:[%s216_s0 + $0x30] sm:$0xff]  ;;  %v53_v23 = vpack.c.bf16 0.0, %v98_v18 }
   0x6   :  { %83 = vst [vmem:[%s217_s1 + $0x4] sm:$0xf] %v13_v5  ;;  %v104_v24 = vld [vmem:[%s216_s0 + $0x70] sm:$0xff]  ;;  %v58_v25 = vpack.c.bf16 0.0, %v100_v20  ;;  %v106_v26 = vld [vmem:[%s216_s0 + $0x38] sm:$0xff]  ;;  %v63_v27 = vpack.c.bf16 0.0, %v102_v22 }
   0x7   :  { %85 = vst [vmem:[%s217_s1 + $0x24] sm:$0xf] %v18_v9  ;;  %v108_v28 = vld [vmem:[%s216_s0 + $0x78] sm:$0xff]  ;;  %v68_v29 = vpack.c.bf16 0.0, %v104_v24  ;;  %v73_v30 = vpack.c.bf16 0.0, %v106_v26 }
   0x8   :  { %87 = vst [vmem:[%s217_s1 + $0x8] sm:$0xf] %v23_v11  ;;  %v78_v31 = vpack.c.bf16 0.0, %v108_v28 }
   0x9   :  { %89 = vst [vmem:[%s217_s1 + $0x28] sm:$0xf] %v28_v13 }
   0xa   :  { %91 = vst [vmem:[%s217_s1 + $0xc] sm:$0xf] %v33_v15 }
   0xb   :  { %93 = vst [vmem:[%s217_s1 + $0x2c] sm:$0xf] %v38_v17 }
   0xc   :  { %95 = vst [vmem:[%s217_s1 + $0x10] sm:$0xf] %v43_v19 }
   0xd   :  { %97 = vst [vmem:[%s217_s1 + $0x30] sm:$0xf] %v48_v21 }
   0xe   :  { %99 = vst [vmem:[%s217_s1 + $0x14] sm:$0xf] %v53_v23 }
   0xf   :  { %101 = vst [vmem:[%s217_s1 + $0x34] sm:$0xf] %v58_v25 }
  0x10   :  { %103 = vst [vmem:[%s217_s1 + $0x18] sm:$0xf] %v63_v27 }
  0x11   :  { %105 = vst [vmem:[%s217_s1 + $0x38] sm:$0xf] %v68_v29 }
  0x12   :  { %107 = vst [vmem:[%s217_s1 + $0x1c] sm:$0xf] %v73_v30 }
  0x13   :  { %109 = vst [vmem:[%s217_s1 + $0x3c] sm:$0xf] %v78_v31 }

// kernel: ss2d_forward.1
= control target key start
LH: loop header
LB: loop body
LE: loop exit
PB: predicated region body
PF: predicated region fallthrough
CT: control target
= control target key end

     0   :  { %s4136_s24 = smov 0   ;;  %s4138_s25 = smov 0   ;;  %s5768_s0 = inlined_call_operand.vmem [shape: f32[2,64,128], index: 0, kind: input, shape index: {}]   ;;  %s5769_s1 = inlined_call_operand.vmem [shape: f32[128,128], index: 1, kind: input, shape index: {}]   ;;  %s5770_s2 = inlined_call_operand.vmem [shape: bf16[128,1024], index: 2, kind: input, shape index: {}]   ;;  %s5771_s3 = inlined_call_operand.vmem [shape: bf16[128,1024], index: 3, kind: input, shape index: {}]   ;;  %s5772_s4 = inlined_call_operand.vmem [shape: f32[1,128], index: 4, kind: input, shape index: {}]   ;;  %s5773_s5 = inlined_call_operand.vmem [shape: f32[8,128], index: 5, kind: input, shape index: {}]   ;;  %s5774_s6 = inlined_call_operand.vmem [shape: f32[1,128], index: 6, kind: input, shape index: {}]   ;;  %s5775_s7 = inlined_call_operand.vmem [shape: f32[2,64,128], index: 7, kind: output, shape index: {}]  }
   0x1   :  { %s4140_s26 = smov 0   ;;  %s4142_s27 = smov 0  }
   0x2   :  { %s4144_s28 = smov 0  }
   0x3 LB: > { %s26_s29 = sadd.s32 1, %s4085_s26  ;;  %s29_s30 = sadd.s32 1, %s4089_s27  ;;  %s4093_s28 = sphi %s4144_s28, %s17_s28   ;;  %s4089_s27 = sphi %s4142_s27, %s5781_s27   ;;  %s4085_s26 = sphi %s4140_s26, %s5780_s26   ;;  %s4081_s25 = sphi %s4138_s25, %s5779_s25   ;;  %s4077_s24 = sphi %s4136_s24, %s5778_s24  }
   0x4   : > { %p27_p0 = scmp.ge.s32.totalorder %s26_s29, 2  ;;  %p3255_p1 = scmp.ge.s32.totalorder %s4093_s28, 1 }
   0x5   : > { %p258_p2 = scmp.lt.s32.totalorder %s4093_s28, 5 }
   0x6   : > { %s5783_s29 = smov (%p27_p0, %s26_s29), 0  ;;  %s5785_s30 = smov (!%p27_p0, %s29_s30), %s4089_s27 }
   0x7   : > { %p259_p3 = pnand %p3255_p1, %p258_p2  ;;  %p31_p4 = scmp.ge.s32.totalorder %s5785_s30, 2 }
   0x8   : > { %s3256_s14 = sshll.u32 (!%p259_p3), %s4077_s24, 2  ;;  %p299_p5 = scmp.lt.s32.totalorder (!%p259_p3), %s4081_s25, 1 }
   0x9   : > { %s5787_s30 = smov (%p31_p4, %s5785_s30), 0  ;;  %262 = sbr.rel (%p259_p3) target bundleno = 543 (0x21f), region = 48 }
   0xa   : > { %p301_p6 = scmp.lt.s32.totalorder (!%p259_p3), %s3256_s14, 7  ;;  %p3774_p7 = scmp.ne.s32.totalorder (!%p259_p3), %s4077_s24, 0 }
   0xe   : > { %v339_v0 = vld [vmem:[%s5769_s1 + $0x78] sm:$0xff]  ;;  %v338_v1 = vld [vmem:[%s5769_s1 + $0x70] sm:$0xff]  ;;  %v3488_v2 = vld [vmem:[%s5770_s2 + $0x1c0] sm:$0xf]  ;;  %s5789_s25 = smov (!%p299_p5, %s4081_s25), 1  ;;  %s5791_s14 = smov (!%p301_p6, %s3256_s14), 7 }
   0xf   : > { %344 = vmatpush.msra.mxu0 %v339_v0  ;;  %v3843_v3 = vld [vmem:[%s5770_s2 + $0x1dc] sm:$0xf0]  ;;  %v3839_v4 = vld [vmem:[%s5770_s2 + $0x1c4] sm:$0xf]  ;;  %v3496_v8 = vld [vmem:[%s5770_s2 + $0x1c8] sm:$0xf] }
  0x10   : > { %v3490_v5 = vld [vmem:[%s5770_s2 + $0x1e0] sm:$0xf0]  ;;  %v3489_v6 = vor.u32 %v3843_v3, %v3488_v2  ;;  %v3844_v9 = vld [vmem:[%s5770_s2 + $0x1e4] sm:$0xf0]  ;;  %v3456_v13 = vld [vmem:[%s5770_s2 + $0x180] sm:$0xf] }
  0x11   : > { %v3493_v7 = vor.u32 %v3839_v4, %v3490_v5  ;;  %v337_v10 = vld [vmem:[%s5769_s1 + $0x68] sm:$0xff]  ;;  %345 = vmatpush.msra.mxu0 %v338_v1  ;;  %v3497_v11 = vor.u32 %v3844_v9, %v3496_v8  ;;  %v336_v12 = vld [vmem:[%s5769_s1 + $0x60] sm:$0xff]  ;;  %v335_v21 = vld [vmem:[%s5769_s1 + $0x58] sm:$0xff]  ;;  %s3257_s13 = sshll.u32 %s5789_s25, 3 }
  0x12   : > { %v3835_v14 = vld [vmem:[%s5770_s2 + $0x19c] sm:$0xf0]  ;;  %813 = vmatpush.bf16.msra.mxu1 %v3489_v6  ;;  %v3831_v16 = vld [vmem:[%s5770_s2 + $0x184] sm:$0xf]  ;;  %v3464_v18 = vld [vmem:[%s5770_s2 + $0x188] sm:$0xf]  ;;  %s4256_s21 = sadd.s32 %s3257_s13, %s5791_s14 }
  0x13   : > { %832 = vmatpush.bf16.msra.mxu2 %v3493_v7  ;;  %v3457_v15 = vor.u32 %v3835_v14, %v3456_v13  ;;  %v3458_v17 = vld [vmem:[%s5770_s2 + $0x1a0] sm:$0xf0]  ;;  %851 = vmatpush.bf16.msra.mxu3 %v3497_v11  ;;  %v3836_v20 = vld [vmem:[%s5770_s2 + $0x1a4] sm:$0xf0]  ;;  %v3424_v23 = vld [vmem:[%s5770_s2 + $0x140] sm:$0xf] }
  0x14   : > { %346 = vmatpush.msra.mxu0 %v337_v10  ;;  %v3461_v19 = vor.u32 %v3831_v16, %v3458_v17  ;;  %v3465_v22 = vor.u32 %v3836_v20, %v3464_v18  ;;  %v3827_v24 = vld [vmem:[%s5770_s2 + $0x15c] sm:$0xf0]  ;;  %v3823_v25 = vld [vmem:[%s5770_s2 + $0x144] sm:$0xf]  ;;  %v3432_v27 = vld [vmem:[%s5770_s2 + $0x148] sm:$0xf] }
  0x15   : > { %v3426_v26 = vld [vmem:[%s5770_s2 + $0x160] sm:$0xf0]  ;;  %v3828_v28 = vld [vmem:[%s5770_s2 + $0x164] sm:$0xf0]  ;;  %v334_v29 = vld [vmem:[%s5769_s1 + $0x50] sm:$0xff]  ;;  %v3425_v30 = vor.u32 %v3827_v24, %v3424_v23  ;;  %s3258_s11 = sshll.u32 %s4256_s21, 3 }
  0x16   : > { %347 = vmatpush.msra.mxu0 %v336_v12  ;;  %814 = vmatpush.bf16.msra.mxu1 %v3457_v15  ;;  %v3429_v31 = vor.u32 %v3823_v25, %v3426_v26  ;;  %v3392_v32 = vld [vmem:[%s5770_s2 + $0x100] sm:$0xf]  ;;  %v3433_v33 = vor.u32 %v3828_v28, %v3432_v27  ;;  %v3815_v35 = vld [vmem:[%s5770_s2 + $0x104] sm:$0xf]  ;;  %v333_v37 = vld [vmem:[%s5769_s1 + $0x48] sm:$0xff]  ;;  %s4273_s13 = scalar_lea.vmem %s5775_s7, %s3258_s11  ;;  %s4370_s22 = scalar_lea.vmem %s5768_s0, %s3258_s11 }
  0x17   : > { %833 = vmatpush.bf16.msra.mxu2 %v3461_v19  ;;  %852 = vmatpush.bf16.msra.mxu3 %v3465_v22  ;;  %v3819_v34 = vld [vmem:[%s5770_s2 + $0x11c] sm:$0xf0]  ;;  %v3394_v36 = vld [vmem:[%s5770_s2 + $0x120] sm:$0xf0]  ;;  %v3400_v38 = vld [vmem:[%s5770_s2 + $0x108] sm:$0xf] }
  0x18   : > { %348 = vmatpush.msra.mxu0 %v335_v21  ;;  %v3820_v39 = vld [vmem:[%s5770_s2 + $0x124] sm:$0xf0]  ;;  %v332_v40 = vld [vmem:[%s5769_s1 + $0x40] sm:$0xff]  ;;  %v3393_v41 = vor.u32 %v3819_v34, %v3392_v32  ;;  %v3397_v42 = vor.u32 %v3815_v35, %v3394_v36  ;;  %v331_v48 = vld [vmem:[%s5769_s1 + $0x38] sm:$0xff] }
  0x19   : > { %v3360_v43 = vld [vmem:[%s5770_s2 + $0xc0] sm:$0xf]  ;;  %v3401_v44 = vor.u32 %v3820_v39, %v3400_v38  ;;  %v3807_v46 = vld [vmem:[%s5770_s2 + $0xc4] sm:$0xf]  ;;  %v3368_v49 = vld [vmem:[%s5770_s2 + $0xc8] sm:$0xf] }
  0x1a   : > { %349 = vmatpush.msra.mxu0 %v334_v29  ;;  %815 = vmatpush.bf16.msra.mxu1 %v3425_v30  ;;  %v3811_v45 = vld [vmem:[%s5770_s2 + $0xdc] sm:$0xf0]  ;;  %v3362_v47 = vld [vmem:[%s5770_s2 + $0xe0] sm:$0xf0]  ;;  %v3812_v50 = vld [vmem:[%s5770_s2 + $0xe4] sm:$0xf0] }
  0x1b   : > { %834 = vmatpush.bf16.msra.mxu2 %v3429_v31  ;;  %853 = vmatpush.bf16.msra.mxu3 %v3433_v33  ;;  %v330_v51 = vld [vmem:[%s5769_s1 + $0x30] sm:$0xff]  ;;  %v3361_v52 = vor.u32 %v3811_v45, %v3360_v43  ;;  %v3365_v53 = vor.u32 %v3807_v46, %v3362_v47  ;;  %v3328_v54 = vld [vmem:[%s5770_s2 + $0x80] sm:$0xf]  ;;  %v3369_v55 = vor.u32 %v3812_v50, %v3368_v49  ;;  %v3799_v57 = vld [vmem:[%s5770_s2 + $0x84] sm:$0xf] }
  0x1c   : > { %350 = vmatpush.msra.mxu0 %v333_v37  ;;  %v3803_v56 = vld [vmem:[%s5770_s2 + $0x9c] sm:$0xf0]  ;;  %v3330_v58 = vld [vmem:[%s5770_s2 + $0xa0] sm:$0xf0]  ;;  %v329_v59 = vld [vmem:[%s5769_s1 + $0x28] sm:$0xff] }
  0x1d   : > { %v3336_v60 = vld [vmem:[%s5770_s2 + $0x88] sm:$0xf]  ;;  %v328_v62 = vld [vmem:[%s5769_s1 + $0x20] sm:$0xff]  ;;  %v3329_v63 = vor.u32 %v3803_v56, %v3328_v54  ;;  %v3333_v0 = vor.u32 %v3799_v57, %v3330_v58  ;;  %v327_v6 = vld [vmem:[%s5769_s1 + $0x18] sm:$0xff] }
  0x1e   : > { %351 = vmatpush.msra.mxu0 %v332_v40  ;;  %816 = vmatpush.bf16.msra.mxu1 %v3393_v41  ;;  %v3804_v61 = vld [vmem:[%s5770_s2 + $0xa4] sm:$0xf0]  ;;  %v3296_v1 = vld [vmem:[%s5770_s2 + $0x40] sm:$0xf]  ;;  %v3791_v4 = vld [vmem:[%s5770_s2 + $0x44] sm:$0xf] }
  0x1f   : > { %835 = vmatpush.bf16.msra.mxu2 %v3397_v42  ;;  %854 = vmatpush.bf16.msra.mxu3 %v3401_v44  ;;  %v3337_v2 = vor.u32 %v3804_v61, %v3336_v60  ;;  %v3795_v3 = vld [vmem:[%s5770_s2 + $0x5c] sm:$0xf0]  ;;  %v3298_v5 = vld [vmem:[%s5770_s2 + $0x60] sm:$0xf0]  ;;  %v3304_v7 = vld [vmem:[%s5770_s2 + $0x48] sm:$0xf] }
  0x20   : > { %352 = vmatpush.msra.mxu0 %v331_v48  ;;  %v3796_v8 = vld [vmem:[%s5770_s2 + $0x64] sm:$0xf0]  ;;  %v326_v9 = vld [vmem:[%s5769_s1 + $0x10] sm:$0xff]  ;;  %v3297_v10 = vor.u32 %v3795_v3, %v3296_v1  ;;  %v3301_v11 = vor.u32 %v3791_v4, %v3298_v5  ;;  %v3264_v13 = vld [vmem:[%s5770_s2] sm:$0xf] }
  0x21   : > { %v325_v12 = vld [vmem:[%s5769_s1 + $0x8] sm:$0xff]  ;;  %v3305_v14 = vor.u32 %v3796_v8, %v3304_v7  ;;  %v3787_v15 = vld [vmem:[%s5770_s2 + $0x1c] sm:$0xf0]  ;;  %v3783_v16 = vld [vmem:[%s5770_s2 + $0x4] sm:$0xf] }
  0x22   : > { %353 = vmatpush.msra.mxu0 %v330_v51  ;;  %817 = vmatpush.bf16.msra.mxu1 %v3361_v52  ;;  %v3266_v17 = vld [vmem:[%s5770_s2 + $0x20] sm:$0xf0]  ;;  %v3272_v18 = vld [vmem:[%s5770_s2 + $0x8] sm:$0xf]  ;;  %v3840_v20 = vld [vmem:[%s5770_s2 + $0x1cc] sm:$0xf]  ;;  %v3265_v25 = vor.u32 %v3787_v15, %v3264_v13 }
  0x23   : > { %836 = vmatpush.bf16.msra.mxu2 %v3365_v53  ;;  %855 = vmatpush.bf16.msra.mxu3 %v3369_v55  ;;  %v3788_v19 = vld [vmem:[%s5770_s2 + $0x24] sm:$0xf0]  ;;  %v3498_v21 = vld [vmem:[%s5770_s2 + $0x1e8] sm:$0xf0]  ;;  %v3504_v22 = vld [vmem:[%s5770_s2 + $0x1d0] sm:$0xf]  ;;  %v3269_v26 = vor.u32 %v3783_v16, %v3266_v17 }
  0x24   : > { %354 = vmatpush.msra.mxu0 %v329_v59  ;;  %v3845_v23 = vld [vmem:[%s5770_s2 + $0x1ec] sm:$0xf0]  ;;  %v324_v24 = vld [vmem:[%s5769_s1] sm:$0xff]  ;;  %v319_v28 = vld [vmem:[%s4370_s22 + $0x8] sm:$0xff]  ;;  %v3273_v29 = vor.u32 %v3788_v19, %v3272_v18  ;;  %v3501_v32 = vor.u32 %v3840_v20, %v3498_v21 }
  0x25   : > { %v318_v27 = vld [vmem:[%s4370_s22] sm:$0xff]  ;;  %v3841_v30 = vld [vmem:[%s5770_s2 + $0x1d4] sm:$0xf]  ;;  %v3505_v33 = vor.u32 %v3845_v23, %v3504_v22  ;;  %v3512_v34 = vld [vmem:[%s5770_s2 + $0x1d8] sm:$0xf] }
  0x26   : > { %355 = vmatpush.msra.mxu0 %v328_v62  ;;  %818 = vmatpush.bf16.msra.mxu1 %v3329_v63  ;;  %v3506_v31 = vld [vmem:[%s5770_s2 + $0x1f0] sm:$0xf0]  ;;  %v3846_v35 = vld [vmem:[%s5770_s2 + $0x1f4] sm:$0xf0]  ;;  %v3832_v36 = vld [vmem:[%s5770_s2 + $0x18c] sm:$0xf]  ;;  %v4410_v37 = vpack.c.bf16 %v319_v28, %v318_v27 }
  0x27   : > { %837 = vmatpush.bf16.msra.mxu2 %v3333_v0  ;;  %856 = vmatpush.bf16.msra.mxu3 %v3337_v2  ;;  %v3466_v38 = vld [vmem:[%s5770_s2 + $0x1a8] sm:$0xf0]  ;;  %v3472_v39 = vld [vmem:[%s5770_s2 + $0x190] sm:$0xf]  ;;  %v3509_v41 = vor.u32 %v3841_v30, %v3506_v31  ;;  %v3513_v42 = vor.u32 %v3846_v35, %v3512_v34  ;;  %v3833_v43 = vld [vmem:[%s5770_s2 + $0x194] sm:$0xf] }
  0x28   : > { %356 = vmatpush.msra.mxu0 %v327_v6  ;;  %v3837_v40 = vld [vmem:[%s5770_s2 + $0x1ac] sm:$0xf0]  ;;  %v3474_v44 = vld [vmem:[%s5770_s2 + $0x1b0] sm:$0xf0]  ;;  %v3469_v45 = vor.u32 %v3832_v36, %v3466_v38  ;;  %v3480_v47 = vld [vmem:[%s5770_s2 + $0x198] sm:$0xf] }
  0x29   : > { %v3473_v46 = vor.u32 %v3837_v40, %v3472_v39  ;;  %v3838_v48 = vld [vmem:[%s5770_s2 + $0x1b4] sm:$0xf0]  ;;  %v3824_v49 = vld [vmem:[%s5770_s2 + $0x14c] sm:$0xf]  ;;  %v3440_v51 = vld [vmem:[%s5770_s2 + $0x150] sm:$0xf]  ;;  %v3477_v53 = vor.u32 %v3833_v43, %v3474_v44 }
  0x2a   : > { %357 = vmatpush.msra.mxu0 %v326_v9  ;;  %819 = vmatpush.bf16.msra.mxu1 %v3297_v10  ;;  %v3434_v50 = vld [vmem:[%s5770_s2 + $0x168] sm:$0xf0]  ;;  %v3829_v52 = vld [vmem:[%s5770_s2 + $0x16c] sm:$0xf0]  ;;  %v3481_v54 = vor.u32 %v3838_v48, %v3480_v47  ;;  %v3825_v55 = vld [vmem:[%s5770_s2 + $0x154] sm:$0xf] }
  0x2b   : > { %838 = vmatpush.bf16.msra.mxu2 %v3301_v11  ;;  %857 = vmatpush.bf16.msra.mxu3 %v3305_v14  ;;  %v3442_v56 = vld [vmem:[%s5770_s2 + $0x170] sm:$0xf0]  ;;  %v3437_v57 = vor.u32 %v3824_v49, %v3434_v50  ;;  %v3441_v58 = vor.u32 %v3829_v52, %v3440_v51  ;;  %v3448_v59 = vld [vmem:[%s5770_s2 + $0x158] sm:$0xf]  ;;  %v3816_v61 = vld [vmem:[%s5770_s2 + $0x10c] sm:$0xf] }
  0x2c   : > { %358 = vmatpush.msra.mxu0 %v325_v12  ;;  %v3830_v60 = vld [vmem:[%s5770_s2 + $0x174] sm:$0xf0]  ;;  %v3402_v62 = vld [vmem:[%s5770_s2 + $0x128] sm:$0xf0]  ;;  %v3408_v63 = vld [vmem:[%s5770_s2 + $0x110] sm:$0xf]  ;;  %v3445_v1 = vor.u32 %v3825_v55, %v3442_v56 }
  0x2d   : > { %v3821_v0 = vld [vmem:[%s5770_s2 + $0x12c] sm:$0xf0]  ;;  %v3449_v2 = vor.u32 %v3830_v60, %v3448_v59  ;;  %v3817_v3 = vld [vmem:[%s5770_s2 + $0x114] sm:$0xf]  ;;  %v3405_v5 = vor.u32 %v3816_v61, %v3402_v62  ;;  %v3416_v7 = vld [vmem:[%s5770_s2 + $0x118] sm:$0xf] }
  0x2e   : > { %359 = vmatpush.msra.mxu0 %v324_v24  ;;  %820 = vmatpush.bf16.msra.mxu1 %v3265_v25  ;;  %v3410_v4 = vld [vmem:[%s5770_s2 + $0x130] sm:$0xf0]  ;;  %v3409_v6 = vor.u32 %v3821_v0, %v3408_v63  ;;  %v3822_v8 = vld [vmem:[%s5770_s2 + $0x134] sm:$0xf0]  ;;  %v3808_v9 = vld [vmem:[%s5770_s2 + $0xcc] sm:$0xf] }
  0x2f   : > { %839 = vmatpush.bf16.msra.mxu2 %v3269_v26  ;;  %858 = vmatpush.bf16.msra.mxu3 %v3273_v29  ;;  %v3370_v10 = vld [vmem:[%s5770_s2 + $0xe8] sm:$0xf0]  ;;  %v3376_v11 = vld [vmem:[%s5770_s2 + $0xd0] sm:$0xf]  ;;  %v3413_v13 = vor.u32 %v3817_v3, %v3410_v4  ;;  %v321_v15 = vld [vmem:[%s4370_s22 + $0x18] sm:$0xff]  ;;  %v3417_v16 = vor.u32 %v3822_v8, %v3416_v7 }
  0x30   : > { %360 = vmatmul.f32.vlgmr.msra.gmra.mxu0 %v318_v27  ;;  %v3813_v12 = vld [vmem:[%s5770_s2 + $0xec] sm:$0xf0]  ;;  %v3809_v17 = vld [vmem:[%s5770_s2 + $0xd4] sm:$0xf]  ;;  %v3373_v19 = vor.u32 %v3808_v9, %v3370_v10  ;;  %v3384_v21 = vld [vmem:[%s5770_s2 + $0xd8] sm:$0xf] }
  0x31   : > { %870 = vmatpush.bf16.msrb.mxu0 %v3501_v32  ;;  %821 = vmatmul.bf16.vlgmr.msra.gmra.mxu1 %v4410_v37  ;;  %v320_v14 = vld [vmem:[%s4370_s22 + $0x10] sm:$0xff]  ;;  %v3377_v20 = vor.u32 %v3813_v12, %v3376_v11  ;;  %v3814_v22 = vld [vmem:[%s5770_s2 + $0xf4] sm:$0xf0]  ;;  %v3800_v23 = vld [vmem:[%s5770_s2 + $0x8c] sm:$0xf] }
  0x32   : > { %889 = vmatpush.bf16.msrb.mxu1 %v3505_v33  ;;  %840 = vmatmul.bf16.vlgmr.msra.gmra.mxu2 %v4410_v37  ;;  %v3378_v18 = vld [vmem:[%s5770_s2 + $0xf0] sm:$0xf0]  ;;  %v4513_v24 = vpack.c.bf16 %v321_v15, %v320_v14  ;;  %v3338_v25 = vld [vmem:[%s5770_s2 + $0xa8] sm:$0xf0]  ;;  %v3344_v26 = vld [vmem:[%s5770_s2 + $0x90] sm:$0xf]  ;;  %v3385_v29 = vor.u32 %v3814_v22, %v3384_v21 }
  0x33   : > { %859 = vmatmul.bf16.vlgmr.msra.gmra.mxu3 %v4410_v37  ;;  %908 = vmatpush.bf16.msrb.mxu2 %v3509_v41  ;;  %v3805_v27 = vld [vmem:[%s5770_s2 + $0xac] sm:$0xf0]  ;;  %v3801_v30 = vld [vmem:[%s5770_s2 + $0x94] sm:$0xf]  ;;  %v3341_v32 = vor.u32 %v3800_v23, %v3338_v25  ;;  %v3352_v34 = vld [vmem:[%s5770_s2 + $0x98] sm:$0xf] }
  0x34   : > { %927 = vmatpush.bf16.msrb.mxu3 %v3513_v42  ;;  %v3346_v31 = vld [vmem:[%s5770_s2 + $0xb0] sm:$0xf0]  ;;  %v3345_v33 = vor.u32 %v3805_v27, %v3344_v26  ;;  %v3806_v35 = vld [vmem:[%s5770_s2 + $0xb4] sm:$0xf0]  ;;  %v3792_v36 = vld [vmem:[%s5770_s2 + $0x4c] sm:$0xf] }
  0x35   : > { %871 = vmatpush.bf16.msrb.mxu0 %v3469_v45  ;;  %v3306_v38 = vld [vmem:[%s5770_s2 + $0x68] sm:$0xf0]  ;;  %v3312_v39 = vld [vmem:[%s5770_s2 + $0x50] sm:$0xf]  ;;  %v3349_v41 = vor.u32 %v3801_v30, %v3346_v31  ;;  %v3353_v42 = vor.u32 %v3806_v35, %v3352_v34  ;;  %v3793_v43 = vld [vmem:[%s5770_s2 + $0x54] sm:$0xf] }
  0x36   : > { %890 = vmatpush.bf16.msrb.mxu1 %v3473_v46  ;;  %v3797_v40 = vld [vmem:[%s5770_s2 + $0x6c] sm:$0xf0]  ;;  %v3314_v44 = vld [vmem:[%s5770_s2 + $0x70] sm:$0xf0]  ;;  %v3320_v45 = vld [vmem:[%s5770_s2 + $0x58] sm:$0xf]  ;;  %v3309_v46 = vor.u32 %v3792_v36, %v3306_v38 }
  0x37   : > { %909 = vmatpush.bf16.msrb.mxu2 %v3477_v53  ;;  %v3313_v47 = vor.u32 %v3797_v40, %v3312_v39  ;;  %v3798_v48 = vld [vmem:[%s5770_s2 + $0x74] sm:$0xf0]  ;;  %v3784_v49 = vld [vmem:[%s5770_s2 + $0xc] sm:$0xf]  ;;  %v3280_v51 = vld [vmem:[%s5770_s2 + $0x10] sm:$0xf] }
  0x38   : > { %928 = vmatpush.bf16.msrb.mxu3 %v3481_v54  ;;  %363 = vmatmul.f32.gmra.mxu0 %v319_v28  ;;  %v3381_v28 = vor.u32 %v3809_v17, %v3378_v18  ;;  %v3274_v50 = vld [vmem:[%s5770_s2 + $0x28] sm:$0xf0]  ;;  %v3789_v52 = vld [vmem:[%s5770_s2 + $0x2c] sm:$0xf0]  ;;  %v3842_v53 = vld [vmem:[%s5770_s2 + $0x1dc] sm:$0xf]  ;;  %v3317_v54 = vor.u32 %v3793_v43, %v3314_v44 }
  0x39   : > { %872 = vmatpush.bf16.msrb.mxu0 %v3437_v57  ;;  %v3514_v55 = vld [vmem:[%s5770_s2 + $0x1f8] sm:$0xf0]  ;;  %v3744_v56 = vld [vmem:[%s5771_s3 + $0x1c0] sm:$0xf]  ;;  %v3785_v59 = vld [vmem:[%s5770_s2 + $0x14] sm:$0xf]  ;;  %v3277_v61 = vor.u32 %v3784_v49, %v3274_v50  ;;  %v3281_v62 = vor.u32 %v3789_v52, %v3280_v51 }
  0x3a   : > { %891 = vmatpush.bf16.msrb.mxu1 %v3441_v58  ;;  %v3907_v57 = vld [vmem:[%s5771_s3 + $0x1dc] sm:$0xf0]  ;;  %v3321_v58 = vor.u32 %v3798_v48, %v3320_v45  ;;  %v3282_v60 = vld [vmem:[%s5770_s2 + $0x30] sm:$0xf0]  ;;  %v3288_v63 = vld [vmem:[%s5770_s2 + $0x18] sm:$0xf] }
  0x3b   : > { %910 = vmatpush.bf16.msrb.mxu2 %v3445_v1  ;;  %v3790_v0 = vld [vmem:[%s5770_s2 + $0x34] sm:$0xf0]  ;;  %v3903_v1 = vld [vmem:[%s5771_s3 + $0x1c4] sm:$0xf]  ;;  %v3745_v3 = vor.u32 %v3907_v57, %v3744_v56  ;;  %v3285_v7 = vor.u32 %v3785_v59, %v3282_v60  ;;  %v3834_v9 = vld [vmem:[%s5770_s2 + $0x19c] sm:$0xf] }
  0x3c   : > { %929 = vmatpush.bf16.msrb.mxu3 %v3449_v2  ;;  %v3517_v2 = vor.u32 %v3842_v53, %v3514_v55  ;;  %v3746_v4 = vld [vmem:[%s5771_s3 + $0x1e0] sm:$0xf0]  ;;  %v3289_v8 = vor.u32 %v3790_v0, %v3288_v63  ;;  %v3482_v10 = vld [vmem:[%s5770_s2 + $0x1b8] sm:$0xf0]  ;;  %v3720_v17 = vld [vmem:[%s5771_s3 + $0x188] sm:$0xf] }
  0x3d   : > { %873 = vmatpush.bf16.msrb.mxu0 %v3405_v5  ;;  %v3752_v5 = vld [vmem:[%s5771_s3 + $0x1c8] sm:$0xf]  ;;  %v3749_v11 = vor.u32 %v3903_v1, %v3746_v4  ;;  %v3450_v21 = vld [vmem:[%s5770_s2 + $0x178] sm:$0xf0]  ;;  %v3680_v22 = vld [vmem:[%s5771_s3 + $0x140] sm:$0xf] }
  0x3e   : > { %892 = vmatpush.bf16.msrb.mxu1 %v3409_v6  ;;  %v3908_v6 = vld [vmem:[%s5771_s3 + $0x1e4] sm:$0xf0]  ;;  %v3891_v25 = vld [vmem:[%s5771_s3 + $0x15c] sm:$0xf0]  ;;  %v3887_v26 = vld [vmem:[%s5771_s3 + $0x144] sm:$0xf] }
  0x3f   : > { %911 = vmatpush.bf16.msrb.mxu2 %v3413_v13  ;;  %v3753_v12 = vor.u32 %v3908_v6, %v3752_v5  ;;  %v3712_v13 = vld [vmem:[%s5771_s3 + $0x180] sm:$0xf]  ;;  %v3900_v18 = vld [vmem:[%s5771_s3 + $0x1a4] sm:$0xf0]  ;;  %v3682_v27 = vld [vmem:[%s5771_s3 + $0x160] sm:$0xf0] }
  0x40   : > { %930 = vmatpush.bf16.msrb.mxu3 %v3417_v16  ;;  %366 = vmatmul.f32.gmra.mxu0 %v320_v14  ;;  %v3899_v14 = vld [vmem:[%s5771_s3 + $0x19c] sm:$0xf0]  ;;  %v3714_v16 = vld [vmem:[%s5771_s3 + $0x1a0] sm:$0xf0]  ;;  %v3688_v30 = vld [vmem:[%s5771_s3 + $0x148] sm:$0xf]  ;;  %v3685_v36 = vor.u32 %v3887_v26, %v3682_v27 }
  0x41   : > { %874 = vmatpush.bf16.msrb.mxu0 %v3373_v19  ;;  %826 = vmatmul.bf16.gmra.mxu1 %v4513_v24  ;;  %v3485_v19 = vor.u32 %v3834_v9, %v3482_v10  ;;  %v3713_v23 = vor.u32 %v3899_v14, %v3712_v13  ;;  %v3892_v31 = vld [vmem:[%s5771_s3 + $0x164] sm:$0xf0]  ;;  %v3818_v34 = vld [vmem:[%s5770_s2 + $0x11c] sm:$0xf]  ;;  %v3648_v39 = vld [vmem:[%s5771_s3 + $0x100] sm:$0xf] }
  0x42   : > { %893 = vmatpush.bf16.msrb.mxu1 %v3377_v20  ;;  %845 = vmatmul.bf16.gmra.mxu2 %v4513_v24  ;;  %v3826_v20 = vld [vmem:[%s5770_s2 + $0x15c] sm:$0xf]  ;;  %v3689_v38 = vor.u32 %v3892_v31, %v3688_v30  ;;  %v3883_v40 = vld [vmem:[%s5771_s3 + $0x11c] sm:$0xf0]  ;;  %v3656_v43 = vld [vmem:[%s5771_s3 + $0x108] sm:$0xf] }
  0x43   : > { %864 = vmatmul.bf16.gmra.mxu3 %v4513_v24  ;;  %912 = vmatpush.bf16.msrb.mxu2 %v3381_v28  ;;  %v3418_v35 = vld [vmem:[%s5770_s2 + $0x138] sm:$0xf0]  ;;  %v3884_v44 = vld [vmem:[%s5771_s3 + $0x124] sm:$0xf0]  ;;  %v3616_v51 = vld [vmem:[%s5771_s3 + $0xc0] sm:$0xf] }
  0x44   : > { %931 = vmatpush.bf16.msrb.mxu3 %v3385_v29  ;;  %v3721_v29 = vor.u32 %v3900_v18, %v3720_v17  ;;  %v3421_v45 = vor.u32 %v3818_v34, %v3418_v35  ;;  %v3386_v48 = vld [vmem:[%s5770_s2 + $0xf8] sm:$0xf0]  ;;  %v3657_v50 = vor.u32 %v3884_v44, %v3656_v43  ;;  %v3875_v52 = vld [vmem:[%s5771_s3 + $0xdc] sm:$0xf0]  ;;  %v3871_v53 = vld [vmem:[%s5771_s3 + $0xc4] sm:$0xf] }
  0x45   : > { %875 = vmatpush.bf16.msrb.mxu0 %v3341_v32  ;;  %v3453_v32 = vor.u32 %v3826_v20, %v3450_v21  ;;  %v3618_v55 = vld [vmem:[%s5771_s3 + $0xe0] sm:$0xf0]  ;;  %v3624_v56 = vld [vmem:[%s5771_s3 + $0xc8] sm:$0xf]  ;;  %v3617_v59 = vor.u32 %v3875_v52, %v3616_v51  ;;  %v3354_v60 = vld [vmem:[%s5770_s2 + $0xb8] sm:$0xf0] }
  0x46   : > { %894 = vmatpush.bf16.msrb.mxu1 %v3345_v33  ;;  %v3681_v33 = vor.u32 %v3891_v25, %v3680_v22  ;;  %v3876_v57 = vld [vmem:[%s5771_s3 + $0xe4] sm:$0xf0]  ;;  %v3584_v63 = vld [vmem:[%s5771_s3 + $0x80] sm:$0xf]  ;;  %v3863_v1 = vld [vmem:[%s5771_s3 + $0x84] sm:$0xf] }
  0x47   : > { %913 = vmatpush.bf16.msrb.mxu2 %v3349_v41  ;;  %v3879_v41 = vld [vmem:[%s5771_s3 + $0x104] sm:$0xf]  ;;  %v3867_v0 = vld [vmem:[%s5771_s3 + $0x9c] sm:$0xf0]  ;;  %v3868_v4 = vld [vmem:[%s5771_s3 + $0xa4] sm:$0xf0] }
  0x48   : > { %932 = vmatpush.bf16.msrb.mxu3 %v3353_v42  ;;  %369 = vmatmul.f32.gmra.mxu0 %v321_v15  ;;  %v3895_v15 = vld [vmem:[%s5771_s3 + $0x184] sm:$0xf]  ;;  %v3585_v6 = vor.u32 %v3867_v0, %v3584_v63  ;;  %v3786_v18 = vld [vmem:[%s5770_s2 + $0x1c] sm:$0xf]  ;;  %v3520_v21 = vld [vmem:[%s5771_s3] sm:$0xf] }
  0x49   : > { %876 = vmatpush.bf16.msrb.mxu0 %v3309_v46  ;;  %v3717_v28 = vor.u32 %v3895_v15, %v3714_v16  ;;  %v3650_v42 = vld [vmem:[%s5771_s3 + $0x120] sm:$0xf0]  ;;  %v3649_v46 = vor.u32 %v3883_v40, %v3648_v39  ;;  %v3560_v15 = vld [vmem:[%s5771_s3 + $0x48] sm:$0xf]  ;;  %v3851_v22 = vld [vmem:[%s5771_s3 + $0x1c] sm:$0xf0] }
  0x4a   : > { %895 = vmatpush.bf16.msrb.mxu1 %v3313_v47  ;;  %v3810_v47 = vld [vmem:[%s5770_s2 + $0xdc] sm:$0xf]  ;;  %v3653_v49 = vor.u32 %v3879_v41, %v3650_v42  ;;  %v3855_v13 = vld [vmem:[%s5771_s3 + $0x44] sm:$0xf]  ;;  %v3860_v16 = vld [vmem:[%s5771_s3 + $0x64] sm:$0xf0] }
  0x4b   : > { %914 = vmatpush.bf16.msrb.mxu2 %v3317_v54  ;;  %v3802_v54 = vld [vmem:[%s5770_s2 + $0x9c] sm:$0xf]  ;;  %v3554_v14 = vld [vmem:[%s5771_s3 + $0x60] sm:$0xf0]  ;;  %v3561_v26 = vor.u32 %v3860_v16, %v3560_v15  ;;  %v3528_v30 = vld [vmem:[%s5771_s3 + $0x8] sm:$0xf] }
  0x4c   : > { %933 = vmatpush.bf16.msrb.mxu3 %v3321_v58  ;;  %v3389_v58 = vor.u32 %v3810_v47, %v3386_v48  ;;  %v3357_v5 = vor.u32 %v3802_v54, %v3354_v60  ;;  %v3557_v25 = vor.u32 %v3855_v13, %v3554_v14  ;;  %v3522_v27 = vld [vmem:[%s5771_s3 + $0x20] sm:$0xf0]  ;;  %v3852_v31 = vld [vmem:[%s5771_s3 + $0x24] sm:$0xf0]  ;;  %v3909_v34 = vld [vmem:[%s5771_s3 + $0x1ec] sm:$0xf0] }
  0x4d   : > { %877 = vmatpush.bf16.msrb.mxu0 %v3277_v61  ;;  %v3621_v61 = vor.u32 %v3871_v53, %v3618_v55  ;;  %v3905_v35 = vld [vmem:[%s5771_s3 + $0x1d4] sm:$0xf]  ;;  %v3768_v40 = vld [vmem:[%s5771_s3 + $0x1d8] sm:$0xf]  ;;  %v3529_v43 = vor.u32 %v3852_v31, %v3528_v30  ;;  %v3872_v16 = vld [vmem:[%s5771_s3 + $0xcc] sm:$0xf] }
  0x4e   : > { %896 = vmatpush.bf16.msrb.mxu1 %v3281_v62  ;;  %v3625_v62 = vor.u32 %v3876_v57, %v3624_v56  ;;  %v3910_v41 = vld [vmem:[%s5771_s3 + $0x1f4] sm:$0xf0]  ;;  %v3897_v51 = vld [vmem:[%s5771_s3 + $0x194] sm:$0xf]  ;;  %v3888_v56 = vld [vmem:[%s5771_s3 + $0x14c] sm:$0xf] }
  0x4f   : > { %915 = vmatpush.bf16.msrb.mxu2 %v3285_v7  ;;  %v3794_v7 = vld [vmem:[%s5770_s2 + $0x5c] sm:$0xf]  ;;  %v3769_v48 = vor.u32 %v3910_v41, %v3768_v40  ;;  %v3730_v53 = vld [vmem:[%s5771_s3 + $0x1b0] sm:$0xf0]  ;;  %v3736_v54 = vld [vmem:[%s5771_s3 + $0x198] sm:$0xf] }
  0x50   : > { %934 = vmatpush.bf16.msrb.mxu3 %v3289_v8  ;;  %878 = vmatmul.bf16.vlgmr.msrb.gmra.mxu0 %v4410_v37  ;;  %v3322_v8 = vld [vmem:[%s5770_s2 + $0x78] sm:$0xf0]  ;;  %v3902_v55 = vld [vmem:[%s5771_s3 + $0x1b4] sm:$0xf0]  ;;  %v3690_v57 = vld [vmem:[%s5771_s3 + $0x168] sm:$0xf0] }
  0x51   : > { %946 = vmatpush.bf16.msra.mxu0 %v3517_v2  ;;  %897 = vmatmul.bf16.vlgmr.msrb.gmra.mxu1 %v4410_v37  ;;  %v3586_v2 = vld [vmem:[%s5771_s3 + $0xa0] sm:$0xf0]  ;;  %v3325_v17 = vor.u32 %v3794_v7, %v3322_v8  ;;  %v3737_v60 = vor.u32 %v3902_v55, %v3736_v54  ;;  %v3889_v63 = vld [vmem:[%s5771_s3 + $0x154] sm:$0xf]  ;;  %v3693_v0 = vor.u32 %v3888_v56, %v3690_v57  ;;  %v3672_v14 = vld [vmem:[%s5771_s3 + $0x118] sm:$0xf] }
  0x52   : > { %1349 = vmatpush.bf16.msra.mxu1 %v3745_v3  ;;  %916 = vmatmul.bf16.vlgmr.msrb.gmra.mxu2 %v4410_v37  ;;  %v3592_v3 = vld [vmem:[%s5771_s3 + $0x88] sm:$0xf]  ;;  %v3589_v9 = vor.u32 %v3863_v1, %v3586_v2  ;;  %v3698_v1 = vld [vmem:[%s5771_s3 + $0x170] sm:$0xf0]  ;;  %v3704_v2 = vld [vmem:[%s5771_s3 + $0x158] sm:$0xf] }
  0x53   : > { %1368 = vmatpush.bf16.msra.mxu2 %v3749_v11  ;;  %935 = vmatmul.bf16.vlgmr.msrb.gmra.mxu3 %v4410_v37  ;;  %v3593_v10 = vor.u32 %v3868_v4, %v3592_v3  ;;  %v3552_v11 = vld [vmem:[%s5771_s3 + $0x40] sm:$0xf]  ;;  %v3894_v3 = vld [vmem:[%s5771_s3 + $0x174] sm:$0xf0]  ;;  %v3880_v4 = vld [vmem:[%s5771_s3 + $0x10c] sm:$0xf]  ;;  %v3701_v7 = vor.u32 %v3889_v63, %v3698_v1 }
  0x54   : > { %1387 = vmatpush.bf16.msra.mxu3 %v3753_v12  ;;  %v3859_v12 = vld [vmem:[%s5771_s3 + $0x5c] sm:$0xf0]  ;;  %v3705_v8 = vor.u32 %v3894_v3, %v3704_v2  ;;  %v3666_v13 = vld [vmem:[%s5771_s3 + $0x130] sm:$0xf0]  ;;  %v3886_v15 = vld [vmem:[%s5771_s3 + $0x134] sm:$0xf0] }
  0x55   : > { %947 = vmatpush.bf16.msra.mxu0 %v3485_v19  ;;  %v3290_v19 = vld [vmem:[%s5770_s2 + $0x38] sm:$0xf0]  ;;  %v3553_v20 = vor.u32 %v3859_v12, %v3552_v11  ;;  %v3881_v11 = vld [vmem:[%s5771_s3 + $0x114] sm:$0xf]  ;;  %v3878_v30 = vld [vmem:[%s5771_s3 + $0xf4] sm:$0xf0] }
  0x56   : > { %1350 = vmatpush.bf16.msra.mxu1 %v3713_v23  ;;  %v3847_v23 = vld [vmem:[%s5771_s3 + $0x4] sm:$0xf]  ;;  %v3602_v40 = vld [vmem:[%s5771_s3 + $0xb0] sm:$0xf0]  ;;  %v3562_v41 = vld [vmem:[%s5771_s3 + $0x68] sm:$0xf0] }
  0x57   : > { %1369 = vmatpush.bf16.msra.mxu2 %v3717_v28  ;;  %v3904_v28 = vld [vmem:[%s5771_s3 + $0x1cc] sm:$0xf]  ;;  %v3525_v42 = vor.u32 %v3847_v23, %v3522_v27  ;;  %v3634_v27 = vld [vmem:[%s5771_s3 + $0xf0] sm:$0xf0]  ;;  %v3576_v54 = vld [vmem:[%s5771_s3 + $0x58] sm:$0xf] }
  0x58   : > { %1388 = vmatpush.bf16.msra.mxu3 %v3721_v29  ;;  %v3754_v29 = vld [vmem:[%s5771_s3 + $0x1e8] sm:$0xf0]  ;;  %v3862_v55 = vld [vmem:[%s5771_s3 + $0x74] sm:$0xf0]  ;;  %v3906_v57 = vld [vmem:[%s5771_s3 + $0x1dc] sm:$0xf] }
  0x59   : > { %948 = vmatpush.bf16.msra.mxu0 %v3453_v32  ;;  %v3760_v32 = vld [vmem:[%s5771_s3 + $0x1d0] sm:$0xf]  ;;  %v3757_v39 = vor.u32 %v3904_v28, %v3754_v29  ;;  %v3594_v28 = vld [vmem:[%s5771_s3 + $0xa8] sm:$0xf0]  ;;  %v3640_v29 = vld [vmem:[%s5771_s3 + $0xd8] sm:$0xf]  ;;  %v3577_v63 = vor.u32 %v3862_v55, %v3576_v54 }
  0x5a   : > { %1351 = vmatpush.bf16.msra.mxu1 %v3681_v33  ;;  %v3293_v33 = vor.u32 %v3786_v18, %v3290_v19  ;;  %v3761_v44 = vor.u32 %v3909_v34, %v3760_v32  ;;  %v3669_v19 = vor.u32 %v3881_v11, %v3666_v13  ;;  %v3869_v34 = vld [vmem:[%s5771_s3 + $0xac] sm:$0xf0]  ;;  %v3538_v1 = vld [vmem:[%s5771_s3 + $0x30] sm:$0xf0]  ;;  %v3544_v2 = vld [vmem:[%s5771_s3 + $0x18] sm:$0xf] }
  0x5b   : > { %1370 = vmatpush.bf16.msra.mxu2 %v3685_v36  ;;  %v3762_v36 = vld [vmem:[%s5771_s3 + $0x1f0] sm:$0xf0]  ;;  %v3854_v3 = vld [vmem:[%s5771_s3 + $0x34] sm:$0xf0]  ;;  %v3890_v11 = vld [vmem:[%s5771_s3 + $0x15c] sm:$0xf] }
  0x5c   : > { %1389 = vmatpush.bf16.msra.mxu3 %v3689_v38  ;;  %v3521_v38 = vor.u32 %v3851_v22, %v3520_v21  ;;  %v3765_v47 = vor.u32 %v3905_v35, %v3762_v36  ;;  %v3632_v21 = vld [vmem:[%s5771_s3 + $0xd0] sm:$0xf]  ;;  %v3641_v36 = vor.u32 %v3878_v30, %v3640_v29  ;;  %v5046_v30 = vld [vmem:[%s5772_s4] ss:$0 sm:$0xff]  ;;  %v5085_v54 = vld [vmem:[%s5773_s5 + $0x2] ss:$0 sm:$0xff] }
  0x5d   : > { %949 = vmatpush.bf16.msra.mxu0 %v3421_v45  ;;  %v3896_v45 = vld [vmem:[%s5771_s3 + $0x18c] sm:$0xf]  ;;  %v3877_v22 = vld [vmem:[%s5771_s3 + $0xec] sm:$0xf0] }
  0x5e   : > { %1352 = vmatpush.bf16.msra.mxu1 %v3649_v46  ;;  %v3722_v46 = vld [vmem:[%s5771_s3 + $0x1a8] sm:$0xf0]  ;;  %v3633_v31 = vor.u32 %v3877_v22, %v3632_v21  ;;  %v3610_v21 = vld [vmem:[%s5771_s3 + $0xb8] sm:$0xf0] }
  0x5f   : > { %1371 = vmatpush.bf16.msra.mxu2 %v3653_v49  ;;  %v3728_v49 = vld [vmem:[%s5771_s3 + $0x190] sm:$0xf]  ;;  %v3725_v52 = vor.u32 %v3896_v45, %v3722_v46 }
  0x60   : > { %1390 = vmatpush.bf16.msra.mxu3 %v3657_v50  ;;  %883 = vmatmul.bf16.gmra.mxu0 %v4513_v24  ;;  %v3901_v50 = vld [vmem:[%s5771_s3 + $0x1ac] sm:$0xf0] }
  0x61   : > { %950 = vmatpush.bf16.msra.mxu0 %v3389_v58  ;;  %902 = vmatmul.bf16.gmra.mxu1 %v4513_v24  ;;  %v3729_v58 = vor.u32 %v3901_v50, %v3728_v49  ;;  %v3568_v46 = vld [vmem:[%s5771_s3 + $0x50] sm:$0xf]  ;;  %v3848_v50 = vld [vmem:[%s5771_s3 + $0xc] sm:$0xf] }
  0x62   : > { %1353 = vmatpush.bf16.msra.mxu1 %v3617_v59  ;;  %921 = vmatmul.bf16.gmra.mxu2 %v4513_v24  ;;  %v3733_v59 = vor.u32 %v3897_v51, %v3730_v53  ;;  %v3857_v51 = vld [vmem:[%s5771_s3 + $0x54] sm:$0xf]  ;;  %v3530_v53 = vld [vmem:[%s5771_s3 + $0x28] sm:$0xf0] }
  0x63   : > { %1372 = vmatpush.bf16.msra.mxu2 %v3621_v61  ;;  %940 = vmatmul.bf16.gmra.mxu3 %v4513_v24  ;;  %v3696_v61 = vld [vmem:[%s5771_s3 + $0x150] sm:$0xf] }
  0x64   : > { %1391 = vmatpush.bf16.msra.mxu3 %v3625_v62  ;;  %v3893_v62 = vld [vmem:[%s5771_s3 + $0x16c] sm:$0xf0] }
  0x65   : > { %951 = vmatpush.bf16.msra.mxu0 %v3357_v5  ;;  %v3658_v5 = vld [vmem:[%s5771_s3 + $0x128] sm:$0xf0] }
  0x66   : > { %1354 = vmatpush.bf16.msra.mxu1 %v3585_v6  ;;  %v3697_v6 = vor.u32 %v3893_v62, %v3696_v61  ;;  %v3661_v12 = vor.u32 %v3880_v4, %v3658_v5  ;;  %v3853_v61 = vld [vmem:[%s5771_s3 + $0x2c] sm:$0xf0]  ;;  %v3533_v62 = vor.u32 %v3848_v50, %v3530_v53  ;;  %v5080_v53 = vld [vmem:[%s5773_s5 + $0x1] ss:$0 sm:$0xff] }
  0x67   : > { %1373 = vmatpush.bf16.msra.mxu2 %v3589_v9  ;;  %v3664_v9 = vld [vmem:[%s5771_s3 + $0x110] sm:$0xf] }
  0x68   : > { %1392 = vmatpush.bf16.msra.mxu3 %v3593_v10  ;;  %v3885_v10 = vld [vmem:[%s5771_s3 + $0x12c] sm:$0xf0] }
  0x69   : > { %952 = vmatpush.bf16.msra.mxu0 %v3325_v17  ;;  %v3626_v17 = vld [vmem:[%s5771_s3 + $0xe8] sm:$0xf0]  ;;  %v3665_v18 = vor.u32 %v3885_v10, %v3664_v9  ;;  %v3545_v9 = vor.u32 %v3854_v3, %v3544_v2  ;;  %v5111_v2 = vld [vmem:[%s5773_s5 + $0x7] ss:$0 sm:$0xff] }
  0x6a   : > { %1355 = vmatpush.bf16.msra.mxu1 %v3553_v20  ;;  %v3673_v20 = vor.u32 %v3886_v15, %v3672_v14  ;;  %v3629_v23 = vor.u32 %v3872_v16, %v3626_v17  ;;  %v3882_v14 = vld [vmem:[%s5771_s3 + $0x11c] sm:$0xf] }
  0x6b   : > { %1374 = vmatpush.bf16.msra.mxu2 %v3557_v25  ;;  %v3864_v25 = vld [vmem:[%s5771_s3 + $0x8c] sm:$0xf]  ;;  %v3674_v15 = vld [vmem:[%s5771_s3 + $0x138] sm:$0xf0] }
  0x6c   : > { %1393 = vmatpush.bf16.msra.mxu3 %v3561_v26  ;;  %v3873_v26 = vld [vmem:[%s5771_s3 + $0xd4] sm:$0xf]  ;;  %v3597_v35 = vor.u32 %v3864_v25, %v3594_v28  ;;  %v3677_v16 = vor.u32 %v3882_v14, %v3674_v15  ;;  %v3874_v17 = vld [vmem:[%s5771_s3 + $0xdc] sm:$0xf] }
  0x6d   : > { %953 = vmatpush.bf16.msra.mxu0 %v3293_v33  ;;  %v3637_v32 = vor.u32 %v3873_v26, %v3634_v27  ;;  %v3600_v33 = vld [vmem:[%s5771_s3 + $0x90] sm:$0xf]  ;;  %v3578_v25 = vld [vmem:[%s5771_s3 + $0x78] sm:$0xf0] }
  0x6e   : > { %1356 = vmatpush.bf16.msra.mxu1 %v3521_v38  ;;  %v3856_v38 = vld [vmem:[%s5771_s3 + $0x4c] sm:$0xf]  ;;  %v3850_v27 = vld [vmem:[%s5771_s3 + $0x1c] sm:$0xf] }
  0x6f   : > { %1375 = vmatpush.bf16.msra.mxu2 %v3525_v42  ;;  %v3608_v42 = vld [vmem:[%s5771_s3 + $0x98] sm:$0xf]  ;;  %v3546_v28 = vld [vmem:[%s5771_s3 + $0x38] sm:$0xf0] }
  0x70   : > { %1394 = vmatpush.bf16.msra.mxu3 %v3529_v43  ;;  %954 = vmatmul.bf16.vlgmr.msra.gmra.mxu0 %v4410_v37  ;;  %v3870_v43 = vld [vmem:[%s5771_s3 + $0xb4] sm:$0xf0]  ;;  %v3549_v29 = vor.u32 %v3850_v27, %v3546_v28 }
  0x71   : > { %1406 = vmatpush.bf16.msrb.mxu0 %v3757_v39  ;;  %1357 = vmatmul.bf16.vlgmr.msra.gmra.mxu1 %v4410_v37  ;;  %v3865_v39 = vld [vmem:[%s5771_s3 + $0x94] sm:$0xf]  ;;  %v3609_v49 = vor.u32 %v3870_v43, %v3608_v42 }
  0x72   : > { %1425 = vmatpush.bf16.msrb.mxu1 %v3761_v44  ;;  %1376 = vmatmul.bf16.vlgmr.msra.gmra.mxu2 %v4410_v37  ;;  %v3601_v44 = vor.u32 %v3869_v34, %v3600_v33  ;;  %v3605_v45 = vor.u32 %v3865_v39, %v3602_v40 }
  0x73   : > { %1444 = vmatpush.bf16.msrb.mxu2 %v3765_v47  ;;  %1395 = vmatmul.bf16.vlgmr.msra.gmra.mxu3 %v4410_v37  ;;  %v3861_v47 = vld [vmem:[%s5771_s3 + $0x6c] sm:$0xf0] }
  0x74   : > { %1463 = vmatpush.bf16.msrb.mxu3 %v3769_v48  ;;  %v3565_v48 = vor.u32 %v3856_v38, %v3562_v41  ;;  %v3569_v56 = vor.u32 %v3861_v47, %v3568_v46 }
  0x75   : > { %1407 = vmatpush.bf16.msrb.mxu0 %v3725_v52  ;;  %v3570_v52 = vld [vmem:[%s5771_s3 + $0x70] sm:$0xf0] }
  0x76   : > { %1426 = vmatpush.bf16.msrb.mxu1 %v3729_v58  ;;  %v3770_v58 = vld [vmem:[%s5771_s3 + $0x1f8] sm:$0xf0] }
  0x77   : > { %1445 = vmatpush.bf16.msrb.mxu2 %v3733_v59  ;;  %v3573_v59 = vor.u32 %v3857_v51, %v3570_v52  ;;  %v3773_v4 = vor.u32 %v3906_v57, %v3770_v58  ;;  %v5075_v51 = vld [vmem:[%s5773_s5] ss:$0 sm:$0xff] }
  0x78   : > { %1464 = vmatpush.bf16.msrb.mxu3 %v3737_v60  ;;  %v3536_v60 = vld [vmem:[%s5771_s3 + $0x10] sm:$0xf] }
  0x79   : > { %1408 = vmatpush.bf16.msrb.mxu0 %v3693_v0  ;;  %v3849_v0 = vld [vmem:[%s5771_s3 + $0x14] sm:$0xf]  ;;  %v3537_v5 = vor.u32 %v3853_v61, %v3536_v60  ;;  %v5095_v60 = vld [vmem:[%s5773_s5 + $0x4] ss:$0 sm:$0xff]  ;;  %v5100_v61 = vld [vmem:[%s5773_s5 + $0x5] ss:$0 sm:$0xff] }
  0x7a   : > { %1427 = vmatpush.bf16.msrb.mxu1 %v3697_v6  ;;  %v3898_v6 = vld [vmem:[%s5771_s3 + $0x19c] sm:$0xf] }
  0x7b   : > { %1446 = vmatpush.bf16.msrb.mxu2 %v3701_v7  ;;  %v3738_v7 = vld [vmem:[%s5771_s3 + $0x1b8] sm:$0xf0] }
  0x7c   : > { %1465 = vmatpush.bf16.msrb.mxu3 %v3705_v8  ;;  %v3541_v8 = vor.u32 %v3849_v0, %v3538_v1  ;;  %v3741_v10 = vor.u32 %v3898_v6, %v3738_v7  ;;  %v5106_v0 = vld [vmem:[%s5773_s5 + $0x6] ss:$0 sm:$0xff] }
  0x7d   : > { %1409 = vmatpush.bf16.msrb.mxu0 %v3661_v12  ;;  %v3706_v12 = vld [vmem:[%s5771_s3 + $0x178] sm:$0xf0]  ;;  %v4049_v7 = vld [vmem:[%s4370_s22] sm:$0xff] }
  0x7e   : > { %1428 = vmatpush.bf16.msrb.mxu1 %v3665_v18  ;;  %v3709_v13 = vor.u32 %v3890_v11, %v3706_v12  ;;  %v3642_v18 = vld [vmem:[%s5771_s3 + $0xf8] sm:$0xf0] }
  0x7f   : > { %1447 = vmatpush.bf16.msrb.mxu2 %v3669_v19  ;;  %v3645_v19 = vor.u32 %v3874_v17, %v3642_v18 }
  0x80   : > { %1466 = vmatpush.bf16.msrb.mxu3 %v3673_v20  ;;  %959 = vmatmul.bf16.gmra.mxu0 %v4513_v24  ;;  %v3866_v20 = vld [vmem:[%s5771_s3 + $0x9c] sm:$0xf] }
  0x81   : > { %1410 = vmatpush.bf16.msrb.mxu0 %v3629_v23  ;;  %1362 = vmatmul.bf16.gmra.mxu1 %v4513_v24  ;;  %v3613_v22 = vor.u32 %v3866_v20, %v3610_v21  ;;  %v3858_v23 = vld [vmem:[%s5771_s3 + $0x5c] sm:$0xf] }
  0x82   : > { %1429 = vmatpush.bf16.msrb.mxu1 %v3633_v31  ;;  %1381 = vmatmul.bf16.gmra.mxu2 %v4513_v24  ;;  %v3581_v26 = vor.u32 %v3858_v23, %v3578_v25 }
  0x83   : > { %1448 = vmatpush.bf16.msrb.mxu2 %v3637_v32  ;;  %1400 = vmatmul.bf16.gmra.mxu3 %v4513_v24 }
  0x84   : > { %1467 = vmatpush.bf16.msrb.mxu3 %v3641_v36 }
  0x85   : > { %1411 = vmatpush.bf16.msrb.mxu0 %v3597_v35 }
  0x86   : > { %1430 = vmatpush.bf16.msrb.mxu1 %v3601_v44 }
  0x87   : > { %1449 = vmatpush.bf16.msrb.mxu2 %v3605_v45 }
  0x88   : > { %1468 = vmatpush.bf16.msrb.mxu3 %v3609_v49 }
  0x89   : > { %1412 = vmatpush.bf16.msrb.mxu0 %v3565_v48 }
  0x8a   : > { %1431 = vmatpush.bf16.msrb.mxu1 %v3569_v56 }
  0x8b   : > { %1450 = vmatpush.bf16.msrb.mxu2 %v3573_v59  ;;  %v5090_v59 = vld [vmem:[%s5773_s5 + $0x3] ss:$0 sm:$0xff] }
  0x8c   : > { %1469 = vmatpush.bf16.msrb.mxu3 %v3577_v63 }
  0x8d   : > { %1413 = vmatpush.bf16.msrb.mxu0 %v3533_v62 }
  0x8e   : > { %1432 = vmatpush.bf16.msrb.mxu1 %v3537_v5 }
  0x8f   : > { %1451 = vmatpush.bf16.msrb.mxu2 %v3541_v8 }
  0x90   : > { %1470 = vmatpush.bf16.msrb.mxu3 %v3545_v9  ;;  %1414 = vmatmul.bf16.vlgmr.msrb.gmra.mxu0 %v4410_v37 }
  0x91   : > { %1482 = vmatpush.bf16.msra.mxu0 %v3773_v4  ;;  %1433 = vmatmul.bf16.vlgmr.msrb.gmra.mxu1 %v4410_v37 }
  0x92   : > { %3911 = vmatpush.bf16.msra.mxu1 %v3773_v4  ;;  %1452 = vmatmul.bf16.vlgmr.msrb.gmra.mxu2 %v4410_v37 }
  0x93   : > { %1471 = vmatmul.bf16.vlgmr.msrb.gmra.mxu3 %v4410_v37 }
  0x95   : > { %1483 = vmatpush.bf16.msra.mxu0 %v3741_v10 }
  0x96   : > { %3912 = vmatpush.bf16.msra.mxu1 %v3741_v10 }
  0x99   : > { %1484 = vmatpush.bf16.msra.mxu0 %v3709_v13 }
  0x9a   : > { %3913 = vmatpush.bf16.msra.mxu1 %v3709_v13 }
  0x9d   : > { %1485 = vmatpush.bf16.msra.mxu0 %v3677_v16 }
  0x9e   : > { %3914 = vmatpush.bf16.msra.mxu1 %v3677_v16 }
  0xa0   : > { %1419 = vmatmul.bf16.gmra.mxu0 %v4513_v24 }
  0xa1   : > { %1486 = vmatpush.bf16.msra.mxu0 %v3645_v19  ;;  %1438 = vmatmul.bf16.gmra.mxu1 %v4513_v24 }
  0xa2   : > { %3915 = vmatpush.bf16.msra.mxu1 %v3645_v19  ;;  %1457 = vmatmul.bf16.gmra.mxu2 %v4513_v24 }
  0xa3   : > { %1476 = vmatmul.bf16.gmra.mxu3 %v4513_v24 }
  0xa5   : > { %1487 = vmatpush.bf16.msra.mxu0 %v3613_v22 }
  0xa6   : > { %3916 = vmatpush.bf16.msra.mxu1 %v3613_v22 }
  0xa9   : > { %1488 = vmatpush.bf16.msra.mxu0 %v3581_v26 }
  0xaa   : > { %3917 = vmatpush.bf16.msra.mxu1 %v3581_v26 }
  0xad   : > { %1489 = vmatpush.bf16.msra.mxu0 %v3549_v29  ;;  %v361_v31 = vpop.f32.mrf.mxu0 }
  0xae   : > { %3918 = vmatpush.bf16.msra.mxu1 %v3549_v29  ;;  %v362_v32 = vadd.f32 %v5046_v30, %v361_v31  ;;  %v5049_v33 = vpop.f32.mrf.mxu1 }
  0xb0   : > { %v377_v34 = vmul.f32 1.442695, %v362_v32  ;;  %1490 = vmatmul.bf16.vlgmr.msra.gmra.mxu0 %v4410_v37  ;;  %vm373_vm1 = vcmp.gt.f32.partialorder %v362_v32, 20.0 }
  0xb1   : > { %1495 = vmatmul.bf16.vlgmr.msra.gmra.mxu1 %v4513_v24 }
  0xb2   : > { %3969 = vpow2.f32 %v377_v34 }
  0xb5   : > { %v364_v35 = vpop.f32.mrf.mxu0  ;;  %v5053_v36 = vpop.f32.mrf.mxu2 }
  0xb6   : > { %v5056_v38 = vadd.f32 %v5046_v30, %v364_v35  ;;  %v5058_v39 = vpop.f32.mrf.mxu3  ;;  %v5060_v40 = vpop.f32.mrf.mxu1 }
  0xb8   : > { %v3970_v41 = vpop.eup %3969  ;;  %v379_v42 = vmul.f32 1.442695, %v5056_v38  ;;  %vm374_vm3 = vcmp.gt.f32.partialorder %v5056_v38, 20.0 }
  0xb9   : > { %v385_v43 = vadd.f32 1.0, %v3970_v41  ;;  %v388_v44 = vmul.f32 -0.5, %v3970_v41  ;;  %v391_v47 = vand.u32 2147483647, %v3970_v41 }
  0xba   : > { %3971 = vpow2.f32 %v379_v42 }
  0xbb   : > { %3973 = vlog2.f32 %v385_v43  ;;  %v389_v24 = vadd.f32 1.0, %v388_v44  ;;  %vm392_vm0 = vcmp.lt.f32.partialorder %v391_v47, 0.0004427343 }
  0xbd   : > { %v367_v37 = vpop.f32.mrf.mxu0  ;;  %v5063_v45 = vpop.f32.mrf.mxu2  ;;  %v390_v58 = vmul.f32 %v3970_v41, %v389_v24 }
  0xbe   : > { %v5065_v46 = vpop.f32.mrf.mxu3  ;;  %v5068_v48 = vadd.f32 %v5046_v30, %v367_v37  ;;  %v5070_v49 = vpop.f32.mrf.mxu1 }
  0xc0   : > { %v3972_v50 = vpop.eup %3971  ;;  %v381_v62 = vmul.f32 1.442695, %v5068_v48  ;;  %vm375_vm5 = vcmp.gt.f32.partialorder %v5068_v48, 20.0 }
  0xc1   : > { %v3974_v52 = vpop.eup %3973  ;;  %v394_v55 = vadd.f32 1.0, %v3972_v50  ;;  %v397_v56 = vmul.f32 -0.5, %v3972_v50  ;;  %v400_v4 = vand.u32 2147483647, %v3972_v50 }
  0xc2   : > { %v387_v57 = vmul.f32 0.6931472, %v3974_v52 }
  0xc3   : > { %3975 = vlog2.f32 %v394_v55  ;;  %v398_v3 = vadd.f32 1.0, %v397_v56  ;;  %vm5134_vm2 = vcmp.lt.f32.partialorder %v400_v4, 0.0004427343 }
  0xc4   : > { %v393_v63 = vsel %vm392_vm0, %v390_v58, %v387_v57  ;;  %3977 = vpow2.f32 %v381_v62 }
  0xc5   : > { %v421_v1 = vsel %vm373_vm1, %v362_v32, %v393_v63  ;;  %v5113_v5 = vpop.f32.mrf.mxu0  ;;  %v5115_v6 = vpop.f32.mrf.mxu2  ;;  %v399_v29 = vmul.f32 %v3972_v50, %v398_v3 }
  0xc6   : > { %v5118_v8 = vmul.f32 %v4049_v7, %v421_v1  ;;  %v1503_v9 = vmul.f32 %v5075_v51, %v421_v1  ;;  %v1533_v10 = vmul.f32 %v5080_v53, %v421_v1  ;;  %v1566_v11 = vmul.f32 %v5085_v54, %v421_v1  ;;  %v5123_v12 = vpop.f32.mrf.mxu3  ;;  %v5128_v16 = vpop.f32.mrf.mxu1 }
  0xc7   : > { %v1599_v13 = vmul.f32 %v5090_v59, %v421_v1  ;;  %v1632_v14 = vmul.f32 %v5095_v60, %v421_v1  ;;  %v1665_v15 = vmul.f32 %v5100_v61, %v421_v1  ;;  %v1698_v20 = vmul.f32 %v5106_v0, %v421_v1 }
  0xc8   : > { %v1507_v17 = vmul.f32 1.442695, %v1503_v9  ;;  %v1537_v18 = vmul.f32 1.442695, %v1533_v10  ;;  %v1570_v19 = vmul.f32 1.442695, %v1566_v11  ;;  %v1731_v23 = vmul.f32 %v5111_v2, %v421_v1 }
  0xc9   : > { %v3976_v21 = vpop.eup %3975  ;;  %v1603_v22 = vmul.f32 1.442695, %v1599_v13  ;;  %v1519_v25 = vmul.f32 %v5049_v33, %v5118_v8  ;;  %v1636_v27 = vmul.f32 1.442695, %v1632_v14  ;;  %v1669_v31 = vmul.f32 1.442695, %v1665_v15 }
  0xca   : > { %3979 = vpow2.f32 %v1507_v17  ;;  %v396_v28 = vmul.f32 0.6931472, %v3976_v21  ;;  %v1550_v32 = vmul.f32 %v5053_v36, %v5118_v8  ;;  %v1583_v34 = vmul.f32 %v5058_v39, %v5118_v8  ;;  %v5145_v41 = vpop.eup %3977 }
  0xcb   : > { %3981 = vpow2.f32 %v1537_v18  ;;  %1523 = vst [vmem:[#allocation3 + $0x80] sm:$0xff] %v1519_v25  ;;  %v1702_v35 = vmul.f32 1.442695, %v1698_v20  ;;  %v1735_v42 = vmul.f32 1.442695, %v1731_v23  ;;  %v5166_v13 = vadd.f32 %v5046_v30, %v5113_v5 }
  0xcc   : > { %3983 = vpow2.f32 %v1570_v19  ;;  %v402_v33 = vsel %vm5134_vm2, %v399_v29, %v396_v28  ;;  %1555 = vst [vmem:[#allocation3 + $0x8] sm:$0xff] %v1550_v32  ;;  %v406_v29 = vmul.f32 -0.5, %v5145_v41 }
  0xcd   : > { %3985 = vpow2.f32 %v1603_v22  ;;  %v422_v43 = vsel %vm374_vm3, %v5056_v38, %v402_v33  ;;  %v5148_v44 = vpop.f32.mrf.mxu2  ;;  %v5150_v36 = vpop.f32.mrf.mxu0  ;;  %1588 = vst [vmem:[#allocation3 + $0xd0] sm:$0xff] %v1583_v34  ;;  %v403_v22 = vadd.f32 1.0, %v5145_v41  ;;  %v383_v5 = vmul.f32 1.442695, %v5166_v13 }
  0xce   : > { %3987 = vpow2.f32 %v1636_v27  ;;  %v1504_v39 = vmul.f32 %v5075_v51, %v422_v43  ;;  %v1534_v37 = vmul.f32 %v5080_v53, %v422_v43  ;;  %v5154_v24 = vpop.f32.mrf.mxu3  ;;  %v1567_v47 = vmul.f32 %v5085_v54, %v422_v43  ;;  %v5159_v52 = vpop.f32.mrf.mxu1  ;;  %v4050_v27 = vld [vmem:[%s4370_s22 + $0x8] sm:$0xff] }
  0xcf   : > { %3989 = vpow2.f32 %v1669_v31  ;;  %v1600_v50 = vmul.f32 %v5090_v59, %v422_v43  ;;  %v1633_v38 = vmul.f32 %v5095_v60, %v422_v43  ;;  %v1666_v58 = vmul.f32 %v5100_v61, %v422_v43 }
  0xd0   : > { %v3980_v55 = vpop.eup %3979  ;;  %3991 = vpow2.f32 %v1702_v35  ;;  %v1509_v56 = vmul.f32 1.442695, %v1504_v39  ;;  %v1539_v57 = vmul.f32 1.442695, %v1534_v37  ;;  %v1572_v63 = vmul.f32 1.442695, %v1567_v47 }
  0xd1   : > { %v3982_v62 = vpop.eup %3981  ;;  %1515 = vst [vmem:[#allocation2 + $0xb0] sm:$0xff] %v3980_v55  ;;  %3993 = vpow2.f32 %v1735_v42  ;;  %v1605_v1 = vmul.f32 1.442695, %v1600_v50  ;;  %v1699_v3 = vmul.f32 %v5106_v0, %v422_v43  ;;  %v1638_v7 = vmul.f32 1.442695, %v1633_v38 }
  0xd2   : > { %v3984_v4 = vpop.eup %3983  ;;  %1546 = vst [vmem:[#allocation2 + $0x50] sm:$0xff] %v3982_v62  ;;  %3995 = vpow2.f32 %v1509_v56  ;;  %v1732_v9 = vmul.f32 %v5111_v2, %v422_v43  ;;  %v1671_v11 = vmul.f32 1.442695, %v1666_v58  ;;  %v5175_v28 = vmul.f32 %v4050_v27, %v422_v43 }
  0xd3   : > { %v3986_v10 = vpop.eup %3985  ;;  %1579 = vst [vmem:[#allocation2 + $0x80] sm:$0xff] %v3984_v4  ;;  %3997 = vpow2.f32 %v1539_v57  ;;  %v1704_v15 = vmul.f32 1.442695, %v1699_v3  ;;  %v407_v43 = vadd.f32 1.0, %v406_v29  ;;  %v409_v50 = vand.u32 2147483647, %v5145_v41 }
  0xd4   : > { %v3988_v14 = vpop.eup %3987  ;;  %1612 = vst [vmem:[#allocation2 + $0x60] sm:$0xff] %v3986_v10  ;;  %3999 = vpow2.f32 %v1572_v63  ;;  %v1737_v18 = vmul.f32 1.442695, %v1732_v9  ;;  %v1520_v42 = vmul.f32 %v5060_v40, %v5175_v28  ;;  %v1551_v38 = vmul.f32 %v5063_v45, %v5175_v28  ;;  %v4051_v10 = vld [vmem:[%s4370_s22 + $0x10] sm:$0xff] }
  0xd5   : > { %v3990_v17 = vpop.eup %3989  ;;  %1645 = vst [vmem:[#allocation2 + $0x38] sm:$0xff] %v3988_v14  ;;  %4001 = vpow2.f32 %v1605_v1  ;;  %v881_v19 = vpop.f32.mrf.mxu0  ;;  %v1584_v56 = vmul.f32 %v5065_v46, %v5175_v28  ;;  %v1616_v40 = vmul.f32 %v5150_v36, %v5118_v8  ;;  %v408_v1 = vmul.f32 %v5145_v41, %v407_v43 }
  0xd6   : > { %v5168_v20 = vpop.f32.mrf.mxu2  ;;  %v3992_v21 = vpop.eup %3991  ;;  %1678 = vst [vmem:[#allocation2 + $0xe0] sm:$0xff] %v3990_v17  ;;  %4003 = vpow2.f32 %v1638_v7  ;;  %v1649_v45 = vmul.f32 %v5159_v52, %v5118_v8  ;;  %vm410_vm4 = vcmp.lt.f32.partialorder %v409_v50, 0.0004427343  ;;  %v1617_v4 = vmul.f32 %v881_v19, %v5175_v28 }
  0xd7   : > { %v5171_v23 = vpop.f32.mrf.mxu3  ;;  %v3994_v30 = vpop.eup %3993  ;;  %1711 = vst [vmem:[#allocation2 + $0xa8] sm:$0xff] %v3992_v21  ;;  %4005 = vpow2.f32 %v1671_v11  ;;  %v1682_v52 = vmul.f32 %v5168_v20, %v5118_v8  ;;  %vm376_vm7 = vcmp.gt.f32.partialorder %v5166_v13, 20.0 }
  0xd8   : > { %v3996_v25 = vpop.eup %3995  ;;  %1744 = vst [vmem:[#allocation2 + $0xa0] sm:$0xff] %v3994_v30  ;;  %4007 = vpow2.f32 %v1704_v15  ;;  %v5178_v31 = vpop.f32.mrf.mxu1 }
  0xd9   : > { %v3998_v26 = vpop.eup %3997  ;;  %1516 = vst [vmem:[#allocation2] sm:$0xff] %v3996_v25  ;;  %4009 = vpow2.f32 %v1737_v18  ;;  %v1650_v43 = vmul.f32 %v5178_v31, %v5175_v28 }
  0xda   : > { %v4000_v32 = vpop.eup %3999  ;;  %1547 = vst [vmem:[#allocation2 + $0x68] sm:$0xff] %v3998_v26  ;;  %4011 = vlog2.f32 %v403_v22  ;;  %v1715_v26 = vmul.f32 %v5171_v23, %v5118_v8 }
  0xdb   : > { %v4002_v34 = vpop.eup %4001  ;;  %1580 = vst [vmem:[#allocation2 + $0x88] sm:$0xff] %v4000_v32  ;;  %4013 = vpow2.f32 %v383_v5 }
  0xdc   : > { %v4004_v35 = vpop.eup %4003  ;;  %1613 = vst [vmem:[#allocation2 + $0xf0] sm:$0xff] %v4002_v34 }
  0xdd   : > { %v4006_v33 = vpop.eup %4005  ;;  %1646 = vst [vmem:[#allocation2 + $0x58] sm:$0xff] %v4004_v35  ;;  %v5182_v39 = vpop.f32.mrf.mxu0 }
  0xde   : > { %v5184_v37 = vpop.f32.mrf.mxu2  ;;  %v4008_v47 = vpop.eup %4007  ;;  %1679 = vst [vmem:[#allocation2 + $0x90] sm:$0xff] %v4006_v33 }
  0xdf   : > { %v4010_v55 = vpop.eup %4009  ;;  %1712 = vst [vmem:[#allocation2 + $0xd0] sm:$0xff] %v4008_v47  ;;  %v5193_v58 = vpop.f32.mrf.mxu3 }
  0xe0   : > { %v4012_v57 = vpop.eup %4011  ;;  %1745 = vst [vmem:[#allocation2 + $0xf8] sm:$0xff] %v4010_v55  ;;  %v5200_v7 = vpop.f32.mrf.mxu1 }
  0xe1   : > { %v4014_v62 = vpop.eup %4013  ;;  %1524 = vst [vmem:[#allocation3 + $0xc8] sm:$0xff] %v1520_v42  ;;  %v405_v63 = vmul.f32 0.6931472, %v4012_v57 }
  0xe2   : > { %1556 = vst [vmem:[#allocation3 + $0x90] sm:$0xff] %v1551_v38  ;;  %v412_v3 = vadd.f32 1.0, %v4014_v62  ;;  %v415_v46 = vmul.f32 -0.5, %v4014_v62  ;;  %v418_v34 = vand.u32 2147483647, %v4014_v62 }
  0xe3   : > { %v411_v36 = vsel %vm410_vm4, %v408_v1, %v405_v63  ;;  %1589 = vst [vmem:[#allocation3 + $0xb0] sm:$0xff] %v1584_v56  ;;  %v4052_v63 = vld [vmem:[%s4370_s22 + $0x18] sm:$0xff] }
  0xe4   : > { %v423_v9 = vsel %vm375_vm5, %v5068_v48, %v411_v36  ;;  %4015 = vlog2.f32 %v412_v3  ;;  %v416_v41 = vadd.f32 1.0, %v415_v46  ;;  %1621 = vst [vmem:[#allocation3 + $0xe0] sm:$0xff] %v1616_v40  ;;  %vm419_vm6 = vcmp.lt.f32.partialorder %v418_v34, 0.0004427343 }
  0xe5   : > { %v5206_v11 = vmul.f32 %v4051_v10, %v423_v9  ;;  %v1505_v14 = vmul.f32 %v5075_v51, %v423_v9  ;;  %v1535_v15 = vmul.f32 %v5080_v53, %v423_v9  ;;  %v1568_v17 = vmul.f32 %v5085_v54, %v423_v9  ;;  %1654 = vst [vmem:[#allocation3 + $0x10] sm:$0xff] %v1649_v45  ;;  %v5211_v18 = vpop.f32.mrf.mxu0 }
  0xe6   : > { %v1601_v48 = vmul.f32 %v5090_v59, %v423_v9  ;;  %v1634_v19 = vmul.f32 %v5095_v60, %v423_v9  ;;  %v1667_v21 = vmul.f32 %v5100_v61, %v423_v9  ;;  %v1700_v20 = vmul.f32 %v5106_v0, %v423_v9  ;;  %1622 = vst [vmem:[#allocation3 + $0x60] sm:$0xff] %v1617_v4  ;;  %v5217_v22 = vpop.f32.mrf.mxu2 }
  0xe7   : > { %v1511_v30 = vmul.f32 1.442695, %v1505_v14  ;;  %v1541_v5 = vmul.f32 1.442695, %v1535_v15  ;;  %v1574_v25 = vmul.f32 1.442695, %v1568_v17  ;;  %v1733_v29 = vmul.f32 %v5111_v2, %v423_v9  ;;  %v5224_v35 = vpop.f32.mrf.mxu3 }
  0xe8   : > { %v1607_v27 = vmul.f32 1.442695, %v1601_v48  ;;  %v1521_v32 = vmul.f32 %v5070_v49, %v5206_v11  ;;  %v1640_v33 = vmul.f32 1.442695, %v1634_v19  ;;  %v1673_v42 = vmul.f32 1.442695, %v1667_v21  ;;  %v5234_v57 = vpop.f32.mrf.mxu1 }
  0xe9   : > { %4017 = vpow2.f32 %v1511_v30  ;;  %1687 = vst [vmem:[#allocation3 + $0xd8] sm:$0xff] %v1682_v52  ;;  %v1706_v50 = vmul.f32 1.442695, %v1700_v20  ;;  %v1552_v23 = vmul.f32 %v5115_v6, %v5206_v11  ;;  %v1585_v49 = vmul.f32 %v5123_v12, %v5206_v11 }
  0xea   : > { %v4016_v47 = vpop.eup %4015  ;;  %4019 = vpow2.f32 %v1541_v5  ;;  %1525 = vst [vmem:[#allocation3 + $0xe8] sm:$0xff] %v1521_v32  ;;  %v417_v55 = vmul.f32 %v4014_v62, %v416_v41  ;;  %v1618_v56 = vmul.f32 %v5182_v39, %v5206_v11  ;;  %v1739_v31 = vmul.f32 1.442695, %v1733_v29 }
  0xeb   : > { %4021 = vpow2.f32 %v1574_v25  ;;  %v414_v38 = vmul.f32 0.6931472, %v4016_v47  ;;  %1720 = vst [vmem:[#allocation3 + $0x88] sm:$0xff] %v1715_v26 }
  0xec   : > { %4023 = vpow2.f32 %v1607_v27  ;;  %1557 = vst [vmem:[#allocation3 + $0x58] sm:$0xff] %v1552_v23 }
  0xed   : > { %4025 = vpow2.f32 %v1640_v33  ;;  %v420_v6 = vsel %vm419_vm6, %v417_v55, %v414_v38  ;;  %1590 = vst [vmem:[#allocation3 + $0x38] sm:$0xff] %v1585_v49  ;;  %v5237_v12 = vpop.f32.mrf.mxu0  ;;  %v1683_v49 = vmul.f32 %v5184_v37, %v5175_v28  ;;  %v1716_v55 = vmul.f32 %v5193_v58, %v5175_v28 }
  0xee   : > { %4027 = vpow2.f32 %v1673_v42  ;;  %v424_v40 = vsel %vm376_vm7, %v5166_v13, %v420_v6  ;;  %1655 = vst [vmem:[#allocation3 + $0x70] sm:$0xff] %v1650_v43  ;;  %v5240_v62 = vpop.f32.mrf.mxu2  ;;  %v1684_v6 = vmul.f32 %v5217_v22, %v5206_v11  ;;  %v1717_v37 = vmul.f32 %v5224_v35, %v5206_v11 }
  0xef   : > { %v4018_v39 = vpop.eup %4017  ;;  %4029 = vpow2.f32 %v1706_v50  ;;  %v5243_v1 = vmul.f32 %v4052_v63, %v424_v40  ;;  %v1506_v45 = vmul.f32 %v5075_v51, %v424_v40  ;;  %v1536_v3 = vmul.f32 %v5080_v53, %v424_v40  ;;  %1623 = vst [vmem:[#allocation3 + $0x18] sm:$0xff] %v1618_v56  ;;  %v5250_v9 = vpop.f32.mrf.mxu3 }
  0xf0   : > { %v4020_v46 = vpop.eup %4019  ;;  %1517 = vst [vmem:[#allocation2 + $0xd8] sm:$0xff] %v4018_v39  ;;  %4031 = vpow2.f32 %v1739_v31  ;;  %v1569_v4 = vmul.f32 %v5085_v54, %v424_v40  ;;  %v1602_v13 = vmul.f32 %v5090_v59, %v424_v40  ;;  %v1635_v36 = vmul.f32 %v5095_v60, %v424_v40  ;;  %v5255_v60 = vpop.f32.mrf.mxu1 }
  0xf1   : > { %v4022_v41 = vpop.eup %4021  ;;  %1548 = vst [vmem:[#allocation2 + $0x30] sm:$0xff] %v4020_v46  ;;  %v1513_v52 = vmul.f32 1.442695, %v1506_v45  ;;  %v1543_v10 = vmul.f32 1.442695, %v1536_v3  ;;  %v1668_v51 = vmul.f32 %v5100_v61, %v424_v40  ;;  %v1701_v53 = vmul.f32 %v5106_v0, %v424_v40 }
  0xf2   : > { %v4024_v14 = vpop.eup %4023  ;;  %1581 = vst [vmem:[#allocation2 + $0xe8] sm:$0xff] %v4022_v41  ;;  %v1576_v15 = vmul.f32 1.442695, %v1569_v4  ;;  %v1609_v17 = vmul.f32 1.442695, %v1602_v13  ;;  %v1734_v54 = vmul.f32 %v5111_v2, %v424_v40  ;;  %v1522_v61 = vmul.f32 %v5128_v16, %v5243_v1 }
  0xf3   : > { %v4026_v48 = vpop.eup %4025  ;;  %1614 = vst [vmem:[#allocation2 + $0x8] sm:$0xff] %v4024_v14  ;;  %4033 = vpow2.f32 %v1513_v52  ;;  %v1642_v59 = vmul.f32 1.442695, %v1635_v36  ;;  %v1675_v21 = vmul.f32 1.442695, %v1668_v51  ;;  %v1553_v2 = vmul.f32 %v5148_v44, %v5243_v1 }
  0xf4   : > { %v4028_v19 = vpop.eup %4027  ;;  %1647 = vst [vmem:[#allocation2 + $0x40] sm:$0xff] %v4026_v48  ;;  %4035 = vpow2.f32 %v1543_v10  ;;  %v1708_v20 = vmul.f32 1.442695, %v1701_v53  ;;  %v1741_v25 = vmul.f32 1.442695, %v1734_v54  ;;  %v1586_v47 = vmul.f32 %v5154_v24, %v5243_v1 }
  0xf5   : > { %v4030_v0 = vpop.eup %4029  ;;  %1680 = vst [vmem:[#allocation2 + $0x70] sm:$0xff] %v4028_v19  ;;  %4037 = vpow2.f32 %v1576_v15  ;;  %v957_v30 = vpop.f32.mrf.mxu0  ;;  %v1651_v31 = vmul.f32 %v5200_v7, %v5206_v11  ;;  %v1619_v24 = vmul.f32 %v5211_v18, %v5243_v1  ;;  %v1652_v58 = vmul.f32 %v5234_v57, %v5243_v1 }
  0xf6   : > { %v4032_v5 = vpop.eup %4031  ;;  %1713 = vst [vmem:[#allocation2 + $0x10] sm:$0xff] %v4030_v0  ;;  %4039 = vpow2.f32 %v1609_v17  ;;  %v1377_v26 = vpop.f32.mrf.mxu2  ;;  %v1685_v7 = vmul.f32 %v5240_v62, %v5243_v1  ;;  %v1718_v18 = vmul.f32 %v5250_v9, %v5243_v1  ;;  %v1748_v22 = vmul.f32 %v5237_v12, %v5118_v8 }
  0xf7   : > { %1746 = vst [vmem:[#allocation2 + $0x20] sm:$0xff] %v4032_v5  ;;  %4041 = vpow2.f32 %v1642_v59  ;;  %v1396_v27 = vpop.f32.mrf.mxu3  ;;  %v1749_v35 = vmul.f32 %v957_v30, %v5175_v28 }
  0xf8   : > { %4043 = vpow2.f32 %v1675_v21  ;;  %1526 = vst [vmem:[#allocation3 + $0x78] sm:$0xff] %v1522_v61  ;;  %v1360_v44 = vpop.f32.mrf.mxu1 }
  0xf9   : > { %v4034_v29 = vpop.eup %4033  ;;  %4045 = vpow2.f32 %v1708_v20  ;;  %1558 = vst [vmem:[#allocation3 + $0xa8] sm:$0xff] %v1553_v2 }
  0xfa   : > { %v4036_v16 = vpop.eup %4035  ;;  %1518 = vst [vmem:[#allocation2 + $0x18] sm:$0xff] %v4034_v29  ;;  %4047 = vpow2.f32 %v1741_v25 }
  0xfb   : > { %v4038_v32 = vpop.eup %4037  ;;  %1549 = vst [vmem:[#allocation2 + $0x48] sm:$0xff] %v4036_v16 }
  0xfc   : > { %v4040_v34 = vpop.eup %4039  ;;  %1582 = vst [vmem:[#allocation2 + $0xb8] sm:$0xff] %v4038_v32 }
  0xfd   : > { %v4042_v33 = vpop.eup %4041  ;;  %1615 = vst [vmem:[#allocation2 + $0x78] sm:$0xff] %v4040_v34  ;;  %v960_v42 = vpop.f32.mrf.mxu0 }
  0xfe   : > { %v4044_v43 = vpop.eup %4043  ;;  %1648 = vst [vmem:[#allocation2 + $0xc8] sm:$0xff] %v4042_v33  ;;  %v1379_v50 = vpop.f32.mrf.mxu2  ;;  %v1750_v3 = vmul.f32 %v960_v42, %v5206_v11 }
  0xff   : > { %v4046_v23 = vpop.eup %4045  ;;  %1681 = vst [vmem:[#allocation2 + $0xc0] sm:$0xff] %v4044_v43  ;;  %v1398_v56 = vpop.f32.mrf.mxu3 }
 0x100   : > { %v4048_v38 = vpop.eup %4047  ;;  %1714 = vst [vmem:[#allocation2 + $0x28] sm:$0xff] %v4046_v23  ;;  %v1363_v40 = vpop.f32.mrf.mxu1 }
 0x101   : > { %1747 = vst [vmem:[#allocation2 + $0x98] sm:$0xff] %v4048_v38 }
 0x102   : > { %1591 = vst [vmem:[#allocation3 + $0x40] sm:$0xff] %v1586_v47 }
 0x103   : > { %1688 = vst [vmem:[#allocation3 + $0x30] sm:$0xff] %v1683_v49 }
 0x104   : > { %1721 = vst [vmem:[#allocation3 + $0x48] sm:$0xff] %v1716_v55 }
 0x105   : > { %1656 = vst [vmem:[#allocation3 + $0x50] sm:$0xff] %v1651_v31  ;;  %v962_v39 = vpop.f32.mrf.mxu0 }
 0x106   : > { %1624 = vst [vmem:[#allocation3 + $0x68] sm:$0xff] %v1619_v24  ;;  %v1382_v63 = vpop.f32.mrf.mxu2  ;;  %v1751_v8 = vmul.f32 %v962_v39, %v5243_v1 }
 0x107   : > { %1689 = vst [vmem:[#allocation3 + $0x20] sm:$0xff] %v1684_v6  ;;  %v1401_v45 = vpop.f32.mrf.mxu3 }
 0x108   : > { %1722 = vst [vmem:[#allocation3 + $0xf8] sm:$0xff] %v1717_v37  ;;  %v1365_v57 = vpop.f32.mrf.mxu1 }
 0x109   : > { %1657 = vst [vmem:[#allocation3 + $0xa0] sm:$0xff] %v1652_v58 }
 0x10a   : > { %1690 = vst [vmem:[#allocation3 + $0xf0] sm:$0xff] %v1685_v7 }
 0x10b   : > { %1723 = vst [vmem:[#allocation3 + $0xc0] sm:$0xff] %v1718_v18 }
 0x10c   : > { %1753 = vst [vmem:[#allocation3 + $0xb8] sm:$0xff] %v1748_v22 }
 0x10d   : > { %1527 = vst [vmem:[#allocation4 + $0xb0] sm:$0xff] %v5255_v60  ;;  %v1415_v62 = vpop.f32.mrf.mxu0 }
 0x10e   : > { %1754 = vst [vmem:[#allocation3] sm:$0xff] %v1749_v35  ;;  %v1384_v46 = vpop.f32.mrf.mxu2 }
 0x10f   : > { %1528 = vst [vmem:[#allocation4 + $0xb8] sm:$0xff] %v1360_v44  ;;  %v1403_v4 = vpop.f32.mrf.mxu3 }
 0x110   : > { %1560 = vst [vmem:[#allocation4 + $0x28] sm:$0xff] %v1377_v26  ;;  %v1434_v12 = vpop.f32.mrf.mxu1 }
 0x111   : > { %1593 = vst [vmem:[#allocation4 + $0x58] sm:$0xff] %v1396_v27 }
 0x112   : > { %1755 = vst [vmem:[#allocation3 + $0x28] sm:$0xff] %v1750_v3 }
 0x113   : > { %1529 = vst [vmem:[#allocation4 + $0xc0] sm:$0xff] %v1363_v40 }
 0x114   : > { %1561 = vst [vmem:[#allocation4 + $0x30] sm:$0xff] %v1379_v50 }
 0x115   : > { %1594 = vst [vmem:[#allocation4] sm:$0xff] %v1398_v56  ;;  %v1417_v28 = vpop.f32.mrf.mxu0 }
 0x116   : > { %1756 = vst [vmem:[#allocation3 + $0x98] sm:$0xff] %v1751_v8  ;;  %v1453_v13 = vpop.f32.mrf.mxu2 }
 0x117   : > { %1530 = vst [vmem:[#allocation4 + $0x10] sm:$0xff] %v1365_v57  ;;  %v1472_v36 = vpop.f32.mrf.mxu3 }
 0x118   : > { %1562 = vst [vmem:[#allocation4 + $0xd0] sm:$0xff] %v1382_v63  ;;  %v1436_v11 = vpop.f32.mrf.mxu1 }
 0x119   : > { %1595 = vst [vmem:[#allocation4 + $0x48] sm:$0xff] %v1401_v45 }
 0x11a   : > { %1626 = vst [vmem:[#allocation4 + $0x78] sm:$0xff] %v1415_v62 }
 0x11b   : > { %1563 = vst [vmem:[#allocation4 + $0x68] sm:$0xff] %v1384_v46 }
 0x11c   : > { %1596 = vst [vmem:[#allocation4 + $0x40] sm:$0xff] %v1403_v4 }
 0x11d   : > { %1659 = vst [vmem:[#allocation4 + $0xa0] sm:$0xff] %v1434_v12  ;;  %v1420_v9 = vpop.f32.mrf.mxu0 }
 0x11e   : > { %1627 = vst [vmem:[#allocation4 + $0xd8] sm:$0xff] %v1417_v28  ;;  %v1455_v41 = vpop.f32.mrf.mxu2 }
 0x11f   : > { %1660 = vst [vmem:[#allocation4 + $0x18] sm:$0xff] %v1436_v11  ;;  %v1474_v1 = vpop.f32.mrf.mxu3 }
 0x120   : > { %1692 = vst [vmem:[#allocation4 + $0x90] sm:$0xff] %v1453_v13  ;;  %v1439_v52 = vpop.f32.mrf.mxu1 }
 0x121   : > { %1725 = vst [vmem:[#allocation4 + $0xa8] sm:$0xff] %v1472_v36 }
 0x122   : > { %1628 = vst [vmem:[#allocation4 + $0xe0] sm:$0xff] %v1420_v9 }
 0x123   : > { %1693 = vst [vmem:[#allocation4 + $0x20] sm:$0xff] %v1455_v41 }
 0x124   : > { %1661 = vst [vmem:[#allocation4 + $0xf8] sm:$0xff] %v1439_v52 }
 0x125   : > { %1726 = vst [vmem:[#allocation4 + $0xf0] sm:$0xff] %v1474_v1  ;;  %v1422_v10 = vpop.f32.mrf.mxu0 }
 0x126   : > { %1629 = vst [vmem:[#allocation4 + $0x80] sm:$0xff] %v1422_v10  ;;  %v1458_v51 = vpop.f32.mrf.mxu2 }
 0x127   : > { %1694 = vst [vmem:[#allocation4 + $0x38] sm:$0xff] %v1458_v51  ;;  %v1477_v53 = vpop.f32.mrf.mxu3 }
 0x128   : > { %1727 = vst [vmem:[#allocation4 + $0x50] sm:$0xff] %v1477_v53  ;;  %v1441_v14 = vpop.f32.mrf.mxu1 }
 0x129   : > { %1662 = vst [vmem:[#allocation4 + $0xe8] sm:$0xff] %v1441_v14 }
 0x12d   : > { %v1491_v15 = vpop.f32.mrf.mxu0 }
 0x12e   : > { %1758 = vst [vmem:[#allocation4 + $0xc8] sm:$0xff] %v1491_v15  ;;  %v1460_v17 = vpop.f32.mrf.mxu2 }
 0x12f   : > { %1695 = vst [vmem:[#allocation4 + $0x70] sm:$0xff] %v1460_v17  ;;  %v1479_v54 = vpop.f32.mrf.mxu3 }
 0x130   : > { %1728 = vst [vmem:[#allocation4 + $0x88] sm:$0xff] %v1479_v54  ;;  %v1496_v48 = vpop.f32.mrf.mxu1 }
 0x131   : > { %1760 = vst [vmem:[#allocation4 + $0x60] sm:$0xff] %v1496_v48 }
 0x135   : > { %v1493_v59 = vpop.f32.mrf.mxu0  ;;  %1765 = sbr.rel (%p3774_p7) target bundleno = 316 (0x13c), region = 52 }
 0x136   : > { %1759 = vst [vmem:[#allocation4 + $0x98] sm:$0xff] %v1493_v59 }
 0x138   : > { %v1498_v60 = vpop.f32.mrf.mxu1 }
 0x139   : > { %1761 = vst [vmem:[#allocation4 + $0x8] sm:$0xff] %v1498_v60 }
 0x13a   : > { %v4095_v19 = vmov 0.0  }
 0x13b   : > { %1766 = vst [vmem:[#allocation5] sm:$0xff] %v4095_v19 }
 0x13c PF: > { %v1769_v21 = vld [vmem:[#allocation2 + $0xb0] sm:$0xff]  ;;  %v1771_v0 = vld [vmem:[#allocation2 + $0x80] sm:$0xff]  ;;  %v5288_v30 = vld [vmem:[#allocation2 + $0x38] sm:$0xff]  ;;  %vm1818_vm8 = vcmask 1040384   ;;  %vm1907_vm9 = vcmask 1041408   ;;  %vm1996_vm10 = vcmask 1043456  }
 0x13d   : > { %v1770_v61 = vld [vmem:[#allocation2 + $0x50] sm:$0xff]  ;;  %v1772_v20 = vld [vmem:[#allocation2 + $0x60] sm:$0xff]  ;;  %v1802_v2 = vrot.slane %v1769_v21, 7  ;;  %v5292_v25 = vld [vmem:[#allocation2 + $0xa8] sm:$0xff]  ;;  %v1804_v27 = vrot.slane %v1771_v0, 7  ;;  %v1806_v32 = vrot.slane %v5288_v30, 7 }
 0x13e   : > { %v5290_v5 = vld [vmem:[#allocation2 + $0xe0] sm:$0xff]  ;;  %v1803_v26 = vrot.slane %v1770_v61, 7  ;;  %v1805_v29 = vrot.slane %v1772_v20, 7  ;;  %v1808_v34 = vrot.slane %v5292_v25, 7  ;;  %v1778_v42 = vld [vmem:[#allocation3 + $0x8] sm:$0xff]  ;;  %v1779_v43 = vld [vmem:[#allocation3 + $0xd0] sm:$0xff] }
 0x13f   : > { %v1776_v16 = vld [vmem:[#allocation2 + $0xa0] sm:$0xff]  ;;  %v1807_v44 = vrot.slane %v5290_v5, 7  ;;  %v1819_v50 = vsel %vm1818_vm8, 1.0, %v1802_v2  ;;  %v1781_v38 = vld [vmem:[#allocation3 + $0x10] sm:$0xff]  ;;  %v1782_v55 = vld [vmem:[#allocation3 + $0xd8] sm:$0xff]  ;;  %v1821_v56 = vsel %vm1818_vm8, 1.0, %v1804_v27 }
 0x140   : > { %v1777_v33 = vld [vmem:[#allocation3 + $0x80] sm:$0xff]  ;;  %v1809_v47 = vrot.slane %v1776_v16, 7  ;;  %v1820_v23 = vsel %vm1818_vm8, 1.0, %v1803_v26  ;;  %v1822_v31 = vsel %vm1818_vm8, 1.0, %v1805_v29  ;;  %v1823_v24 = vsel %vm1818_vm8, 1.0, %v1806_v32  ;;  %v1783_v40 = vld [vmem:[#allocation3 + $0x88] sm:$0xff] }
 0x141   : > { %v1780_v49 = vld [vmem:[#allocation3 + $0xe0] sm:$0xff]  ;;  %v5302_v6 = vmul.f32 %v1819_v50, %v1769_v21  ;;  %v1784_v37 = vld [vmem:[#allocation3 + $0xb8] sm:$0xff]  ;;  %v1824_v58 = vsel %vm1818_vm8, 1.0, %v1807_v44  ;;  %v1825_v39 = vsel %vm1818_vm8, 1.0, %v1808_v34  ;;  %v5307_v63 = vmul.f32 %v1820_v23, %v1770_v61 }
 0x142   : > { %v1826_v7 = vsel %vm1818_vm8, 1.0, %v1809_v47  ;;  %v1835_v18 = vrot.slane %v1777_v33, 7  ;;  %v1836_v22 = vrot.slane %v1778_v42, 7  ;;  %v1837_v45 = vrot.slane %v1779_v43, 7 }
 0x143   : > { %v5309_v35 = vmul.f32 %v1821_v56, %v1771_v0  ;;  %v1838_v57 = vrot.slane %v1780_v49, 7  ;;  %v1839_v62 = vrot.slane %v1781_v38, 7  ;;  %v1840_v3 = vrot.slane %v1782_v55, 7 }
 0x144   : > { %v5311_v46 = vmul.f32 %v1822_v31, %v1772_v20  ;;  %v1841_v4 = vrot.slane %v1783_v40, 7  ;;  %v1842_v8 = vrot.slane %v1784_v37, 7  ;;  %v1851_v12 = vsel %vm1818_vm8, 0.0, %v1835_v18 }
 0x145   : > { %v1852_v28 = vsel %vm1818_vm8, 0.0, %v1836_v22  ;;  %v1853_v13 = vsel %vm1818_vm8, 0.0, %v1837_v45  ;;  %v1854_v36 = vsel %vm1818_vm8, 0.0, %v1838_v57  ;;  %v1855_v11 = vsel %vm1818_vm8, 0.0, %v1839_v62 }
 0x146   : > { %v1856_v9 = vsel %vm1818_vm8, 0.0, %v1840_v3  ;;  %v1857_v41 = vsel %vm1818_vm8, 0.0, %v1841_v4  ;;  %v1858_v1 = vsel %vm1818_vm8, 0.0, %v1842_v8  ;;  %v1859_v52 = vmul.f32 %v1851_v12, %v1769_v21 }
 0x147   : > { %v1860_v10 = vmul.f32 %v1852_v28, %v1770_v61  ;;  %v1861_v51 = vmul.f32 %v1853_v13, %v1771_v0  ;;  %v1862_v53 = vmul.f32 %v1854_v36, %v1772_v20  ;;  %v1863_v14 = vmul.f32 %v1855_v11, %v5288_v30 }
 0x148   : > { %v1864_v15 = vmul.f32 %v1856_v9, %v5290_v5  ;;  %v1865_v17 = vmul.f32 %v1857_v41, %v5292_v25  ;;  %v1866_v54 = vmul.f32 %v1858_v1, %v1776_v16  ;;  %v1867_v48 = vadd.f32 %v1859_v52, %v1777_v33 }
 0x149   : > { %v1868_v59 = vadd.f32 %v1860_v10, %v1778_v42  ;;  %v1869_v60 = vadd.f32 %v1861_v51, %v1779_v43  ;;  %v1870_v19 = vadd.f32 %v1862_v53, %v1780_v49  ;;  %v1871_v2 = vadd.f32 %v1863_v14, %v1781_v38 }
 0x14a   : > { %v1872_v26 = vadd.f32 %v1864_v15, %v1782_v55  ;;  %v1873_v27 = vadd.f32 %v1865_v17, %v1783_v40  ;;  %v1874_v29 = vadd.f32 %v1866_v54, %v1784_v37  ;;  %v1879_v21 = vmul.f32 %v1823_v24, %v5288_v30 }
 0x14b   : > { %v1880_v61 = vmul.f32 %v1824_v58, %v5290_v5  ;;  %v1881_v0 = vmul.f32 %v1825_v39, %v5292_v25  ;;  %v1882_v20 = vmul.f32 %v1826_v7, %v1776_v16  ;;  %v1891_v32 = vrot.slane %v5302_v6, 6 }
 0x14c   : > { %v1892_v44 = vrot.slane %v5307_v63, 6  ;;  %v1893_v34 = vrot.slane %v5309_v35, 6  ;;  %v1894_v33 = vrot.slane %v5311_v46, 6  ;;  %v1895_v42 = vrot.slane %v1879_v21, 6 }
 0x14d   : > { %v1896_v43 = vrot.slane %v1880_v61, 6  ;;  %v1897_v47 = vrot.slane %v1881_v0, 6  ;;  %v1898_v50 = vrot.slane %v1882_v20, 6  ;;  %v1908_v23 = vsel %vm1907_vm9, 1.0, %v1891_v32 }
 0x14e   : > { %v1909_v30 = vsel %vm1907_vm9, 1.0, %v1892_v44  ;;  %v1910_v5 = vsel %vm1907_vm9, 1.0, %v1893_v34  ;;  %v1911_v25 = vsel %vm1907_vm9, 1.0, %v1894_v33  ;;  %v1912_v16 = vsel %vm1907_vm9, 1.0, %v1895_v42 }
 0x14f   : > { %v1913_v49 = vsel %vm1907_vm9, 1.0, %v1896_v43  ;;  %v1914_v38 = vsel %vm1907_vm9, 1.0, %v1897_v47  ;;  %v1915_v55 = vsel %vm1907_vm9, 1.0, %v1898_v50  ;;  %v1924_v56 = vrot.slane %v1867_v48, 6 }
 0x150   : > { %v1925_v31 = vrot.slane %v1868_v59, 6  ;;  %v1926_v24 = vrot.slane %v1869_v60, 6  ;;  %v1927_v40 = vrot.slane %v1870_v19, 6  ;;  %v1928_v37 = vrot.slane %v1871_v2, 6 }
 0x151   : > { %v1929_v58 = vrot.slane %v1872_v26, 6  ;;  %v1930_v39 = vrot.slane %v1873_v27, 6  ;;  %v1931_v7 = vrot.slane %v1874_v29, 6  ;;  %v1940_v18 = vsel %vm1907_vm9, 0.0, %v1924_v56 }
 0x152   : > { %v1941_v22 = vsel %vm1907_vm9, 0.0, %v1925_v31  ;;  %v1942_v45 = vsel %vm1907_vm9, 0.0, %v1926_v24  ;;  %v1943_v57 = vsel %vm1907_vm9, 0.0, %v1927_v40  ;;  %v1944_v62 = vsel %vm1907_vm9, 0.0, %v1928_v37 }
 0x153   : > { %v1945_v3 = vsel %vm1907_vm9, 0.0, %v1929_v58  ;;  %v1946_v4 = vsel %vm1907_vm9, 0.0, %v1930_v39  ;;  %v1947_v8 = vsel %vm1907_vm9, 0.0, %v1931_v7  ;;  %v1948_v12 = vmul.f32 %v1940_v18, %v5302_v6 }
 0x154   : > { %v1949_v28 = vmul.f32 %v1941_v22, %v5307_v63  ;;  %v1950_v13 = vmul.f32 %v1942_v45, %v5309_v35  ;;  %v1951_v36 = vmul.f32 %v1943_v57, %v5311_v46  ;;  %v1952_v11 = vmul.f32 %v1944_v62, %v1879_v21 }
 0x155   : > { %v1953_v9 = vmul.f32 %v1945_v3, %v1880_v61  ;;  %v1954_v41 = vmul.f32 %v1946_v4, %v1881_v0  ;;  %v1955_v1 = vmul.f32 %v1947_v8, %v1882_v20  ;;  %v1956_v52 = vadd.f32 %v1948_v12, %v1867_v48 }
 0x156   : > { %v1957_v10 = vadd.f32 %v1949_v28, %v1868_v59  ;;  %v1958_v51 = vadd.f32 %v1950_v13, %v1869_v60  ;;  %v1959_v53 = vadd.f32 %v1951_v36, %v1870_v19  ;;  %v1960_v14 = vadd.f32 %v1952_v11, %v1871_v2  ;;  %v1768_v13 = vld [vmem:[#allocation5] sm:$0xff] }
 0x157   : > { %v1961_v15 = vadd.f32 %v1953_v9, %v1872_v26  ;;  %v1962_v17 = vadd.f32 %v1954_v41, %v1873_v27  ;;  %v1963_v54 = vadd.f32 %v1955_v1, %v1874_v29  ;;  %v1964_v32 = vmul.f32 %v1908_v23, %v5302_v6 }
 0x158   : > { %v1965_v44 = vmul.f32 %v1909_v30, %v5307_v63  ;;  %v1966_v34 = vmul.f32 %v1910_v5, %v5309_v35  ;;  %v1967_v33 = vmul.f32 %v1911_v25, %v5311_v46  ;;  %v1968_v42 = vmul.f32 %v1912_v16, %v1879_v21 }
 0x159   : > { %v1969_v43 = vmul.f32 %v1913_v49, %v1880_v61  ;;  %v1970_v47 = vmul.f32 %v1914_v38, %v1881_v0  ;;  %v1971_v50 = vmul.f32 %v1915_v55, %v1882_v20  ;;  %v1980_v48 = vrot.slane %v1964_v32, 4 }
 0x15a   : > { %v1981_v59 = vrot.slane %v1965_v44, 4  ;;  %v1982_v60 = vrot.slane %v1966_v34, 4  ;;  %v1983_v19 = vrot.slane %v1967_v33, 4  ;;  %v1984_v2 = vrot.slane %v1968_v42, 4 }
 0x15b   : > { %v1985_v26 = vrot.slane %v1969_v43, 4  ;;  %v1986_v27 = vrot.slane %v1970_v47, 4  ;;  %v1987_v29 = vrot.slane %v1971_v50, 4  ;;  %v1997_v6 = vsel %vm1996_vm10, 1.0, %v1980_v48 }
 0x15c   : > { %v1998_v63 = vsel %vm1996_vm10, 1.0, %v1981_v59  ;;  %v1999_v35 = vsel %vm1996_vm10, 1.0, %v1982_v60  ;;  %v2000_v46 = vsel %vm1996_vm10, 1.0, %v1983_v19  ;;  %v2001_v21 = vsel %vm1996_vm10, 1.0, %v1984_v2 }
 0x15d   : > { %v2002_v61 = vsel %vm1996_vm10, 1.0, %v1985_v26  ;;  %v2003_v0 = vsel %vm1996_vm10, 1.0, %v1986_v27  ;;  %v2004_v20 = vsel %vm1996_vm10, 1.0, %v1987_v29  ;;  %v2013_v23 = vrot.slane %v1956_v52, 4 }
 0x15e   : > { %v2014_v30 = vrot.slane %v1957_v10, 4  ;;  %v2015_v5 = vrot.slane %v1958_v51, 4  ;;  %v2016_v25 = vrot.slane %v1959_v53, 4  ;;  %v2017_v16 = vrot.slane %v1960_v14, 4 }
 0x15f   : > { %v2018_v49 = vrot.slane %v1961_v15, 4  ;;  %v2019_v38 = vrot.slane %v1962_v17, 4  ;;  %v2020_v55 = vrot.slane %v1963_v54, 4  ;;  %v2029_v56 = vsel %vm1996_vm10, 0.0, %v2013_v23 }
 0x160   : > { %v2030_v31 = vsel %vm1996_vm10, 0.0, %v2014_v30  ;;  %v2031_v24 = vsel %vm1996_vm10, 0.0, %v2015_v5  ;;  %v2032_v40 = vsel %vm1996_vm10, 0.0, %v2016_v25  ;;  %v2033_v37 = vsel %vm1996_vm10, 0.0, %v2017_v16 }
 0x161   : > { %v2034_v58 = vsel %vm1996_vm10, 0.0, %v2018_v49  ;;  %v2035_v39 = vsel %vm1996_vm10, 0.0, %v2019_v38  ;;  %v2036_v7 = vsel %vm1996_vm10, 0.0, %v2020_v55  ;;  %v2037_v18 = vmul.f32 %v2029_v56, %v1964_v32  ;;  %v1791_v49 = vld [vmem:[#allocation4 + $0xa8] sm:$0xff] }
 0x162   : > { %v2038_v22 = vmul.f32 %v2030_v31, %v1965_v44  ;;  %v2039_v45 = vmul.f32 %v2031_v24, %v1966_v34  ;;  %v2040_v57 = vmul.f32 %v2032_v40, %v1967_v33  ;;  %v2041_v62 = vmul.f32 %v2033_v37, %v1968_v42  ;;  %v1792_v38 = vld [vmem:[#allocation4 + $0xc8] sm:$0xff]  ;;  %v5380_v40 = vld [vmem:[%s5774_s6] ss:$0 sm:$0xff] }
 0x163   : > { %v2042_v3 = vmul.f32 %v2034_v58, %v1969_v43  ;;  %v2043_v4 = vmul.f32 %v2035_v39, %v1970_v47  ;;  %v2044_v8 = vmul.f32 %v2036_v7, %v1971_v50  ;;  %v2045_v12 = vadd.f32 %v2037_v18, %v1956_v52  ;;  %v1793_v37 = vld [vmem:[%s4370_s22] sm:$0xff] }
 0x164   : > { %v2046_v28 = vadd.f32 %v2038_v22, %v1957_v10  ;;  %v2047_v36 = vadd.f32 %v2039_v45, %v1958_v51  ;;  %v2048_v11 = vadd.f32 %v2040_v57, %v1959_v53  ;;  %v2049_v9 = vadd.f32 %v2041_v62, %v1960_v14  ;;  %v5391_v22 = vld [vmem:[#allocation2] sm:$0xff]  ;;  %v5393_v45 = vld [vmem:[#allocation2 + $0x68] sm:$0xff] }
 0x165   : > { %v2050_v41 = vadd.f32 %v2042_v3, %v1961_v15  ;;  %v2051_v1 = vadd.f32 %v2043_v4, %v1962_v17  ;;  %v2052_v48 = vadd.f32 %v2044_v8, %v1963_v54  ;;  %v2053_v59 = vmul.f32 %v1997_v6, %v1964_v32  ;;  %v5400_v8 = vld [vmem:[#allocation2 + $0x88] sm:$0xff] }
 0x166   : > { %v2054_v60 = vmul.f32 %v1998_v63, %v1965_v44  ;;  %v2055_v19 = vmul.f32 %v1999_v35, %v1966_v34  ;;  %v2056_v2 = vmul.f32 %v2000_v46, %v1967_v33  ;;  %v2057_v26 = vmul.f32 %v2001_v21, %v1968_v42  ;;  %v1785_v34 = vld [vmem:[#allocation4 + $0xb0] sm:$0xff]  ;;  %v1786_v33 = vld [vmem:[#allocation4 + $0x28] sm:$0xff]  ;;  %v1787_v42 = vld [vmem:[#allocation4 + $0x58] sm:$0xff] }
 0x167   : > { %v2058_v27 = vmul.f32 %v2002_v61, %v1969_v43  ;;  %v2059_v29 = vmul.f32 %v2003_v0, %v1970_v47  ;;  %v2060_v23 = vmul.f32 %v2004_v20, %v1971_v50  ;;  %v2062_v30 = vrot.slane %v1768_v13, 1  ;;  %v1788_v63 = vld [vmem:[#allocation4 + $0x78] sm:$0xff]  ;;  %v1789_v35 = vld [vmem:[#allocation4 + $0xa0] sm:$0xff]  ;;  %v1790_v46 = vld [vmem:[#allocation4 + $0x90] sm:$0xff] }
 0x168   : > { %v2063_v5 = vrot.slane %v1768_v13, 2  ;;  %v2064_v25 = vrot.slane %v1768_v13, 3  ;;  %v2065_v52 = vrot.slane %v1768_v13, 4  ;;  %v2066_v10 = vrot.slane %v1768_v13, 5 }
 0x169   : > { %v2067_v16 = vrot.slane %v1768_v13, 6  ;;  %v2068_v51 = vrot.slane %v1768_v13, 7  ;;  %v2069_v53 = vperm.slane %v1768_v13, 0  ;;  %v2070_v14 = vperm.slane %v2062_v30, 0 }
 0x16a   : > { %v2071_v15 = vperm.slane %v2063_v5, 0  ;;  %v2072_v17 = vperm.slane %v2064_v25, 0  ;;  %v2073_v54 = vperm.slane %v2065_v52, 0  ;;  %v2074_v32 = vperm.slane %v2066_v10, 0  ;;  %v2133_v25 = vld [vmem:[#allocation3 + $0x90] sm:$0xff]  ;;  %v2135_v10 = vld [vmem:[#allocation3 + $0x60] sm:$0xff] }
 0x16b   : > { %v2075_v44 = vperm.slane %v2067_v16, 0  ;;  %v2076_v43 = vperm.slane %v2068_v51, 0  ;;  %v2085_v47 = vmul.f32 %v2069_v53, %v2053_v59  ;;  %v2086_v50 = vmul.f32 %v2070_v14, %v2054_v60  ;;  %v2134_v52 = vld [vmem:[#allocation3 + $0xb0] sm:$0xff] }
 0x16c   : > { %v2087_v6 = vmul.f32 %v2071_v15, %v2055_v19  ;;  %v2088_v21 = vmul.f32 %v2072_v17, %v2056_v2  ;;  %v2089_v61 = vmul.f32 %v2073_v54, %v2057_v26  ;;  %v2090_v0 = vmul.f32 %v2074_v32, %v2058_v27  ;;  %v2132_v26 = vld [vmem:[#allocation3 + $0xc8] sm:$0xff]  ;;  %v2136_v14 = vld [vmem:[#allocation3 + $0x70] sm:$0xff] }
 0x16d   : > { %v2091_v20 = vmul.f32 %v2075_v44, %v2059_v29  ;;  %v2092_v55 = vmul.f32 %v2076_v43, %v2060_v23  ;;  %v5371_v56 = vadd.f32 %v2085_v47, %v2045_v12  ;;  %v5373_v31 = vadd.f32 %v2086_v50, %v2046_v28  ;;  %v5402_v12 = vld [vmem:[#allocation2 + $0xf0] sm:$0xff]  ;;  %v5404_v28 = vld [vmem:[#allocation2 + $0x58] sm:$0xff] }
 0x16e   : > { %v5375_v24 = vadd.f32 %v2087_v6, %v2047_v36  ;;  %v5383_v58 = vadd.f32 %v2088_v21, %v2048_v11  ;;  %v5385_v39 = vadd.f32 %v2089_v61, %v2049_v9  ;;  %v5387_v7 = vadd.f32 %v2090_v0, %v2050_v41  ;;  %v5410_v41 = vld [vmem:[#allocation2 + $0x90] sm:$0xff] }
 0x16f   : > { %v5389_v18 = vadd.f32 %v2091_v20, %v2051_v1  ;;  %v5395_v57 = vadd.f32 %v2092_v55, %v2052_v48  ;;  %v2101_v62 = vmul.f32 %v5371_v56, %v1785_v34  ;;  %v2102_v3 = vmul.f32 %v5373_v31, %v1786_v33  ;;  %v5412_v1 = vld [vmem:[#allocation2 + $0xd0] sm:$0xff]  ;;  %v5414_v48 = vld [vmem:[#allocation2 + $0xf8] sm:$0xff]  ;;  %v2138_v33 = vld [vmem:[#allocation3 + $0x48] sm:$0xff] }
 0x170   : > { %v2103_v4 = vmul.f32 %v5375_v24, %v1787_v42  ;;  %v2104_v13 = vmul.f32 %v5383_v58, %v1788_v63  ;;  %v2105_v36 = vmul.f32 %v5385_v39, %v1789_v35  ;;  %v2106_v11 = vmul.f32 %v5387_v7, %v1790_v46  ;;  %v2137_v15 = vld [vmem:[#allocation3 + $0x30] sm:$0xff]  ;;  %v2139_v42 = vld [vmem:[#allocation3] sm:$0xff] }
 0x171   : > { %v2107_v9 = vmul.f32 %v5389_v18, %v1791_v49  ;;  %v2108_v59 = vmul.f32 %v5395_v57, %v1792_v38  ;;  %v2109_v60 = vadd.f32 %v2102_v3, %v2101_v62  ;;  %v2119_v19 = vmul.f32 %v5380_v40, %v1793_v37 }
 0x172   : > { %v2159_v2 = vrot.slane %v5391_v22, 7  ;;  %v2160_v27 = vrot.slane %v5393_v45, 7  ;;  %v2161_v29 = vrot.slane %v5400_v8, 7  ;;  %v2162_v23 = vrot.slane %v5402_v12, 7 }
 0x173   : > { %v2163_v30 = vrot.slane %v5404_v28, 7  ;;  %v2110_v5 = vadd.f32 %v2109_v60, %v2103_v4  ;;  %v2164_v16 = vrot.slane %v5410_v41, 7  ;;  %v2165_v51 = vrot.slane %v5412_v1, 7 }
 0x174   : > { %v2166_v53 = vrot.slane %v5414_v48, 7  ;;  %v2175_v17 = vsel %vm1818_vm8, 1.0, %v2159_v2  ;;  %v2176_v54 = vsel %vm1818_vm8, 1.0, %v2160_v27  ;;  %v2177_v32 = vsel %vm1818_vm8, 1.0, %v2161_v29 }
 0x175   : > { %v2178_v44 = vsel %vm1818_vm8, 1.0, %v2162_v23  ;;  %v2111_v34 = vadd.f32 %v2110_v5, %v2104_v13  ;;  %v2179_v43 = vsel %vm1818_vm8, 1.0, %v2163_v30  ;;  %v2180_v47 = vsel %vm1818_vm8, 1.0, %v2164_v16 }
 0x176   : > { %v2181_v50 = vsel %vm1818_vm8, 1.0, %v2165_v51  ;;  %v2182_v6 = vsel %vm1818_vm8, 1.0, %v2166_v53  ;;  %v2191_v63 = vrot.slane %v2132_v26, 7  ;;  %v2192_v35 = vrot.slane %v2133_v25, 7 }
 0x177   : > { %v2193_v46 = vrot.slane %v2134_v52, 7  ;;  %v2112_v21 = vadd.f32 %v2111_v34, %v2105_v36  ;;  %v2194_v61 = vrot.slane %v2135_v10, 7  ;;  %v2195_v0 = vrot.slane %v2136_v14, 7 }
 0x178   : > { %v2196_v20 = vrot.slane %v2137_v15, 7  ;;  %v2197_v49 = vrot.slane %v2138_v33, 7  ;;  %v2198_v38 = vrot.slane %v2139_v42, 7  ;;  %v2207_v55 = vsel %vm1818_vm8, 0.0, %v2191_v63 }
 0x179   : > { %v2208_v37 = vsel %vm1818_vm8, 0.0, %v2192_v35  ;;  %v2113_v62 = vadd.f32 %v2112_v21, %v2106_v11  ;;  %v2209_v3 = vsel %vm1818_vm8, 0.0, %v2193_v46  ;;  %v2210_v4 = vsel %vm1818_vm8, 0.0, %v2194_v61 }
 0x17a   : > { %v2211_v13 = vsel %vm1818_vm8, 0.0, %v2195_v0  ;;  %v2212_v60 = vsel %vm1818_vm8, 0.0, %v2196_v20  ;;  %v2213_v36 = vsel %vm1818_vm8, 0.0, %v2197_v49  ;;  %v2214_v2 = vsel %vm1818_vm8, 0.0, %v2198_v38 }
 0x17b   : > { %v2215_v27 = vmul.f32 %v2207_v55, %v5391_v22  ;;  %v2114_v29 = vadd.f32 %v2113_v62, %v2107_v9  ;;  %v2216_v23 = vmul.f32 %v2208_v37, %v5393_v45  ;;  %v2217_v30 = vmul.f32 %v2209_v3, %v5400_v8 }
 0x17c   : > { %v2218_v11 = vmul.f32 %v2210_v4, %v5402_v12  ;;  %v2219_v5 = vmul.f32 %v2211_v13, %v5404_v28  ;;  %v2220_v16 = vmul.f32 %v2212_v60, %v5410_v41  ;;  %v2221_v51 = vmul.f32 %v2213_v36, %v5412_v1 }
 0x17d   : > { %v2222_v53 = vmul.f32 %v2214_v2, %v5414_v48  ;;  %v2115_v34 = vadd.f32 %v2114_v29, %v2108_v59  ;;  %v2223_v63 = vadd.f32 %v2215_v27, %v2132_v26  ;;  %v2224_v35 = vadd.f32 %v2216_v23, %v2133_v25 }
 0x17e   : > { %v2225_v46 = vadd.f32 %v2217_v30, %v2134_v52  ;;  %v2226_v9 = vadd.f32 %v2218_v11, %v2135_v10  ;;  %v2227_v21 = vadd.f32 %v2219_v5, %v2136_v14  ;;  %v2228_v61 = vadd.f32 %v2220_v16, %v2137_v15 }
 0x17f   : > { %v2229_v0 = vadd.f32 %v2221_v51, %v2138_v33  ;;  %v2120_v20 = vadd.f32 %v2119_v19, %v2115_v34  ;;  %v2230_v49 = vadd.f32 %v2222_v53, %v2139_v42  ;;  %v2231_v38 = vmul.f32 %v2175_v17, %v5391_v22 }
 0x180   : > { %v2232_v55 = vmul.f32 %v2176_v54, %v5393_v45  ;;  %v2233_v37 = vmul.f32 %v2177_v32, %v5400_v8  ;;  %v2234_v62 = vmul.f32 %v2178_v44, %v5402_v12  ;;  %v2235_v59 = vmul.f32 %v2179_v43, %v5404_v28 }
 0x181   : > { %v2236_v26 = vmul.f32 %v2180_v47, %v5410_v41  ;;  %2121 = vst [vmem:[%s4273_s13] sm:$0xff] %v2120_v20  ;;  %v2237_v25 = vmul.f32 %v2181_v50, %v5412_v1  ;;  %v2238_v52 = vmul.f32 %v2182_v6, %v5414_v48  ;;  %v2247_v10 = vrot.slane %v2231_v38, 6 }
 0x182   : > { %v2248_v19 = vrot.slane %v2232_v55, 6  ;;  %v2249_v14 = vrot.slane %v2233_v37, 6  ;;  %v2250_v15 = vrot.slane %v2234_v62, 6  ;;  %v2251_v22 = vrot.slane %v2235_v59, 6 }
 0x183   : > { %v2252_v17 = vrot.slane %v2236_v26, 6  ;;  %v2253_v45 = vrot.slane %v2237_v25, 6  ;;  %v2254_v54 = vrot.slane %v2238_v52, 6  ;;  %v2263_v8 = vsel %vm1907_vm9, 1.0, %v2247_v10 }
 0x184   : > { %v2264_v12 = vsel %vm1907_vm9, 1.0, %v2248_v19  ;;  %v2265_v28 = vsel %vm1907_vm9, 1.0, %v2249_v14  ;;  %v2266_v41 = vsel %vm1907_vm9, 1.0, %v2250_v15  ;;  %v2267_v1 = vsel %vm1907_vm9, 1.0, %v2251_v22 }
 0x185   : > { %v2268_v48 = vsel %vm1907_vm9, 1.0, %v2252_v17  ;;  %v2269_v32 = vsel %vm1907_vm9, 1.0, %v2253_v45  ;;  %v2270_v44 = vsel %vm1907_vm9, 1.0, %v2254_v54  ;;  %v2279_v33 = vrot.slane %v2223_v63, 6 }
 0x186   : > { %v2280_v42 = vrot.slane %v2224_v35, 6  ;;  %v2281_v43 = vrot.slane %v2225_v46, 6  ;;  %v2282_v47 = vrot.slane %v2226_v9, 6  ;;  %v2283_v50 = vrot.slane %v2227_v21, 6 }
 0x187   : > { %v2284_v6 = vrot.slane %v2228_v61, 6  ;;  %v2285_v3 = vrot.slane %v2229_v0, 6  ;;  %v2286_v4 = vrot.slane %v2230_v49, 6  ;;  %v2295_v13 = vsel %vm1907_vm9, 0.0, %v2279_v33 }
 0x188   : > { %v2296_v60 = vsel %vm1907_vm9, 0.0, %v2280_v42  ;;  %v2297_v36 = vsel %vm1907_vm9, 0.0, %v2281_v43  ;;  %v2298_v2 = vsel %vm1907_vm9, 0.0, %v2282_v47  ;;  %v2299_v27 = vsel %vm1907_vm9, 0.0, %v2283_v50 }
 0x189   : > { %v2300_v29 = vsel %vm1907_vm9, 0.0, %v2284_v6  ;;  %v2301_v23 = vsel %vm1907_vm9, 0.0, %v2285_v3  ;;  %v2302_v30 = vsel %vm1907_vm9, 0.0, %v2286_v4  ;;  %v2303_v11 = vmul.f32 %v2295_v13, %v2231_v38 }
 0x18a   : > { %v2304_v5 = vmul.f32 %v2296_v60, %v2232_v55  ;;  %v2305_v16 = vmul.f32 %v2297_v36, %v2233_v37  ;;  %v2306_v51 = vmul.f32 %v2298_v2, %v2234_v62  ;;  %v2307_v53 = vmul.f32 %v2299_v27, %v2235_v59 }
 0x18b   : > { %v2308_v34 = vmul.f32 %v2300_v29, %v2236_v26  ;;  %v2309_v20 = vmul.f32 %v2301_v23, %v2237_v25  ;;  %v2310_v10 = vmul.f32 %v2302_v30, %v2238_v52  ;;  %v2311_v19 = vadd.f32 %v2303_v11, %v2223_v63 }
 0x18c   : > { %v2312_v14 = vadd.f32 %v2304_v5, %v2224_v35  ;;  %v2313_v15 = vadd.f32 %v2305_v16, %v2225_v46  ;;  %v2314_v22 = vadd.f32 %v2306_v51, %v2226_v9  ;;  %v2315_v17 = vadd.f32 %v2307_v53, %v2227_v21 }
 0x18d   : > { %v2316_v45 = vadd.f32 %v2308_v34, %v2228_v61  ;;  %v2317_v54 = vadd.f32 %v2309_v20, %v2229_v0  ;;  %v2318_v33 = vadd.f32 %v2310_v10, %v2230_v49  ;;  %v2319_v42 = vmul.f32 %v2263_v8, %v2231_v38 }
 0x18e   : > { %v2320_v43 = vmul.f32 %v2264_v12, %v2232_v55  ;;  %v2321_v47 = vmul.f32 %v2265_v28, %v2233_v37  ;;  %v2322_v50 = vmul.f32 %v2266_v41, %v2234_v62  ;;  %v2323_v6 = vmul.f32 %v2267_v1, %v2235_v59 }
 0x18f   : > { %v2324_v3 = vmul.f32 %v2268_v48, %v2236_v26  ;;  %v2325_v4 = vmul.f32 %v2269_v32, %v2237_v25  ;;  %v2326_v13 = vmul.f32 %v2270_v44, %v2238_v52  ;;  %v2335_v60 = vrot.slane %v2319_v42, 4 }
 0x190   : > { %v2336_v36 = vrot.slane %v2320_v43, 4  ;;  %v2337_v2 = vrot.slane %v2321_v47, 4  ;;  %v2338_v27 = vrot.slane %v2322_v50, 4  ;;  %v2339_v63 = vrot.slane %v2323_v6, 4 }
 0x191   : > { %v2340_v35 = vrot.slane %v2324_v3, 4  ;;  %v2341_v46 = vrot.slane %v2325_v4, 4  ;;  %v2342_v9 = vrot.slane %v2326_v13, 4  ;;  %v2351_v21 = vsel %vm1996_vm10, 1.0, %v2335_v60 }
 0x192   : > { %v2352_v61 = vsel %vm1996_vm10, 1.0, %v2336_v36  ;;  %v2353_v0 = vsel %vm1996_vm10, 1.0, %v2337_v2  ;;  %v2354_v49 = vsel %vm1996_vm10, 1.0, %v2338_v27  ;;  %v2355_v38 = vsel %vm1996_vm10, 1.0, %v2339_v63 }
 0x193   : > { %v2356_v55 = vsel %vm1996_vm10, 1.0, %v2340_v35  ;;  %v2357_v37 = vsel %vm1996_vm10, 1.0, %v2341_v46  ;;  %v2358_v62 = vsel %vm1996_vm10, 1.0, %v2342_v9  ;;  %v2367_v59 = vrot.slane %v2311_v19, 4 }
 0x194   : > { %v2368_v26 = vrot.slane %v2312_v14, 4  ;;  %v2369_v25 = vrot.slane %v2313_v15, 4  ;;  %v2370_v52 = vrot.slane %v2314_v22, 4  ;;  %v2371_v8 = vrot.slane %v2315_v17, 4 }
 0x195   : > { %v2372_v12 = vrot.slane %v2316_v45, 4  ;;  %v2373_v28 = vrot.slane %v2317_v54, 4  ;;  %v2374_v41 = vrot.slane %v2318_v33, 4  ;;  %v2383_v1 = vsel %vm1996_vm10, 0.0, %v2367_v59 }
 0x196   : > { %v2384_v48 = vsel %vm1996_vm10, 0.0, %v2368_v26  ;;  %v2385_v32 = vsel %vm1996_vm10, 0.0, %v2369_v25  ;;  %v2386_v44 = vsel %vm1996_vm10, 0.0, %v2370_v52  ;;  %v2387_v29 = vsel %vm1996_vm10, 0.0, %v2371_v8 }
 0x197   : > { %v2388_v23 = vsel %vm1996_vm10, 0.0, %v2372_v12  ;;  %v2389_v30 = vsel %vm1996_vm10, 0.0, %v2373_v28  ;;  %v2390_v11 = vsel %vm1996_vm10, 0.0, %v2374_v41  ;;  %v2391_v5 = vmul.f32 %v2383_v1, %v2319_v42 }
 0x198   : > { %v2392_v16 = vmul.f32 %v2384_v48, %v2320_v43  ;;  %v2393_v51 = vmul.f32 %v2385_v32, %v2321_v47  ;;  %v2394_v53 = vmul.f32 %v2386_v44, %v2322_v50  ;;  %v2395_v34 = vmul.f32 %v2387_v29, %v2323_v6 }
 0x199   : > { %v2396_v20 = vmul.f32 %v2388_v23, %v2324_v3  ;;  %v2397_v10 = vmul.f32 %v2389_v30, %v2325_v4  ;;  %v2398_v60 = vmul.f32 %v2390_v11, %v2326_v13  ;;  %v2399_v36 = vadd.f32 %v2391_v5, %v2311_v19  ;;  %v5520_v23 = vld [vmem:[#allocation2 + $0x30] sm:$0xff]  ;;  %v5522_v30 = vld [vmem:[#allocation2 + $0xe8] sm:$0xff] }
 0x19a   : > { %v2400_v2 = vadd.f32 %v2392_v16, %v2312_v14  ;;  %v2401_v27 = vadd.f32 %v2393_v51, %v2313_v15  ;;  %v2402_v63 = vadd.f32 %v2394_v53, %v2314_v22  ;;  %v2403_v35 = vadd.f32 %v2395_v34, %v2315_v17  ;;  %v2141_v17 = vld [vmem:[#allocation4 + $0xb8] sm:$0xff]  ;;  %v5524_v11 = vld [vmem:[#allocation2 + $0x8] sm:$0xff]  ;;  %v5530_v34 = vld [vmem:[#allocation2 + $0x40] sm:$0xff] }
 0x19b   : > { %v2404_v46 = vadd.f32 %v2396_v20, %v2316_v45  ;;  %v2405_v9 = vadd.f32 %v2397_v10, %v2317_v54  ;;  %v2406_v59 = vadd.f32 %v2398_v60, %v2318_v33  ;;  %v2407_v26 = vmul.f32 %v2351_v21, %v2319_v42  ;;  %v3775_v21 = vld [vmem:[%s4370_s22 + $0x8] sm:$0xff]  ;;  %v5532_v20 = vld [vmem:[#allocation2 + $0x70] sm:$0xff] }
 0x19c   : > { %v2408_v25 = vmul.f32 %v2352_v61, %v2320_v43  ;;  %v2409_v52 = vmul.f32 %v2353_v0, %v2321_v47  ;;  %v2410_v8 = vmul.f32 %v2354_v49, %v2322_v50  ;;  %v2411_v12 = vmul.f32 %v2355_v38, %v2323_v6  ;;  %v2142_v43 = vld [vmem:[#allocation4 + $0x30] sm:$0xff]  ;;  %v2144_v47 = vld [vmem:[#allocation4 + $0xd8] sm:$0xff] }
 0x19d   : > { %v2412_v28 = vmul.f32 %v2356_v55, %v2324_v3  ;;  %v2413_v41 = vmul.f32 %v2357_v37, %v2325_v4  ;;  %v2414_v1 = vmul.f32 %v2358_v62, %v2326_v13  ;;  %v2415_v48 = vperm.slane %v5371_v56, 7  ;;  %v2143_v56 = vld [vmem:[#allocation4] sm:$0xff]  ;;  %v5512_v55 = vld [vmem:[#allocation2 + $0xd8] sm:$0xff]  ;;  %v5534_v10 = vld [vmem:[#allocation2 + $0x10] sm:$0xff] }
 0x19e   : > { %v2416_v32 = vperm.slane %v5373_v31, 7  ;;  %v2417_v19 = vperm.slane %v5375_v24, 7  ;;  %v2418_v14 = vperm.slane %v5383_v58, 7  ;;  %v2419_v15 = vperm.slane %v5385_v39, 7  ;;  %v2145_v58 = vld [vmem:[#allocation4 + $0x18] sm:$0xff]  ;;  %v2146_v3 = vld [vmem:[#allocation4 + $0x20] sm:$0xff] }
 0x19f   : > { %v2420_v22 = vperm.slane %v5387_v7, 7  ;;  %v2421_v45 = vperm.slane %v5389_v18, 7  ;;  %v2422_v54 = vperm.slane %v5395_v57, 7  ;;  %v2423_v33 = vmul.f32 %v2415_v48, %v2407_v26  ;;  %v2147_v39 = vld [vmem:[#allocation4 + $0xf0] sm:$0xff]  ;;  %v2148_v57 = vld [vmem:[#allocation4 + $0x98] sm:$0xff] }
 0x1a0   : > { %v2424_v42 = vmul.f32 %v2416_v32, %v2408_v25  ;;  %v2425_v31 = vmul.f32 %v2417_v19, %v2409_v52  ;;  %v2426_v50 = vmul.f32 %v2418_v14, %v2410_v8  ;;  %v2427_v24 = vmul.f32 %v2419_v15, %v2411_v12  ;;  %v2468_v25 = vld [vmem:[#allocation3 + $0xe8] sm:$0xff]  ;;  %v2469_v52 = vld [vmem:[#allocation3 + $0x58] sm:$0xff]  ;;  %v2472_v48 = vld [vmem:[#allocation3 + $0x50] sm:$0xff] }
 0x1a1   : > { %v2428_v6 = vmul.f32 %v2420_v22, %v2412_v28  ;;  %v2429_v4 = vmul.f32 %v2421_v45, %v2413_v41  ;;  %v2430_v7 = vmul.f32 %v2422_v54, %v2414_v1  ;;  %v5499_v13 = vadd.f32 %v2423_v33, %v2399_v36  ;;  %v2470_v8 = vld [vmem:[#allocation3 + $0x38] sm:$0xff]  ;;  %v2475_v54 = vld [vmem:[#allocation3 + $0x28] sm:$0xff] }
 0x1a2   : > { %v5501_v18 = vadd.f32 %v2424_v42, %v2400_v2  ;;  %v5504_v61 = vadd.f32 %v2425_v31, %v2401_v27  ;;  %v5506_v0 = vadd.f32 %v2426_v50, %v2402_v63  ;;  %v5508_v49 = vadd.f32 %v2427_v24, %v2403_v35  ;;  %v5539_v63 = vld [vmem:[#allocation2 + $0x20] sm:$0xff]  ;;  %v2471_v1 = vld [vmem:[#allocation3 + $0x18] sm:$0xff] }
 0x1a3   : > { %v5510_v38 = vadd.f32 %v2428_v6, %v2404_v46  ;;  %v5514_v37 = vadd.f32 %v2429_v4, %v2405_v9  ;;  %v5516_v62 = vadd.f32 %v2430_v7, %v2406_v59  ;;  %v2439_v44 = vmul.f32 %v5499_v13, %v2141_v17  ;;  %v2473_v17 = vld [vmem:[#allocation3 + $0x20] sm:$0xff]  ;;  %v2474_v45 = vld [vmem:[#allocation3 + $0xf8] sm:$0xff] }
 0x1a4   : > { %v2440_v29 = vmul.f32 %v5501_v18, %v2142_v43  ;;  %v2441_v5 = vmul.f32 %v5504_v61, %v2143_v56  ;;  %v2442_v16 = vmul.f32 %v5506_v0, %v2144_v47  ;;  %v2443_v51 = vmul.f32 %v5508_v49, %v2145_v58 }
 0x1a5   : > { %v2444_v53 = vmul.f32 %v5510_v38, %v2146_v3  ;;  %v2445_v60 = vmul.f32 %v5514_v37, %v2147_v39  ;;  %v2446_v36 = vmul.f32 %v5516_v62, %v2148_v57  ;;  %v2454_v27 = vmul.f32 %v5380_v40, %v3775_v21 }
 0x1a6   : > { %v2447_v2 = vadd.f32 %v2440_v29, %v2439_v44  ;;  %v2495_v35 = vrot.slane %v5512_v55, 7  ;;  %v2496_v46 = vrot.slane %v5520_v23, 7  ;;  %v2497_v9 = vrot.slane %v5522_v30, 7 }
 0x1a7   : > { %v2498_v59 = vrot.slane %v5524_v11, 7  ;;  %v2499_v12 = vrot.slane %v5530_v34, 7  ;;  %v2500_v28 = vrot.slane %v5532_v20, 7  ;;  %v2501_v41 = vrot.slane %v5534_v10, 7 }
 0x1a8   : > { %v2448_v26 = vadd.f32 %v2447_v2, %v2441_v5  ;;  %v2502_v32 = vrot.slane %v5539_v63, 7  ;;  %v2511_v19 = vsel %vm1818_vm8, 1.0, %v2495_v35  ;;  %v2512_v14 = vsel %vm1818_vm8, 1.0, %v2496_v46 }
 0x1a9   : > { %v2513_v15 = vsel %vm1818_vm8, 1.0, %v2497_v9  ;;  %v2514_v33 = vsel %vm1818_vm8, 1.0, %v2498_v59  ;;  %v2515_v42 = vsel %vm1818_vm8, 1.0, %v2499_v12  ;;  %v2516_v43 = vsel %vm1818_vm8, 1.0, %v2500_v28 }
 0x1aa   : > { %v2449_v22 = vadd.f32 %v2448_v26, %v2442_v16  ;;  %v2517_v56 = vsel %vm1818_vm8, 1.0, %v2501_v41  ;;  %v2518_v47 = vsel %vm1818_vm8, 1.0, %v2502_v32  ;;  %v2527_v31 = vrot.slane %v2468_v25, 7 }
 0x1ab   : > { %v2528_v50 = vrot.slane %v2469_v52, 7  ;;  %v2529_v6 = vrot.slane %v2470_v8, 7  ;;  %v2530_v58 = vrot.slane %v2471_v1, 7  ;;  %v2531_v3 = vrot.slane %v2472_v48, 7 }
 0x1ac   : > { %v2450_v24 = vadd.f32 %v2449_v22, %v2443_v51  ;;  %v2532_v39 = vrot.slane %v2473_v17, 7  ;;  %v2533_v4 = vrot.slane %v2474_v45, 7  ;;  %v2534_v7 = vrot.slane %v2475_v54, 7 }
 0x1ad   : > { %v2543_v57 = vsel %vm1818_vm8, 0.0, %v2527_v31  ;;  %v2544_v44 = vsel %vm1818_vm8, 0.0, %v2528_v50  ;;  %v2545_v29 = vsel %vm1818_vm8, 0.0, %v2529_v6  ;;  %v2546_v5 = vsel %vm1818_vm8, 0.0, %v2530_v58 }
 0x1ae   : > { %v2451_v21 = vadd.f32 %v2450_v24, %v2444_v53  ;;  %v2547_v16 = vsel %vm1818_vm8, 0.0, %v2531_v3  ;;  %v2548_v2 = vsel %vm1818_vm8, 0.0, %v2532_v39  ;;  %v2549_v51 = vsel %vm1818_vm8, 0.0, %v2533_v4 }
 0x1af   : > { %v2550_v35 = vsel %vm1818_vm8, 0.0, %v2534_v7  ;;  %v2551_v9 = vmul.f32 %v2543_v57, %v5512_v55  ;;  %v2552_v59 = vmul.f32 %v2544_v44, %v5520_v23  ;;  %v2553_v53 = vmul.f32 %v2545_v29, %v5522_v30 }
 0x1b0   : > { %v2452_v46 = vadd.f32 %v2451_v21, %v2445_v60  ;;  %v2554_v26 = vmul.f32 %v2546_v5, %v5524_v11  ;;  %v2555_v12 = vmul.f32 %v2547_v16, %v5530_v34  ;;  %v2556_v28 = vmul.f32 %v2548_v2, %v5532_v20 }
 0x1b1   : > { %v2557_v41 = vmul.f32 %v2549_v51, %v5534_v10  ;;  %v2558_v22 = vmul.f32 %v2550_v35, %v5539_v63  ;;  %v2559_v31 = vadd.f32 %v2551_v9, %v2468_v25  ;;  %v2560_v60 = vadd.f32 %v2552_v59, %v2469_v52 }
 0x1b2   : > { %v2453_v32 = vadd.f32 %v2452_v46, %v2446_v36  ;;  %v2561_v50 = vadd.f32 %v2553_v53, %v2470_v8  ;;  %v2562_v24 = vadd.f32 %v2554_v26, %v2471_v1  ;;  %v2563_v6 = vadd.f32 %v2555_v12, %v2472_v48 }
 0x1b3   : > { %v2564_v58 = vadd.f32 %v2556_v28, %v2473_v17  ;;  %v2565_v39 = vadd.f32 %v2557_v41, %v2474_v45  ;;  %v2566_v4 = vadd.f32 %v2558_v22, %v2475_v54  ;;  %v2567_v7 = vmul.f32 %v2511_v19, %v5512_v55 }
 0x1b4   : > { %v2455_v3 = vadd.f32 %v2454_v27, %v2453_v32  ;;  %v2568_v57 = vmul.f32 %v2512_v14, %v5520_v23  ;;  %v2569_v21 = vmul.f32 %v2513_v15, %v5522_v30  ;;  %v2570_v36 = vmul.f32 %v2514_v33, %v5524_v11 }
 0x1b5   : > { %v2571_v44 = vmul.f32 %v2515_v42, %v5530_v34  ;;  %v2572_v25 = vmul.f32 %v2516_v43, %v5532_v20  ;;  %v2573_v52 = vmul.f32 %v2517_v56, %v5534_v10  ;;  %v2574_v8 = vmul.f32 %v2518_v47, %v5539_v63 }
 0x1b6   : > { %3776 = vst [vmem:[%s4273_s13 + $0x8] sm:$0xff] %v2455_v3  ;;  %v2583_v27 = vrot.slane %v2567_v7, 6  ;;  %v2584_v1 = vrot.slane %v2568_v57, 6  ;;  %v2585_v48 = vrot.slane %v2569_v21, 6  ;;  %v2586_v17 = vrot.slane %v2570_v36, 6 }
 0x1b7   : > { %v2587_v55 = vrot.slane %v2571_v44, 6  ;;  %v2588_v19 = vrot.slane %v2572_v25, 6  ;;  %v2589_v23 = vrot.slane %v2573_v52, 6  ;;  %v2590_v14 = vrot.slane %v2574_v8, 6 }
 0x1b8   : > { %v2599_v30 = vsel %vm1907_vm9, 1.0, %v2583_v27  ;;  %v2600_v11 = vsel %vm1907_vm9, 1.0, %v2584_v1  ;;  %v2601_v34 = vsel %vm1907_vm9, 1.0, %v2585_v48  ;;  %v2602_v20 = vsel %vm1907_vm9, 1.0, %v2586_v17 }
 0x1b9   : > { %v2603_v10 = vsel %vm1907_vm9, 1.0, %v2587_v55  ;;  %v2604_v63 = vsel %vm1907_vm9, 1.0, %v2588_v19  ;;  %v2605_v15 = vsel %vm1907_vm9, 1.0, %v2589_v23  ;;  %v2606_v45 = vsel %vm1907_vm9, 1.0, %v2590_v14 }
 0x1ba   : > { %v2615_v54 = vrot.slane %v2559_v31, 6  ;;  %v2616_v33 = vrot.slane %v2560_v60, 6  ;;  %v2617_v42 = vrot.slane %v2561_v50, 6  ;;  %v2618_v43 = vrot.slane %v2562_v24, 6 }
 0x1bb   : > { %v2619_v56 = vrot.slane %v2563_v6, 6  ;;  %v2620_v47 = vrot.slane %v2564_v58, 6  ;;  %v2621_v29 = vrot.slane %v2565_v39, 6  ;;  %v2622_v5 = vrot.slane %v2566_v4, 6 }
 0x1bc   : > { %v2631_v16 = vsel %vm1907_vm9, 0.0, %v2615_v54  ;;  %v2632_v2 = vsel %vm1907_vm9, 0.0, %v2616_v33  ;;  %v2633_v51 = vsel %vm1907_vm9, 0.0, %v2617_v42  ;;  %v2634_v35 = vsel %vm1907_vm9, 0.0, %v2618_v43 }
 0x1bd   : > { %v2635_v46 = vsel %vm1907_vm9, 0.0, %v2619_v56  ;;  %v2636_v9 = vsel %vm1907_vm9, 0.0, %v2620_v47  ;;  %v2637_v59 = vsel %vm1907_vm9, 0.0, %v2621_v29  ;;  %v2638_v53 = vsel %vm1907_vm9, 0.0, %v2622_v5 }
 0x1be   : > { %v2639_v26 = vmul.f32 %v2631_v16, %v2567_v7  ;;  %v2640_v12 = vmul.f32 %v2632_v2, %v2568_v57  ;;  %v2641_v28 = vmul.f32 %v2633_v51, %v2569_v21  ;;  %v2642_v41 = vmul.f32 %v2634_v35, %v2570_v36 }
 0x1bf   : > { %v2643_v32 = vmul.f32 %v2635_v46, %v2571_v44  ;;  %v2644_v22 = vmul.f32 %v2636_v9, %v2572_v25  ;;  %v2645_v3 = vmul.f32 %v2637_v59, %v2573_v52  ;;  %v2646_v27 = vmul.f32 %v2638_v53, %v2574_v8 }
 0x1c0   : > { %v2647_v1 = vadd.f32 %v2639_v26, %v2559_v31  ;;  %v2648_v48 = vadd.f32 %v2640_v12, %v2560_v60  ;;  %v2649_v17 = vadd.f32 %v2641_v28, %v2561_v50  ;;  %v2650_v55 = vadd.f32 %v2642_v41, %v2562_v24 }
 0x1c1   : > { %v2651_v19 = vadd.f32 %v2643_v32, %v2563_v6  ;;  %v2652_v23 = vadd.f32 %v2644_v22, %v2564_v58  ;;  %v2653_v14 = vadd.f32 %v2645_v3, %v2565_v39  ;;  %v2654_v54 = vadd.f32 %v2646_v27, %v2566_v4 }
 0x1c2   : > { %v2655_v33 = vmul.f32 %v2599_v30, %v2567_v7  ;;  %v2656_v42 = vmul.f32 %v2600_v11, %v2568_v57  ;;  %v2657_v43 = vmul.f32 %v2601_v34, %v2569_v21  ;;  %v2658_v56 = vmul.f32 %v2602_v20, %v2570_v36 }
 0x1c3   : > { %v2659_v47 = vmul.f32 %v2603_v10, %v2571_v44  ;;  %v2660_v29 = vmul.f32 %v2604_v63, %v2572_v25  ;;  %v2661_v5 = vmul.f32 %v2605_v15, %v2573_v52  ;;  %v2662_v16 = vmul.f32 %v2606_v45, %v2574_v8 }
 0x1c4   : > { %v2671_v2 = vrot.slane %v2655_v33, 4  ;;  %v2672_v51 = vrot.slane %v2656_v42, 4  ;;  %v2673_v35 = vrot.slane %v2657_v43, 4  ;;  %v2674_v46 = vrot.slane %v2658_v56, 4 }
 0x1c5   : > { %v2675_v31 = vrot.slane %v2659_v47, 4  ;;  %v2676_v60 = vrot.slane %v2660_v29, 4  ;;  %v2677_v50 = vrot.slane %v2661_v5, 4  ;;  %v2678_v24 = vrot.slane %v2662_v16, 4 }
 0x1c6   : > { %v2687_v6 = vsel %vm1996_vm10, 1.0, %v2671_v2  ;;  %v2688_v58 = vsel %vm1996_vm10, 1.0, %v2672_v51  ;;  %v2689_v39 = vsel %vm1996_vm10, 1.0, %v2673_v35  ;;  %v2690_v4 = vsel %vm1996_vm10, 1.0, %v2674_v46 }
 0x1c7   : > { %v2691_v7 = vsel %vm1996_vm10, 1.0, %v2675_v31  ;;  %v2692_v57 = vsel %vm1996_vm10, 1.0, %v2676_v60  ;;  %v2693_v21 = vsel %vm1996_vm10, 1.0, %v2677_v50  ;;  %v2694_v36 = vsel %vm1996_vm10, 1.0, %v2678_v24 }
 0x1c8   : > { %v2703_v44 = vrot.slane %v2647_v1, 4  ;;  %v2704_v25 = vrot.slane %v2648_v48, 4  ;;  %v2705_v52 = vrot.slane %v2649_v17, 4  ;;  %v2706_v8 = vrot.slane %v2650_v55, 4 }
 0x1c9   : > { %v2707_v30 = vrot.slane %v2651_v19, 4  ;;  %v2708_v11 = vrot.slane %v2652_v23, 4  ;;  %v2709_v34 = vrot.slane %v2653_v14, 4  ;;  %v2710_v20 = vrot.slane %v2654_v54, 4 }
 0x1ca   : > { %v2719_v10 = vsel %vm1996_vm10, 0.0, %v2703_v44  ;;  %v2720_v63 = vsel %vm1996_vm10, 0.0, %v2704_v25  ;;  %v2721_v15 = vsel %vm1996_vm10, 0.0, %v2705_v52  ;;  %v2722_v45 = vsel %vm1996_vm10, 0.0, %v2706_v8 }
 0x1cb   : > { %v2723_v9 = vsel %vm1996_vm10, 0.0, %v2707_v30  ;;  %v2724_v59 = vsel %vm1996_vm10, 0.0, %v2708_v11  ;;  %v2725_v53 = vsel %vm1996_vm10, 0.0, %v2709_v34  ;;  %v2726_v26 = vsel %vm1996_vm10, 0.0, %v2710_v20 }
 0x1cc   : > { %v2727_v12 = vmul.f32 %v2719_v10, %v2655_v33  ;;  %v2728_v28 = vmul.f32 %v2720_v63, %v2656_v42  ;;  %v2729_v41 = vmul.f32 %v2721_v15, %v2657_v43  ;;  %v2730_v32 = vmul.f32 %v2722_v45, %v2658_v56 }
 0x1cd   : > { %v2731_v22 = vmul.f32 %v2723_v9, %v2659_v47  ;;  %v2732_v3 = vmul.f32 %v2724_v59, %v2660_v29  ;;  %v2733_v27 = vmul.f32 %v2725_v53, %v2661_v5  ;;  %v2734_v2 = vmul.f32 %v2726_v26, %v2662_v16  ;;  %v5642_v9 = vld [vmem:[#allocation2 + $0x48] sm:$0xff]  ;;  %v5644_v59 = vld [vmem:[#allocation2 + $0xb8] sm:$0xff] }
 0x1ce   : > { %v2735_v51 = vadd.f32 %v2727_v12, %v2647_v1  ;;  %v2736_v35 = vadd.f32 %v2728_v28, %v2648_v48  ;;  %v2737_v46 = vadd.f32 %v2729_v41, %v2649_v17  ;;  %v2738_v31 = vadd.f32 %v2730_v32, %v2650_v55  ;;  %v2477_v55 = vld [vmem:[#allocation4 + $0xc0] sm:$0xff]  ;;  %v5646_v53 = vld [vmem:[#allocation2 + $0x78] sm:$0xff]  ;;  %v5652_v32 = vld [vmem:[#allocation2 + $0xc8] sm:$0xff] }
 0x1cf   : > { %v2739_v60 = vadd.f32 %v2731_v22, %v2651_v19  ;;  %v2740_v50 = vadd.f32 %v2732_v3, %v2652_v23  ;;  %v2741_v24 = vadd.f32 %v2733_v27, %v2653_v14  ;;  %v2742_v44 = vadd.f32 %v2734_v2, %v2654_v54  ;;  %v5654_v22 = vld [vmem:[#allocation2 + $0xc0] sm:$0xff]  ;;  %v5656_v3 = vld [vmem:[#allocation2 + $0x28] sm:$0xff] }
 0x1d0   : > { %v2743_v25 = vmul.f32 %v2687_v6, %v2655_v33  ;;  %v2744_v52 = vmul.f32 %v2688_v58, %v2656_v42  ;;  %v2745_v8 = vmul.f32 %v2689_v39, %v2657_v43  ;;  %v2746_v30 = vmul.f32 %v2690_v4, %v2658_v56  ;;  %v2478_v33 = vld [vmem:[#allocation4 + $0xd0] sm:$0xff]  ;;  %v2479_v42 = vld [vmem:[#allocation4 + $0x48] sm:$0xff] }
 0x1d1   : > { %v2747_v11 = vmul.f32 %v2691_v7, %v2659_v47  ;;  %v2748_v34 = vmul.f32 %v2692_v57, %v2660_v29  ;;  %v2749_v20 = vmul.f32 %v2693_v21, %v2661_v5  ;;  %v2750_v10 = vmul.f32 %v2694_v36, %v2662_v16  ;;  %v2481_v47 = vld [vmem:[#allocation4 + $0xf8] sm:$0xff]  ;;  %v2483_v29 = vld [vmem:[#allocation4 + $0x50] sm:$0xff] }
 0x1d2   : > { %v2751_v63 = vperm.slane %v5499_v13, 7  ;;  %v2752_v15 = vperm.slane %v5501_v18, 7  ;;  %v2753_v1 = vperm.slane %v5504_v61, 7  ;;  %v2754_v48 = vperm.slane %v5506_v0, 7  ;;  %v2480_v13 = vld [vmem:[#allocation4 + $0xe0] sm:$0xff]  ;;  %v2482_v0 = vld [vmem:[#allocation4 + $0x38] sm:$0xff] }
 0x1d3   : > { %v2755_v17 = vperm.slane %v5508_v49, 7  ;;  %v2756_v19 = vperm.slane %v5510_v38, 7  ;;  %v2757_v23 = vperm.slane %v5514_v37, 7  ;;  %v2758_v14 = vperm.slane %v5516_v62, 7  ;;  %v2484_v37 = vld [vmem:[#allocation4 + $0x60] sm:$0xff]  ;;  %v3777_v6 = vld [vmem:[%s4370_s22 + $0x10] sm:$0xff] }
 0x1d4   : > { %v2759_v54 = vmul.f32 %v2751_v63, %v2743_v25  ;;  %v2760_v43 = vmul.f32 %v2752_v15, %v2744_v52  ;;  %v2761_v18 = vmul.f32 %v2753_v1, %v2745_v8  ;;  %v2762_v56 = vmul.f32 %v2754_v48, %v2746_v30  ;;  %v5633_v7 = vld [vmem:[#allocation2 + $0x18] sm:$0xff]  ;;  %v2805_v25 = vld [vmem:[#allocation3 + $0xa8] sm:$0xff]  ;;  %v2806_v52 = vld [vmem:[#allocation3 + $0x40] sm:$0xff] }
 0x1d5   : > { %v2763_v61 = vmul.f32 %v2755_v17, %v2747_v11  ;;  %v2764_v49 = vmul.f32 %v2756_v19, %v2748_v34  ;;  %v2765_v5 = vmul.f32 %v2757_v23, %v2749_v20  ;;  %v2766_v16 = vmul.f32 %v2758_v14, %v2750_v10  ;;  %v2807_v20 = vld [vmem:[#allocation3 + $0x68] sm:$0xff]  ;;  %v2808_v10 = vld [vmem:[#allocation3 + $0xa0] sm:$0xff]  ;;  %v2809_v63 = vld [vmem:[#allocation3 + $0xf0] sm:$0xff] }
 0x1d6   : > { %v5622_v38 = vadd.f32 %v2759_v54, %v2735_v51  ;;  %v5625_v62 = vadd.f32 %v2760_v43, %v2736_v35  ;;  %v5627_v58 = vadd.f32 %v2761_v18, %v2737_v46  ;;  %v5629_v39 = vadd.f32 %v2762_v56, %v2738_v31  ;;  %v5664_v46 = vld [vmem:[#allocation2 + $0x98] sm:$0xff]  ;;  %v2810_v17 = vld [vmem:[#allocation3 + $0xc0] sm:$0xff] }
 0x1d7   : > { %v5631_v4 = vadd.f32 %v2763_v61, %v2739_v60  ;;  %v5635_v57 = vadd.f32 %v2764_v49, %v2740_v50  ;;  %v5637_v21 = vadd.f32 %v2765_v5, %v2741_v24  ;;  %v5639_v36 = vadd.f32 %v2766_v16, %v2742_v44  ;;  %v2804_v60 = vld [vmem:[#allocation3 + $0x78] sm:$0xff] }
 0x1d8   : > { %v2775_v45 = vmul.f32 %v5622_v38, %v2477_v55  ;;  %v2776_v26 = vmul.f32 %v5625_v62, %v2478_v33  ;;  %v2777_v12 = vmul.f32 %v5627_v58, %v2479_v42  ;;  %v2778_v28 = vmul.f32 %v5629_v39, %v2480_v13  ;;  %v2811_v55 = vld [vmem:[#allocation3 + $0x98] sm:$0xff] }
 0x1d9   : > { %v2779_v41 = vmul.f32 %v5631_v4, %v2481_v47  ;;  %v2780_v27 = vmul.f32 %v5635_v57, %v2482_v0  ;;  %v2781_v2 = vmul.f32 %v5637_v21, %v2483_v29  ;;  %v2782_v51 = vmul.f32 %v5639_v36, %v2484_v37 }
 0x1da   : > { %v5662_v35 = vmul.f32 %v5380_v40, %v3777_v6  ;;  %v2783_v31 = vadd.f32 %v2776_v26, %v2775_v45  ;;  %v2831_v50 = vrot.slane %v5633_v7, 7  ;;  %v2832_v24 = vrot.slane %v5642_v9, 7 }
 0x1db   : > { %v2833_v44 = vrot.slane %v5644_v59, 7  ;;  %v2834_v8 = vrot.slane %v5646_v53, 7  ;;  %v2835_v30 = vrot.slane %v5652_v32, 7  ;;  %v2836_v11 = vrot.slane %v5654_v22, 7 }
 0x1dc   : > { %v2837_v40 = vrot.slane %v5656_v3, 7  ;;  %v2784_v34 = vadd.f32 %v2783_v31, %v2777_v12  ;;  %v2838_v15 = vrot.slane %v5664_v46, 7  ;;  %v2847_v1 = vsel %vm1818_vm8, 1.0, %v2831_v50 }
 0x1dd   : > { %v2848_v48 = vsel %vm1818_vm8, 1.0, %v2832_v24  ;;  %v2849_v19 = vsel %vm1818_vm8, 1.0, %v2833_v44  ;;  %v2850_v23 = vsel %vm1818_vm8, 1.0, %v2834_v8  ;;  %v2851_v14 = vsel %vm1818_vm8, 1.0, %v2835_v30 }
 0x1de   : > { %v2852_v54 = vsel %vm1818_vm8, 1.0, %v2836_v11  ;;  %v2785_v33 = vadd.f32 %v2784_v34, %v2778_v28  ;;  %v2853_v42 = vsel %vm1818_vm8, 1.0, %v2837_v40  ;;  %v2854_v13 = vsel %vm1818_vm8, 1.0, %v2838_v15 }
 0x1df   : > { %v2863_v43 = vrot.slane %v2804_v60, 7  ;;  %v2864_v18 = vrot.slane %v2805_v25, 7  ;;  %v2865_v56 = vrot.slane %v2806_v52, 7  ;;  %v2866_v61 = vrot.slane %v2807_v20, 7 }
 0x1e0   : > { %v2867_v47 = vrot.slane %v2808_v10, 7  ;;  %v2786_v0 = vadd.f32 %v2785_v33, %v2779_v41  ;;  %v2868_v29 = vrot.slane %v2809_v63, 7  ;;  %v2869_v49 = vrot.slane %v2810_v17, 7 }
 0x1e1   : > { %v2870_v5 = vrot.slane %v2811_v55, 7  ;;  %v2879_v16 = vsel %vm1818_vm8, 0.0, %v2863_v43  ;;  %v2880_v37 = vsel %vm1818_vm8, 0.0, %v2864_v18  ;;  %v2881_v6 = vsel %vm1818_vm8, 0.0, %v2865_v56 }
 0x1e2   : > { %v2882_v45 = vsel %vm1818_vm8, 0.0, %v2866_v61  ;;  %v2787_v26 = vadd.f32 %v2786_v0, %v2780_v27  ;;  %v2883_v12 = vsel %vm1818_vm8, 0.0, %v2867_v47  ;;  %v2884_v28 = vsel %vm1818_vm8, 0.0, %v2868_v29 }
 0x1e3   : > { %v2885_v31 = vsel %vm1818_vm8, 0.0, %v2869_v49  ;;  %v2886_v41 = vsel %vm1818_vm8, 0.0, %v2870_v5  ;;  %v2887_v50 = vmul.f32 %v2879_v16, %v5633_v7  ;;  %v2888_v24 = vmul.f32 %v2880_v37, %v5642_v9 }
 0x1e4   : > { %v2889_v44 = vmul.f32 %v2881_v6, %v5644_v59  ;;  %v2788_v8 = vadd.f32 %v2787_v26, %v2781_v2  ;;  %v2890_v30 = vmul.f32 %v2882_v45, %v5646_v53  ;;  %v2891_v11 = vmul.f32 %v2883_v12, %v5652_v32 }
 0x1e5   : > { %v2892_v27 = vmul.f32 %v2884_v28, %v5654_v22  ;;  %v2893_v40 = vmul.f32 %v2885_v31, %v5656_v3  ;;  %v2894_v34 = vmul.f32 %v2886_v41, %v5664_v46  ;;  %v2895_v15 = vadd.f32 %v2887_v50, %v2804_v60 }
 0x1e6   : > { %v2896_v33 = vadd.f32 %v2888_v24, %v2805_v25  ;;  %v2789_v43 = vadd.f32 %v2788_v8, %v2782_v51  ;;  %v2897_v18 = vadd.f32 %v2889_v44, %v2806_v52  ;;  %v2898_v56 = vadd.f32 %v2890_v30, %v2807_v20 }
 0x1e7   : > { %v2899_v61 = vadd.f32 %v2891_v11, %v2808_v10  ;;  %v2900_v47 = vadd.f32 %v2892_v27, %v2809_v63  ;;  %v2901_v0 = vadd.f32 %v2893_v40, %v2810_v17  ;;  %v2902_v2 = vadd.f32 %v2894_v34, %v2811_v55 }
 0x1e8   : > { %v2903_v29 = vmul.f32 %v2847_v1, %v5633_v7  ;;  %v2791_v49 = vadd.f32 %v5662_v35, %v2789_v43  ;;  %v2904_v5 = vmul.f32 %v2848_v48, %v5642_v9  ;;  %v2905_v16 = vmul.f32 %v2849_v19, %v5644_v59 }
 0x1e9   : > { %v2906_v37 = vmul.f32 %v2850_v23, %v5646_v53  ;;  %v2907_v60 = vmul.f32 %v2851_v14, %v5652_v32  ;;  %v2908_v51 = vmul.f32 %v2852_v54, %v5654_v22  ;;  %v2909_v25 = vmul.f32 %v2853_v42, %v5656_v3 }
 0x1ea   : > { %v2910_v52 = vmul.f32 %v2854_v13, %v5664_v46  ;;  %3778 = vst [vmem:[%s4273_s13 + $0x10] sm:$0xff] %v2791_v49  ;;  %v2919_v20 = vrot.slane %v2903_v29, 6  ;;  %v2920_v10 = vrot.slane %v2904_v5, 6  ;;  %v2921_v7 = vrot.slane %v2905_v16, 6 }
 0x1eb   : > { %v2922_v63 = vrot.slane %v2906_v37, 6  ;;  %v2923_v35 = vrot.slane %v2907_v60, 6  ;;  %v2924_v1 = vrot.slane %v2908_v51, 6  ;;  %v2925_v9 = vrot.slane %v2909_v25, 6 }
 0x1ec   : > { %v2926_v48 = vrot.slane %v2910_v52, 6  ;;  %v2935_v59 = vsel %vm1907_vm9, 1.0, %v2919_v20  ;;  %v2936_v53 = vsel %vm1907_vm9, 1.0, %v2920_v10  ;;  %v2937_v32 = vsel %vm1907_vm9, 1.0, %v2921_v7 }
 0x1ed   : > { %v2938_v22 = vsel %vm1907_vm9, 1.0, %v2922_v63  ;;  %v2939_v3 = vsel %vm1907_vm9, 1.0, %v2923_v35  ;;  %v2940_v46 = vsel %vm1907_vm9, 1.0, %v2924_v1  ;;  %v2941_v17 = vsel %vm1907_vm9, 1.0, %v2925_v9 }
 0x1ee   : > { %v2942_v55 = vsel %vm1907_vm9, 1.0, %v2926_v48  ;;  %v2951_v19 = vrot.slane %v2895_v15, 6  ;;  %v2952_v23 = vrot.slane %v2896_v33, 6  ;;  %v2953_v14 = vrot.slane %v2897_v18, 6 }
 0x1ef   : > { %v2954_v54 = vrot.slane %v2898_v56, 6  ;;  %v2955_v42 = vrot.slane %v2899_v61, 6  ;;  %v2956_v13 = vrot.slane %v2900_v47, 6  ;;  %v2957_v6 = vrot.slane %v2901_v0, 6 }
 0x1f0   : > { %v2958_v45 = vrot.slane %v2902_v2, 6  ;;  %v2967_v26 = vsel %vm1907_vm9, 0.0, %v2951_v19  ;;  %v2968_v12 = vsel %vm1907_vm9, 0.0, %v2952_v23  ;;  %v2969_v28 = vsel %vm1907_vm9, 0.0, %v2953_v14 }
 0x1f1   : > { %v2970_v31 = vsel %vm1907_vm9, 0.0, %v2954_v54  ;;  %v2971_v41 = vsel %vm1907_vm9, 0.0, %v2955_v42  ;;  %v2972_v50 = vsel %vm1907_vm9, 0.0, %v2956_v13  ;;  %v2973_v24 = vsel %vm1907_vm9, 0.0, %v2957_v6 }
 0x1f2   : > { %v2974_v44 = vsel %vm1907_vm9, 0.0, %v2958_v45  ;;  %v2975_v8 = vmul.f32 %v2967_v26, %v2903_v29  ;;  %v2976_v30 = vmul.f32 %v2968_v12, %v2904_v5  ;;  %v2977_v11 = vmul.f32 %v2969_v28, %v2905_v16 }
 0x1f3   : > { %v2978_v27 = vmul.f32 %v2970_v31, %v2906_v37  ;;  %v2979_v40 = vmul.f32 %v2971_v41, %v2907_v60  ;;  %v2980_v34 = vmul.f32 %v2972_v50, %v2908_v51  ;;  %v2981_v43 = vmul.f32 %v2973_v24, %v2909_v25 }
 0x1f4   : > { %v2982_v49 = vmul.f32 %v2974_v44, %v2910_v52  ;;  %v2983_v20 = vadd.f32 %v2975_v8, %v2895_v15  ;;  %v2984_v10 = vadd.f32 %v2976_v30, %v2896_v33  ;;  %v2985_v7 = vadd.f32 %v2977_v11, %v2897_v18 }
 0x1f5   : > { %v2986_v63 = vadd.f32 %v2978_v27, %v2898_v56  ;;  %v2987_v35 = vadd.f32 %v2979_v40, %v2899_v61  ;;  %v2988_v1 = vadd.f32 %v2980_v34, %v2900_v47  ;;  %v2989_v9 = vadd.f32 %v2981_v43, %v2901_v0 }
 0x1f6   : > { %v2990_v48 = vadd.f32 %v2982_v49, %v2902_v2  ;;  %v2991_v19 = vmul.f32 %v2935_v59, %v2903_v29  ;;  %v2992_v23 = vmul.f32 %v2936_v53, %v2904_v5  ;;  %v2993_v14 = vmul.f32 %v2937_v32, %v2905_v16 }
 0x1f7   : > { %v2994_v54 = vmul.f32 %v2938_v22, %v2906_v37  ;;  %v2995_v42 = vmul.f32 %v2939_v3, %v2907_v60  ;;  %v2996_v13 = vmul.f32 %v2940_v46, %v2908_v51  ;;  %v2997_v6 = vmul.f32 %v2941_v17, %v2909_v25 }
 0x1f8   : > { %v2998_v45 = vmul.f32 %v2942_v55, %v2910_v52  ;;  %v3007_v26 = vrot.slane %v2991_v19, 4  ;;  %v3008_v12 = vrot.slane %v2992_v23, 4  ;;  %v3009_v28 = vrot.slane %v2993_v14, 4 }
 0x1f9   : > { %v3010_v31 = vrot.slane %v2994_v54, 4  ;;  %v3011_v15 = vrot.slane %v2995_v42, 4  ;;  %v3012_v33 = vrot.slane %v2996_v13, 4  ;;  %v3013_v18 = vrot.slane %v2997_v6, 4 }
 0x1fa   : > { %v3014_v56 = vrot.slane %v2998_v45, 4  ;;  %v3023_v61 = vsel %vm1996_vm10, 1.0, %v3007_v26  ;;  %v3024_v47 = vsel %vm1996_vm10, 1.0, %v3008_v12  ;;  %v3025_v0 = vsel %vm1996_vm10, 1.0, %v3009_v28 }
 0x1fb   : > { %v3026_v2 = vsel %vm1996_vm10, 1.0, %v3010_v31  ;;  %v3027_v29 = vsel %vm1996_vm10, 1.0, %v3011_v15  ;;  %v3028_v5 = vsel %vm1996_vm10, 1.0, %v3012_v33  ;;  %v3029_v16 = vsel %vm1996_vm10, 1.0, %v3013_v18 }
 0x1fc   : > { %v3030_v37 = vsel %vm1996_vm10, 1.0, %v3014_v56  ;;  %v3039_v60 = vrot.slane %v2983_v20, 4  ;;  %v3040_v51 = vrot.slane %v2984_v10, 4  ;;  %v3041_v25 = vrot.slane %v2985_v7, 4 }
 0x1fd   : > { %v3042_v52 = vrot.slane %v2986_v63, 4  ;;  %v3043_v59 = vrot.slane %v2987_v35, 4  ;;  %v3044_v53 = vrot.slane %v2988_v1, 4  ;;  %v3045_v32 = vrot.slane %v2989_v9, 4 }
 0x1fe   : > { %v3046_v22 = vrot.slane %v2990_v48, 4  ;;  %v3055_v3 = vsel %vm1996_vm10, 0.0, %v3039_v60  ;;  %v3056_v46 = vsel %vm1996_vm10, 0.0, %v3040_v51  ;;  %v3057_v17 = vsel %vm1996_vm10, 0.0, %v3041_v25 }
 0x1ff   : > { %v3058_v55 = vsel %vm1996_vm10, 0.0, %v3042_v52  ;;  %v3059_v41 = vsel %vm1996_vm10, 0.0, %v3043_v59  ;;  %v3060_v50 = vsel %vm1996_vm10, 0.0, %v3044_v53  ;;  %v3061_v24 = vsel %vm1996_vm10, 0.0, %v3045_v32 }
 0x200   : > { %v3062_v44 = vsel %vm1996_vm10, 0.0, %v3046_v22  ;;  %v3063_v8 = vmul.f32 %v3055_v3, %v2991_v19  ;;  %v3064_v30 = vmul.f32 %v3056_v46, %v2992_v23  ;;  %v3065_v11 = vmul.f32 %v3057_v17, %v2993_v14 }
 0x201   : > { %v3066_v27 = vmul.f32 %v3058_v55, %v2994_v54  ;;  %v3067_v40 = vmul.f32 %v3059_v41, %v2995_v42  ;;  %v3068_v34 = vmul.f32 %v3060_v50, %v2996_v13  ;;  %v3069_v43 = vmul.f32 %v3061_v24, %v2997_v6 }
 0x202   : > { %v3070_v49 = vmul.f32 %v3062_v44, %v2998_v45  ;;  %v3071_v26 = vadd.f32 %v3063_v8, %v2983_v20  ;;  %v3072_v12 = vadd.f32 %v3064_v30, %v2984_v10  ;;  %v3073_v28 = vadd.f32 %v3065_v11, %v2985_v7 }
 0x203   : > { %v3074_v31 = vadd.f32 %v3066_v27, %v2986_v63  ;;  %v3075_v15 = vadd.f32 %v3067_v40, %v2987_v35  ;;  %v3076_v33 = vadd.f32 %v3068_v34, %v2988_v1  ;;  %v3077_v18 = vadd.f32 %v3069_v43, %v2989_v9  ;;  %v2819_v40 = vld [vmem:[#allocation4 + $0x88] sm:$0xff] }
 0x204   : > { %v3078_v56 = vadd.f32 %v3070_v49, %v2990_v48  ;;  %v3079_v60 = vmul.f32 %v3023_v61, %v2991_v19  ;;  %v3080_v51 = vmul.f32 %v3024_v47, %v2992_v23  ;;  %v3081_v25 = vmul.f32 %v3025_v0, %v2993_v14  ;;  %v2813_v14 = vld [vmem:[#allocation4 + $0x10] sm:$0xff] }
 0x205   : > { %v3082_v52 = vmul.f32 %v3026_v2, %v2994_v54  ;;  %v3083_v59 = vmul.f32 %v3027_v29, %v2995_v42  ;;  %v3084_v53 = vmul.f32 %v3028_v5, %v2996_v13  ;;  %v3085_v32 = vmul.f32 %v3029_v16, %v2997_v6  ;;  %v2815_v54 = vld [vmem:[#allocation4 + $0x40] sm:$0xff]  ;;  %v2817_v6 = vld [vmem:[#allocation4 + $0xe8] sm:$0xff] }
 0x206   : > { %v3086_v22 = vmul.f32 %v3030_v37, %v2998_v45  ;;  %v3087_v3 = vperm.slane %v5622_v38, 7  ;;  %v3088_v46 = vperm.slane %v5625_v62, 7  ;;  %v3089_v20 = vperm.slane %v5627_v58, 7  ;;  %v2814_v38 = vld [vmem:[#allocation4 + $0x68] sm:$0xff] }
 0x207   : > { %v3090_v10 = vperm.slane %v5629_v39, 7  ;;  %v3091_v7 = vperm.slane %v5631_v4, 7  ;;  %v3092_v63 = vperm.slane %v5635_v57, 7  ;;  %v3093_v35 = vperm.slane %v5637_v21, 7  ;;  %v2816_v39 = vld [vmem:[#allocation4 + $0x80] sm:$0xff]  ;;  %v2818_v21 = vld [vmem:[#allocation4 + $0x70] sm:$0xff] }
 0x208   : > { %v3094_v1 = vperm.slane %v5639_v36, 7  ;;  %v3095_v9 = vmul.f32 %v3087_v3, %v3079_v60  ;;  %v3096_v48 = vmul.f32 %v3088_v46, %v3080_v51  ;;  %v3097_v19 = vmul.f32 %v3089_v20, %v3081_v25 }
 0x209   : > { %v3098_v23 = vmul.f32 %v3090_v10, %v3082_v52  ;;  %v3099_v62 = vmul.f32 %v3091_v7, %v3083_v59  ;;  %v3100_v42 = vmul.f32 %v3092_v63, %v3084_v53  ;;  %v3101_v58 = vmul.f32 %v3093_v35, %v3085_v32  ;;  %v4054_v59 = vld [vmem:[%s5774_s6] ss:$0 sm:$0xff] }
 0x20a   : > { %v3102_v13 = vmul.f32 %v3094_v1, %v3086_v22  ;;  %v3103_v4 = vadd.f32 %v3095_v9, %v3071_v26  ;;  %v3104_v45 = vadd.f32 %v3096_v48, %v3072_v12  ;;  %v3105_v57 = vadd.f32 %v3097_v19, %v3073_v28  ;;  %v2820_v28 = vld [vmem:[#allocation4 + $0x8] sm:$0xff] }
 0x20b   : > { %v3106_v61 = vadd.f32 %v3098_v23, %v3074_v31  ;;  %v3107_v47 = vadd.f32 %v3099_v62, %v3075_v15  ;;  %v3108_v36 = vadd.f32 %v3100_v42, %v3076_v33  ;;  %v3109_v5 = vadd.f32 %v3101_v58, %v3077_v18 }
 0x20c   : > { %v3111_v0 = vmul.f32 %v3103_v4, %v2813_v14  ;;  %v3112_v2 = vmul.f32 %v3104_v45, %v2814_v38  ;;  %v3113_v29 = vmul.f32 %v3105_v57, %v2815_v54  ;;  %3159 = vst [vmem:[#allocation5 - $0x7] sm:$0x80] %v3103_v4  ;;  %v3110_v16 = vadd.f32 %v3102_v13, %v3078_v56  ;;  %v3779_v56 = vld [vmem:[%s4370_s22 + $0x18] sm:$0xff] }
 0x20d   : > { %v3114_v37 = vmul.f32 %v3106_v61, %v2816_v39  ;;  %v3115_v17 = vmul.f32 %v3107_v47, %v2817_v6  ;;  %v3116_v55 = vmul.f32 %v3108_v36, %v2818_v21  ;;  %v3138_v50 = vrot.slane %v3104_v45, 7 }
 0x20e   : > { %v3119_v41 = vadd.f32 %v3112_v2, %v3111_v0  ;;  %v3139_v24 = vrot.slane %v3105_v57, 6  ;;  %vm3140_vm11 = vcmask 1041409   ;;  %v3142_v44 = vrot.slane %v3106_v61, 5 }
 0x20f   : > { %vm3143_vm12 = vcmask 1042434   ;;  %v3145_v8 = vrot.slane %v3107_v47, 4  ;;  %vm3146_vm13 = vcmask 1043459   ;;  %v3148_v27 = vrot.slane %v3108_v36, 3 }
 0x210   : > { %v3120_v30 = vadd.f32 %v3119_v41, %v3113_v29  ;;  %v3141_v11 = vsel %vm3140_vm11, %v3139_v24, %v3138_v50  ;;  %vm3149_vm14 = vcmask 1044484   ;;  %v3151_v43 = vrot.slane %v3109_v5, 2 }
 0x211   : > { %v3144_v34 = vsel %vm3143_vm12, %v3142_v44, %v3141_v11  ;;  %vm3152_vm15 = vcmask 1045509   ;;  %v3154_v12 = vrot.slane %v3110_v16, 1  ;;  %vm3155_vm0 = vcmask 1046534  }
 0x212   : > { %v3121_v49 = vadd.f32 %v3120_v30, %v3114_v37  ;;  %v3147_v26 = vsel %vm3146_vm13, %v3145_v8, %v3144_v34  ;;  %v3117_v15 = vmul.f32 %v3109_v5, %v2819_v40  ;;  %v3118_v51 = vmul.f32 %v3110_v16, %v2820_v28 }
 0x213   : > { %v3150_v31 = vsel %vm3149_vm14, %v3148_v27, %v3147_v26  ;;  %v3126_v53 = vmul.f32 %v4054_v59, %v3779_v56 }
 0x214   : > { %v3122_v33 = vadd.f32 %v3121_v49, %v3115_v17  ;;  %v3153_v18 = vsel %vm3152_vm15, %v3151_v43, %v3150_v31 }
 0x215   : > { %v3156_v60 = vsel %vm3155_vm0, %v3154_v12, %v3153_v18 }
 0x216   : > { %v3123_v25 = vadd.f32 %v3122_v33, %v3116_v55  ;;  %3160 = vst [vmem:[#allocation5 + $0x1] sm:$0x7f] %v3156_v60 }
 0x218   : > { %v3124_v52 = vadd.f32 %v3123_v25, %v3117_v15 }
 0x21a   : > { %v3125_v32 = vadd.f32 %v3124_v52, %v3118_v51 }
 0x21c   : > { %v3127_v22 = vadd.f32 %v3126_v53, %v3125_v32 }
 0x21e   : > { %3780 = vst [vmem:[%s4273_s13 + $0x18] sm:$0xff] %v3127_v22 }
 0x21f PF: > { %s17_s28 = sadd.s32 1, %s4093_s28   ;;  %s5778_s24 = smov %s4085_s26 }
 0x220   : > { %p14_p8 = scmp.ge.s32.totalorder %s17_s28, 6   ;;  %s5779_s25 = smov %s4089_s27 }
 0x221   : > { %s5780_s26 = smov %s5783_s29  ;;  %s5781_s27 = smov %s5787_s30 }
 0x222   :  { %16 = sbr.rel (!%p14_p8) target bundleno = 3 (0x3), region = 118 }

</bundles_post_ra>
